<compile_context>
chip_gen: v6e
topology: v6e:2x2x1
jax: 0.10.0
libtpu: 0.0.40
codegen_flags: <defaults>
</compile_context>

<pallas_src>
import math
import jax
import jax.numpy as jnp
from jax.experimental import pallas as pl
from jax.experimental.pallas import tpu as pltpu

# ---------------- model hyper-parameters (small, GIT-like) ----------------
B = 2                       # batch
C = 3                       # image channels
IMG = 16                    # image spatial size
PATCH = 8                   # ViT patch size
NP = (IMG // PATCH) ** 2    # 4 patches
CPP = C * PATCH * PATCH     # 192 patch features
SV = 1 + NP                 # vision tokens (CLS + patches) = 5
T_TXT = 8                   # text sequence length ("max_length" padding)
SEQ = SV + T_TXT            # real sequence length = 13
SEQP = 16                   # padded sequence length (multiple of 8)
BSEQP = B * SEQP            # batch folded into sublanes = 32
D = 32                      # hidden size
NH = 2                      # attention heads
DH = D // NH                # head dim = 16
FF = 64                     # MLP intermediate
VOCAB = 64
N_VIT_LAYERS = 1
N_TEXT_LAYERS = 2
N_LAYERS = N_VIT_LAYERS + N_TEXT_LAYERS
ACTION_DIM = 5
HEAD_HIDDEN = 128
OUT_PAD = 128               # lane-dense output width (sliced to ACTION_DIM)
PROMPT = "What should the vehicle do in this scenario?"

F32 = jnp.float32
BF16 = jnp.bfloat16


# =========================== fused Pallas kernel ===========================

def _fused_forward_kernel(
    patch_ref,      # [BSEQP, CPP] bf16  (per-call data)
    add0_ref,       # [BSEQP, D]   f32   (cls + vis_pos + patch_b, tiled per batch)
    projadd_ref,    # [BSEQP, D]   f32   (proj_b on vision rows + text embeddings)
    mask_ref,       # [2, BSEQP, BSEQP] f32 (0: ViT bias, 1: decoder bias)
    patch_w_ref,    # [CPP, D]     bf16
    wqkv_ref,       # [L, D, 3D]   bf16
    wo_ref,         # [L, D, D]    bf16
    w1_ref,         # [L, D, FF]   bf16
    w2_ref,         # [L, FF, D]   bf16
    proj_w_ref,     # [D, D]       bf16
    lnp_ref,        # [L, 8, 3D]   f32   per-layer LN/bias slab
    small_ref,      # [8, 128]     f32   lnf_g, lnf_b, ph_b1, ph_b2(padded)
    ph_w1_ref,      # [D, HEAD_HIDDEN]       bf16
    ph_w2_ref,      # [HEAD_HIDDEN, OUT_PAD] bf16 (zero-padded past ACTION_DIM)
    out_ref,        # [BSEQP, OUT_PAD] f32
):
    """Single grid step: the whole batch, folded along sublanes."""

    def mm(a, w):
        # bf16 MXU inputs, f32 accumulation.
        return jnp.dot(a.astype(BF16), w, preferred_element_type=F32)

    def layer_norm(x, g, b):
        mu = jnp.mean(x, axis=-1, keepdims=True)
        var = jnp.mean(jnp.square(x - mu), axis=-1, keepdims=True)
        return (x - mu) * jax.lax.rsqrt(var + 1e-5) * g + b

    # vision-row mask generated in-register (rows 0..SV-1 within each batch block)
    row = jax.lax.broadcasted_iota(jnp.int32, (BSEQP, 1), 0)
    r_in_block = row & (SEQP - 1)                    # SEQP is a power of two
    vis_rows = (r_in_block < SV).astype(F32)

    # --- patch embedding; CLS / positional / patch-bias adds are pre-baked ---
    # Non-patch rows of patch_ref are zero, so the matmul is zero there and
    # add0 supplies CLS + positional embeddings.
    x = mm(patch_ref[...], patch_w_ref[...]) + add0_ref[...]        # [BSEQP, D] f32

    scale = 1.0 / math.sqrt(DH)

    def block(x, l, mask_bias):
        # ---- pre-LN multi-head self-attention ----
        xn = layer_norm(x, lnp_ref[l, 0:1, 0:D], lnp_ref[l, 1:2, 0:D])
        xn_bf = xn.astype(BF16)
        attn = jnp.zeros((BSEQP, D), F32)
        for h in range(NH):                                   # static unroll
            # per-head matmuls against statically ref-sliced weight columns
            # (no lane-slicing of the computed activation).
            q = jnp.dot(xn_bf, wqkv_ref[l, :, h * DH:(h + 1) * DH],
                        preferred_element_type=F32) \
                + lnp_ref[l, 6:7, h * DH:(h + 1) * DH]
            k = jnp.dot(xn_bf, wqkv_ref[l, :, D + h * DH:D + (h + 1) * DH],
                        preferred_element_type=F32) \
                + lnp_ref[l, 6:7, D + h * DH:D + (h + 1) * DH]
            v = jnp.dot(xn_bf, wqkv_ref[l, :, 2 * D + h * DH:2 * D + (h + 1) * DH],
                        preferred_element_type=F32) \
                + lnp_ref[l, 6:7, 2 * D + h * DH:2 * D + (h + 1) * DH]
            s = jax.lax.dot_general(
                q.astype(BF16), k.astype(BF16),
                (((1,), (1,)), ((), ())),
                preferred_element_type=F32) * scale + mask_bias
            s = s - jnp.max(s, axis=-1, keepdims=True)
            p = jnp.exp(s)
            p = p * pl.reciprocal(jnp.sum(p, axis=-1, keepdims=True), approx=True)
            o_h = jnp.dot(p.astype(BF16), v.astype(BF16),
                          preferred_element_type=F32)                # [BSEQP, DH]
            # concat-free head merge: sum_h o_h @ Wo[h*DH:(h+1)*DH, :]
            attn = attn + jnp.dot(o_h.astype(BF16),
                                  wo_ref[l, h * DH:(h + 1) * DH, :],
                                  preferred_element_type=F32)
        x = x + attn + lnp_ref[l, 4:5, 0:D]                          # + bo

        # ---- pre-LN MLP (GELU) ----
        xn = layer_norm(x, lnp_ref[l, 2:3, 0:D], lnp_ref[l, 3:4, 0:D])
        h1 = jax.nn.gelu(mm(xn, w1_ref[l]) + lnp_ref[l, 7:8, 0:FF],
                         approximate=True)
        x = x + mm(h1, w2_ref[l]) + lnp_ref[l, 5:6, 0:D]             # + b2
        return x

    # --- ViT vision encoder (vision rows attend only to vision rows) ---
    vit_bias = mask_ref[0]
    for l in range(N_VIT_LAYERS):
        x = block(x, l, vit_bias)

    # --- GIT visual projection, then splice text embeddings into text rows ---
    x = mm(x, proj_w_ref[...]) * vis_rows + projadd_ref[...]

    # --- multimodal decoder layers (GIT mask, block-diagonal over batch) ---
    txt_bias = mask_ref[1]
    for l in range(N_VIT_LAYERS, N_LAYERS):
        x = block(x, l, txt_bias)

    # --- final LN + fused policy head, run once on the whole padded slab;
    #     the wrapper picks out the CLS rows / first ACTION_DIM lanes. ---
    xf = layer_norm(x, small_ref[0:1, 0:D], small_ref[1:2, 0:D])     # [BSEQP, D]
    h = jnp.maximum(mm(xf, ph_w1_ref[...]) + small_ref[2:3, :], 0.0)  # [BSEQP, 128]
    out_ref[...] = mm(h, ph_w2_ref[...]) + small_ref[3:4, :]          # dense store


# ====================== one-time glue (hoisted out of forward) ==============

def tokenize_prompt(prompt):
    """Deterministic synthetic 'tokenizer' (stand-in for AutoProcessor)."""
    # TODO(synk): real GIT BPE tokenization has no Pallas/JAX equivalent.
    ids = [(3 + (ord(c) * 7) % (VOCAB - 3)) for c in prompt][:T_TXT]
    ids = ids + [0] * (T_TXT - len(ids))
    return jnp.array(ids, dtype=jnp.int32)


def mask_biases():
    """Block-diagonal additive 0 / -1e30 biases on the folded [BSEQP, BSEQP] grid."""
    i = jnp.arange(SEQP)
    is_img = i < SV
    is_txt = (i >= SV) & (i < SEQ)
    causal = i[:, None] >= i[None, :]
    eye = i[:, None] == i[None, :]

    # ViT phase: vision rows see vision cols; text/pad rows see only themselves.
    vit_allow = jnp.where(is_img[:, None], is_img[None, :], eye)
    # Decoder phase (GIT mask): vision rows bidirectional among vision cols;
    # text rows see all vision cols + causal within text; pad rows see self.
    txt_allow = jnp.where(
        is_img[:, None], is_img[None, :],
        jnp.where(is_txt[:, None], is_img[None, :] | (is_txt[None, :] & causal), eye))

    # block-diagonal over the folded batch
    bidx = jnp.arange(BSEQP) // SEQP
    same_b = bidx[:, None] == bidx[None, :]

    def expand(a):
        full = jnp.tile(a, (B, B)) & same_b
        return jnp.where(full, 0.0, -1e30).astype(F32)

    return expand(vit_allow), expand(txt_allow)


def prepare_inputs(params):
    """Precompute all input-independent kernel operands ONCE (outside forward)."""
    # CLS token / positional embeddings / patch bias baked into one add slab.
    add0_1 = jnp.zeros((SEQP, D), F32)
    add0_1 = add0_1.at[0].set(params["cls"][0] + params["vis_pos"][0])
    add0_1 = add0_1.at[1:SV].set(params["vis_pos"][1:SV] + params["patch_b"][0])
    add0 = jnp.tile(add0_1, (B, 1))                                  # [BSEQP, D]

    # proj bias on vision rows + fixed-prompt text embeddings on text rows.
    # TODO(synk): embedding gather kept in one-time JAX glue (input-independent).
    ids = tokenize_prompt(PROMPT)
    tok = params["tok_emb"][ids] + params["txt_pos"]
    pa_1 = jnp.zeros((SEQP, D), F32)
    pa_1 = pa_1.at[:SV].set(params["proj_b"][0])
    pa_1 = pa_1.at[SV:SEQ].set(tok)
    projadd = jnp.tile(pa_1, (B, 1))                                 # [BSEQP, D]

    vit_bias, txt_bias = mask_biases()
    masks = jnp.stack([vit_bias, txt_bias], axis=0)                  # [2, BSEQP, BSEQP]

    # per-layer LN / bias slab: [L, 8, 3D]
    lnp = jnp.zeros((N_LAYERS, 8, 3 * D), F32)

    def put(slab, r, vec):
        return slab.at[:, r, :vec.shape[-1]].set(vec)

    lnp = put(lnp, 0, params["ln1_g"][:, 0, :])
    lnp = put(lnp, 1, params["ln1_b"][:, 0, :])
    lnp = put(lnp, 2, params["ln2_g"][:, 0, :])
    lnp = put(lnp, 3, params["ln2_b"][:, 0, :])
    lnp = put(lnp, 4, params["bo"][:, 0, :])
    lnp = put(lnp, 5, params["b2"][:, 0, :])
    lnp = put(lnp, 6, params["bqkv"][:, 0, :])
    lnp = put(lnp, 7, params["b1"][:, 0, :])

    # final-LN + policy-head bias slab: [8, 128]
    small = jnp.zeros((8, HEAD_HIDDEN), F32)
    small = small.at[0, :D].set(params["lnf_g"][0])
    small = small.at[1, :D].set(params["lnf_b"][0])
    small = small.at[2, :].set(params["ph_b1"][0])
    small = small.at[3, :ACTION_DIM].set(params["ph_b2"][0])

    # lane-pad the last head layer to 128 output lanes (dense store).
    ph_w2p = jnp.zeros((HEAD_HIDDEN, OUT_PAD), F32)
    ph_w2p = ph_w2p.at[:, :ACTION_DIM].set(params["ph_w2"])

    bf = lambda a: a.astype(BF16)   # matmul weights in bf16 (f32 accumulation)
    return dict(
        add0=add0, projadd=projadd, masks=masks,
        patch_w=bf(params["patch_w"]),
        wqkv=bf(params["wqkv"]), wo=bf(params["wo"]),
        w1=bf(params["w1"]), w2=bf(params["w2"]),
        proj_w=bf(params["proj_w"]),
        lnp=lnp, small=small,
        ph_w1=bf(params["ph_w1"]), ph_w2=bf(ph_w2p),
    )


# ============================== forward =====================================

def _full_spec(a):
    zeros = (0,) * a.ndim
    return pl.BlockSpec(a.shape, lambda i, _z=zeros: _z)


@jax.jit
def forward(prepared, images):
    """images: NCHW float32 [B, C, IMG, IMG] -> actions [B, ACTION_DIM]."""
    Bb = images.shape[0]

    # patchify (layout plumbing stays in XLA); fold batch into the sublane axis:
    # rows b*SEQP+1 .. b*SEQP+NP hold the patches of batch element b.
    x = images.reshape(Bb, C, IMG // PATCH, PATCH, IMG // PATCH, PATCH)
    x = x.transpose(0, 2, 4, 1, 3, 5).reshape(Bb, NP, CPP)
    patch_slab = jnp.pad(x, ((0, 0), (1, SEQP - 1 - NP), (0, 0)))
    patch_slab = patch_slab.reshape(Bb * SEQP, CPP).astype(BF16)

    inputs = (
        patch_slab, prepared["add0"], prepared["projadd"], prepared["masks"],
        prepared["patch_w"], prepared["wqkv"], prepared["wo"],
        prepared["w1"], prepared["w2"], prepared["proj_w"],
        prepared["lnp"], prepared["small"], prepared["ph_w1"], prepared["ph_w2"],
    )

    out = pl.pallas_call(
        _fused_forward_kernel,
        out_shape=jax.ShapeDtypeStruct((Bb * SEQP, OUT_PAD), F32),
        grid=(1,),                                    # single step, single core
        in_specs=[_full_spec(a) for a in inputs],
        out_specs=pl.BlockSpec((Bb * SEQP, OUT_PAD), lambda i: (0, 0)),
        compiler_params=pltpu.CompilerParams(
            dimension_semantics=("arbitrary",),
        ),
    )(*inputs)

    # CLS row of each folded batch block, first ACTION_DIM lanes.
    return out.reshape(Bb, SEQP, OUT_PAD)[:, 0, :ACTION_DIM]


# ========================= deterministic init ==============================

def init_params(key):
    ks = iter(jax.random.split(key, 64))

    def w(shape, scale=0.02):
        return (scale * jax.random.normal(next(ks), shape)).astype(F32)

    L = N_LAYERS
    return dict(
        patch_w=w((CPP, D)), patch_b=jnp.zeros((1, D), F32),
        cls=w((1, D)), vis_pos=w((SV, D)),
        # transformer layers stacked: layer 0 = ViT encoder, 1..2 = decoder
        ln1_g=jnp.ones((L, 1, D), F32), ln1_b=jnp.zeros((L, 1, D), F32),
        wqkv=w((L, D, 3 * D)), bqkv=jnp.zeros((L, 1, 3 * D), F32),
        wo=w((L, D, D)), bo=jnp.zeros((L, 1, D), F32),
        ln2_g=jnp.ones((L, 1, D), F32), ln2_b=jnp.zeros((L, 1, D), F32),
        w1=w((L, D, FF)), b1=jnp.zeros((L, 1, FF), F32),
        w2=w((L, FF, D)), b2=jnp.zeros((L, 1, D), F32),
        proj_w=w((D, D)), proj_b=jnp.zeros((1, D), F32),
        tok_emb=w((VOCAB, D)), txt_pos=w((T_TXT, D)),
        lnf_g=jnp.ones((1, D), F32), lnf_b=jnp.zeros((1, D), F32),
        ph_w1=w((D, HEAD_HIDDEN)), ph_b1=jnp.zeros((1, HEAD_HIDDEN), F32),
        ph_w2=w((HEAD_HIDDEN, ACTION_DIM)), ph_b2=jnp.zeros((1, ACTION_DIM), F32),
    )


if __name__ == "__main__":
    # TODO(synk): pretrained GIT checkpoint loading has no in-script equivalent;
    # weights are synthetic but the forward-pass structure matches the module.
    params = init_params(jax.random.PRNGKey(42))
    prepared = prepare_inputs(params)        # one-time, outside the hot path
    images = jax.random.uniform(
        jax.random.PRNGKey(0), (B, C, IMG, IMG), dtype=jnp.float32
    )
    actions = forward(prepared, images)
    jax.block_until_ready(actions)
    assert actions.shape == (B, ACTION_DIM) and actions.dtype == jnp.float32
    assert bool(jnp.all(jnp.isfinite(actions)))
    print("KERNEL_OK")
</pallas_src>

<mosaic_0001>
module attributes {stable_mosaic.version = 11 : i64} {
  func.func @_fused_forward_kernel(%arg0: i32, %arg1: memref<32x192xbf16, #tpu.memory_space<vmem>>, %arg2: memref<32x32xf32, #tpu.memory_space<vmem>>, %arg3: memref<32x32xf32, #tpu.memory_space<vmem>>, %arg4: memref<2x32x32xf32, #tpu.memory_space<vmem>>, %arg5: memref<192x32xbf16, #tpu.memory_space<vmem>>, %arg6: memref<3x32x96xbf16, #tpu.memory_space<vmem>>, %arg7: memref<3x32x32xbf16, #tpu.memory_space<vmem>>, %arg8: memref<3x32x64xbf16, #tpu.memory_space<vmem>>, %arg9: memref<3x64x32xbf16, #tpu.memory_space<vmem>>, %arg10: memref<32x32xbf16, #tpu.memory_space<vmem>>, %arg11: memref<3x8x96xf32, #tpu.memory_space<vmem>>, %arg12: memref<8x128xf32, #tpu.memory_space<vmem>>, %arg13: memref<32x128xbf16, #tpu.memory_space<vmem>>, %arg14: memref<128x128xbf16, #tpu.memory_space<vmem>>, %arg15: memref<32x128xf32, #tpu.memory_space<vmem>>) attributes {dimension_semantics = [#tpu.dimension_semantics<arbitrary>], iteration_bounds = array<i64: 1>, scalar_prefetch = 0 : i64, scratch_operands = 0 : i64, tpu.core_type = #tpu.core_type<tc>, window_params = [{pipeline_mode = #tpu.pipeline_mode<synchronous>, transform_indices = @transform_0, window_bounds = array<i64: 32, 192>}, {pipeline_mode = #tpu.pipeline_mode<synchronous>, transform_indices = @transform_1, window_bounds = array<i64: 32, 32>}, {pipeline_mode = #tpu.pipeline_mode<synchronous>, transform_indices = @transform_2, window_bounds = array<i64: 32, 32>}, {pipeline_mode = #tpu.pipeline_mode<synchronous>, transform_indices = @transform_3, window_bounds = array<i64: 2, 32, 32>}, {pipeline_mode = #tpu.pipeline_mode<synchronous>, transform_indices = @transform_4, window_bounds = array<i64: 192, 32>}, {pipeline_mode = #tpu.pipeline_mode<synchronous>, transform_indices = @transform_5, window_bounds = array<i64: 3, 32, 96>}, {pipeline_mode = #tpu.pipeline_mode<synchronous>, transform_indices = @transform_6, window_bounds = array<i64: 3, 32, 32>}, {pipeline_mode = #tpu.pipeline_mode<synchronous>, transform_indices = @transform_7, window_bounds = array<i64: 3, 32, 64>}, {pipeline_mode = #tpu.pipeline_mode<synchronous>, transform_indices = @transform_8, window_bounds = array<i64: 3, 64, 32>}, {pipeline_mode = #tpu.pipeline_mode<synchronous>, transform_indices = @transform_9, window_bounds = array<i64: 32, 32>}, {pipeline_mode = #tpu.pipeline_mode<synchronous>, transform_indices = @transform_10, window_bounds = array<i64: 3, 8, 96>}, {pipeline_mode = #tpu.pipeline_mode<synchronous>, transform_indices = @transform_11, window_bounds = array<i64: 8, 128>}, {pipeline_mode = #tpu.pipeline_mode<synchronous>, transform_indices = @transform_12, window_bounds = array<i64: 32, 128>}, {pipeline_mode = #tpu.pipeline_mode<synchronous>, transform_indices = @transform_13, window_bounds = array<i64: 128, 128>}, {pipeline_mode = #tpu.pipeline_mode<synchronous>, transform_indices = @transform_14, window_bounds = array<i64: 32, 128>}]} {
    %0 = tpu.iota {dimensions = array<i32: 0>} : vector<32x1xi32>
    %c15_i32 = arith.constant 15 : i32
    %1 = vector.broadcast %c15_i32 : i32 to vector<32x1xi32>
    %2 = arith.andi %0, %1 : vector<32x1xi32>
    %c5_i32 = arith.constant 5 : i32
    %3 = vector.broadcast %c5_i32 : i32 to vector<32x1xi32>
    %4 = arith.cmpi slt, %2, %3 : vector<32x1xi32>
    %5 = arith.extui %4 : vector<32x1xi1> to vector<32x1xi32>
    %6 = arith.sitofp %5 : vector<32x1xi32> to vector<32x1xf32>
    %c0 = arith.constant 0 : index
    %c0_0 = arith.constant 0 : index
    %7 = vector.load %arg1[%c0, %c0_0] : memref<32x192xbf16, #tpu.memory_space<vmem>>, vector<32x192xbf16>
    %c0_1 = arith.constant 0 : index
    %c0_2 = arith.constant 0 : index
    %8 = vector.load %arg5[%c0_1, %c0_2] : memref<192x32xbf16, #tpu.memory_space<vmem>>, vector<192x32xbf16>
    %cst = arith.constant dense<0.000000e+00> : vector<32x32xf32>
    %9 = tpu.matmul %7, %8, %cst {dimension_numbers = #tpu.dot_dimension_numbers<[1], [0], [0], [1], [0, 0, 1, 1], [], []>} : vector<32x192xbf16>, vector<192x32xbf16>, vector<32x32xf32> -> vector<32x32xf32>
    %c0_3 = arith.constant 0 : index
    %c0_4 = arith.constant 0 : index
    %10 = vector.load %arg2[%c0_3, %c0_4] : memref<32x32xf32, #tpu.memory_space<vmem>>, vector<32x32xf32>
    %11 = arith.addf %9, %10 : vector<32x32xf32>
    %c0_5 = arith.constant 0 : index
    %c0_6 = arith.constant 0 : index
    %c0_7 = arith.constant 0 : index
    %12 = vector.load %arg4[%c0_5, %c0_6, %c0_7] : memref<2x32x32xf32, #tpu.memory_space<vmem>>, vector<1x32x32xf32>
    %13 = vector.shape_cast %12 : vector<1x32x32xf32> to vector<32x32xf32>
    %c0_8 = arith.constant 0 : index
    %c0_9 = arith.constant 0 : index
    %c0_10 = arith.constant 0 : index
    %14 = vector.load %arg11[%c0_8, %c0_9, %c0_10] : memref<3x8x96xf32, #tpu.memory_space<vmem>>, vector<1x1x32xf32>
    %15 = vector.shape_cast %14 : vector<1x1x32xf32> to vector<1x32xf32>
    %c0_11 = arith.constant 0 : index
    %c1 = arith.constant 1 : index
    %c0_12 = arith.constant 0 : index
    %16 = vector.load %arg11[%c0_11, %c1, %c0_12] : memref<3x8x96xf32, #tpu.memory_space<vmem>>, vector<1x1x32xf32>
    %17 = vector.shape_cast %16 : vector<1x1x32xf32> to vector<1x32xf32>
    %cst_13 = arith.constant dense<0.000000e+00> : vector<32xf32>
    %18 = vector.multi_reduction <add>, %11, %cst_13 [1] : vector<32x32xf32> to vector<32xf32>
    %19 = vector.shape_cast %18 : vector<32xf32> to vector<32x1xf32>
    %cst_14 = arith.constant 3.200000e+01 : f32
    %20 = vector.broadcast %cst_14 : f32 to vector<32x1xf32>
    %21 = arith.divf %19, %20 : vector<32x1xf32>
    %22 = vector.broadcast %21 : vector<32x1xf32> to vector<32x32xf32>
    %23 = arith.subf %11, %22 : vector<32x32xf32>
    %24 = arith.mulf %23, %23 : vector<32x32xf32>
    %cst_15 = arith.constant dense<0.000000e+00> : vector<32xf32>
    %25 = vector.multi_reduction <add>, %24, %cst_15 [1] : vector<32x32xf32> to vector<32xf32>
    %26 = vector.shape_cast %25 : vector<32xf32> to vector<32x1xf32>
    %cst_16 = arith.constant 3.200000e+01 : f32
    %27 = vector.broadcast %cst_16 : f32 to vector<32x1xf32>
    %28 = arith.divf %26, %27 : vector<32x1xf32>
    %29 = vector.broadcast %21 : vector<32x1xf32> to vector<32x32xf32>
    %30 = arith.subf %11, %29 : vector<32x32xf32>
    %cst_17 = arith.constant 9.99999974E-6 : f32
    %31 = vector.broadcast %cst_17 : f32 to vector<32x1xf32>
    %32 = arith.addf %28, %31 : vector<32x1xf32>
    %33 = math.rsqrt %32 : vector<32x1xf32>
    %34 = vector.broadcast %33 : vector<32x1xf32> to vector<32x32xf32>
    %35 = arith.mulf %30, %34 : vector<32x32xf32>
    %36 = vector.broadcast %15 : vector<1x32xf32> to vector<32x32xf32>
    %37 = arith.mulf %35, %36 : vector<32x32xf32>
    %38 = vector.broadcast %17 : vector<1x32xf32> to vector<32x32xf32>
    %39 = arith.addf %37, %38 : vector<32x32xf32>
    %40 = arith.truncf %39 : vector<32x32xf32> to vector<32x32xbf16>
    %cst_18 = arith.constant 0.000000e+00 : f32
    %41 = vector.broadcast %cst_18 : f32 to vector<32x32xf32>
    %c0_19 = arith.constant 0 : index
    %c0_20 = arith.constant 0 : index
    %c0_21 = arith.constant 0 : index
    %42 = vector.load %arg6[%c0_19, %c0_20, %c0_21] : memref<3x32x96xbf16, #tpu.memory_space<vmem>>, vector<1x32x16xbf16>
    %43 = vector.shape_cast %42 : vector<1x32x16xbf16> to vector<32x16xbf16>
    %cst_22 = arith.constant dense<0.000000e+00> : vector<32x16xf32>
    %44 = tpu.matmul %40, %43, %cst_22 {dimension_numbers = #tpu.dot_dimension_numbers<[1], [0], [0], [1], [0, 0, 1, 1], [], []>} : vector<32x32xbf16>, vector<32x16xbf16>, vector<32x16xf32> -> vector<32x16xf32>
    %c0_23 = arith.constant 0 : index
    %c6 = arith.constant 6 : index
    %c0_24 = arith.constant 0 : index
    %45 = vector.load %arg11[%c0_23, %c6, %c0_24] : memref<3x8x96xf32, #tpu.memory_space<vmem>>, vector<1x1x16xf32>
    %46 = vector.shape_cast %45 : vector<1x1x16xf32> to vector<1x16xf32>
    %47 = vector.broadcast %46 : vector<1x16xf32> to vector<32x16xf32>
    %48 = arith.addf %44, %47 : vector<32x16xf32>
    %c0_25 = arith.constant 0 : index
    %c0_26 = arith.constant 0 : index
    %c32 = arith.constant 32 : index
    %49 = vector.load %arg6[%c0_25, %c0_26, %c32] : memref<3x32x96xbf16, #tpu.memory_space<vmem>>, vector<1x32x16xbf16>
    %50 = vector.shape_cast %49 : vector<1x32x16xbf16> to vector<32x16xbf16>
    %cst_27 = arith.constant dense<0.000000e+00> : vector<32x16xf32>
    %51 = tpu.matmul %40, %50, %cst_27 {dimension_numbers = #tpu.dot_dimension_numbers<[1], [0], [0], [1], [0, 0, 1, 1], [], []>} : vector<32x32xbf16>, vector<32x16xbf16>, vector<32x16xf32> -> vector<32x16xf32>
    %c0_28 = arith.constant 0 : index
    %c6_29 = arith.constant 6 : index
    %c32_30 = arith.constant 32 : index
    %52 = vector.load %arg11[%c0_28, %c6_29, %c32_30] : memref<3x8x96xf32, #tpu.memory_space<vmem>>, vector<1x1x16xf32>
    %53 = vector.shape_cast %52 : vector<1x1x16xf32> to vector<1x16xf32>
    %54 = vector.broadcast %53 : vector<1x16xf32> to vector<32x16xf32>
    %55 = arith.addf %51, %54 : vector<32x16xf32>
    %c0_31 = arith.constant 0 : index
    %c0_32 = arith.constant 0 : index
    %c64 = arith.constant 64 : index
    %56 = vector.load %arg6[%c0_31, %c0_32, %c64] : memref<3x32x96xbf16, #tpu.memory_space<vmem>>, vector<1x32x16xbf16>
    %57 = vector.shape_cast %56 : vector<1x32x16xbf16> to vector<32x16xbf16>
    %cst_33 = arith.constant dense<0.000000e+00> : vector<32x16xf32>
    %58 = tpu.matmul %40, %57, %cst_33 {dimension_numbers = #tpu.dot_dimension_numbers<[1], [0], [0], [1], [0, 0, 1, 1], [], []>} : vector<32x32xbf16>, vector<32x16xbf16>, vector<32x16xf32> -> vector<32x16xf32>
    %c0_34 = arith.constant 0 : index
    %c6_35 = arith.constant 6 : index
    %c64_36 = arith.constant 64 : index
    %59 = vector.load %arg11[%c0_34, %c6_35, %c64_36] : memref<3x8x96xf32, #tpu.memory_space<vmem>>, vector<1x1x16xf32>
    %60 = vector.shape_cast %59 : vector<1x1x16xf32> to vector<1x16xf32>
    %61 = vector.broadcast %60 : vector<1x16xf32> to vector<32x16xf32>
    %62 = arith.addf %58, %61 : vector<32x16xf32>
    %63 = arith.truncf %48 : vector<32x16xf32> to vector<32x16xbf16>
    %64 = arith.truncf %55 : vector<32x16xf32> to vector<32x16xbf16>
    %cst_37 = arith.constant dense<0.000000e+00> : vector<32x32xf32>
    %65 = tpu.matmul %63, %64, %cst_37 {dimension_numbers = #tpu.dot_dimension_numbers<[1], [1], [0], [0], [0, 0, 1, 0], [], []>} : vector<32x16xbf16>, vector<32x16xbf16>, vector<32x32xf32> -> vector<32x32xf32>
    %cst_38 = arith.constant 2.500000e-01 : f32
    %66 = vector.broadcast %cst_38 : f32 to vector<32x32xf32>
    %67 = arith.mulf %65, %66 : vector<32x32xf32>
    %68 = arith.addf %67, %13 : vector<32x32xf32>
    %cst_39 = arith.constant dense<0xFF800000> : vector<32xf32>
    %69 = vector.multi_reduction <maximumf>, %68, %cst_39 [1] : vector<32x32xf32> to vector<32xf32>
    %70 = vector.shape_cast %69 : vector<32xf32> to vector<32x1xf32>
    %71 = vector.broadcast %70 : vector<32x1xf32> to vector<32x32xf32>
    %72 = arith.subf %68, %71 : vector<32x32xf32>
    %73 = math.exp %72 : vector<32x32xf32>
    %cst_40 = arith.constant dense<0.000000e+00> : vector<32xf32>
    %74 = vector.multi_reduction <add>, %73, %cst_40 [1] : vector<32x32xf32> to vector<32xf32>
    %75 = vector.shape_cast %74 : vector<32xf32> to vector<32x1xf32>
    %76 = tpu.reciprocal %75 {approx = true} : vector<32x1xf32> -> vector<32x1xf32>
    %77 = vector.broadcast %76 : vector<32x1xf32> to vector<32x32xf32>
    %78 = arith.mulf %73, %77 : vector<32x32xf32>
    %79 = arith.truncf %78 : vector<32x32xf32> to vector<32x32xbf16>
    %80 = arith.truncf %62 : vector<32x16xf32> to vector<32x16xbf16>
    %cst_41 = arith.constant dense<0.000000e+00> : vector<32x16xf32>
    %81 = tpu.matmul %79, %80, %cst_41 {dimension_numbers = #tpu.dot_dimension_numbers<[1], [0], [0], [1], [0, 0, 1, 1], [], []>} : vector<32x32xbf16>, vector<32x16xbf16>, vector<32x16xf32> -> vector<32x16xf32>
    %82 = arith.truncf %81 : vector<32x16xf32> to vector<32x16xbf16>
    %c0_42 = arith.constant 0 : index
    %c0_43 = arith.constant 0 : index
    %c0_44 = arith.constant 0 : index
    %83 = vector.load %arg7[%c0_42, %c0_43, %c0_44] : memref<3x32x32xbf16, #tpu.memory_space<vmem>>, vector<1x16x32xbf16>
    %84 = vector.shape_cast %83 : vector<1x16x32xbf16> to vector<16x32xbf16>
    %cst_45 = arith.constant dense<0.000000e+00> : vector<32x32xf32>
    %85 = tpu.matmul %82, %84, %cst_45 {dimension_numbers = #tpu.dot_dimension_numbers<[1], [0], [0], [1], [0, 0, 1, 1], [], []>} : vector<32x16xbf16>, vector<16x32xbf16>, vector<32x32xf32> -> vector<32x32xf32>
    %86 = arith.addf %41, %85 : vector<32x32xf32>
    %c0_46 = arith.constant 0 : index
    %c0_47 = arith.constant 0 : index
    %c16 = arith.constant 16 : index
    %87 = vector.load %arg6[%c0_46, %c0_47, %c16] : memref<3x32x96xbf16, #tpu.memory_space<vmem>>, vector<1x32x16xbf16>
    %88 = vector.shape_cast %87 : vector<1x32x16xbf16> to vector<32x16xbf16>
    %cst_48 = arith.constant dense<0.000000e+00> : vector<32x16xf32>
    %89 = tpu.matmul %40, %88, %cst_48 {dimension_numbers = #tpu.dot_dimension_numbers<[1], [0], [0], [1], [0, 0, 1, 1], [], []>} : vector<32x32xbf16>, vector<32x16xbf16>, vector<32x16xf32> -> vector<32x16xf32>
    %c0_49 = arith.constant 0 : index
    %c6_50 = arith.constant 6 : index
    %c16_51 = arith.constant 16 : index
    %90 = vector.load %arg11[%c0_49, %c6_50, %c16_51] : memref<3x8x96xf32, #tpu.memory_space<vmem>>, vector<1x1x16xf32>
    %91 = vector.shape_cast %90 : vector<1x1x16xf32> to vector<1x16xf32>
    %92 = vector.broadcast %91 : vector<1x16xf32> to vector<32x16xf32>
    %93 = arith.addf %89, %92 : vector<32x16xf32>
    %c0_52 = arith.constant 0 : index
    %c0_53 = arith.constant 0 : index
    %c48 = arith.constant 48 : index
    %94 = vector.load %arg6[%c0_52, %c0_53, %c48] : memref<3x32x96xbf16, #tpu.memory_space<vmem>>, vector<1x32x16xbf16>
    %95 = vector.shape_cast %94 : vector<1x32x16xbf16> to vector<32x16xbf16>
    %cst_54 = arith.constant dense<0.000000e+00> : vector<32x16xf32>
    %96 = tpu.matmul %40, %95, %cst_54 {dimension_numbers = #tpu.dot_dimension_numbers<[1], [0], [0], [1], [0, 0, 1, 1], [], []>} : vector<32x32xbf16>, vector<32x16xbf16>, vector<32x16xf32> -> vector<32x16xf32>
    %c0_55 = arith.constant 0 : index
    %c6_56 = arith.constant 6 : index
    %c48_57 = arith.constant 48 : index
    %97 = vector.load %arg11[%c0_55, %c6_56, %c48_57] : memref<3x8x96xf32, #tpu.memory_space<vmem>>, vector<1x1x16xf32>
    %98 = vector.shape_cast %97 : vector<1x1x16xf32> to vector<1x16xf32>
    %99 = vector.broadcast %98 : vector<1x16xf32> to vector<32x16xf32>
    %100 = arith.addf %96, %99 : vector<32x16xf32>
    %c0_58 = arith.constant 0 : index
    %c0_59 = arith.constant 0 : index
    %c80 = arith.constant 80 : index
    %101 = vector.load %arg6[%c0_58, %c0_59, %c80] : memref<3x32x96xbf16, #tpu.memory_space<vmem>>, vector<1x32x16xbf16>
    %102 = vector.shape_cast %101 : vector<1x32x16xbf16> to vector<32x16xbf16>
    %cst_60 = arith.constant dense<0.000000e+00> : vector<32x16xf32>
    %103 = tpu.matmul %40, %102, %cst_60 {dimension_numbers = #tpu.dot_dimension_numbers<[1], [0], [0], [1], [0, 0, 1, 1], [], []>} : vector<32x32xbf16>, vector<32x16xbf16>, vector<32x16xf32> -> vector<32x16xf32>
    %c0_61 = arith.constant 0 : index
    %c6_62 = arith.constant 6 : index
    %c80_63 = arith.constant 80 : index
    %104 = vector.load %arg11[%c0_61, %c6_62, %c80_63] : memref<3x8x96xf32, #tpu.memory_space<vmem>>, vector<1x1x16xf32>
    %105 = vector.shape_cast %104 : vector<1x1x16xf32> to vector<1x16xf32>
    %106 = vector.broadcast %105 : vector<1x16xf32> to vector<32x16xf32>
    %107 = arith.addf %103, %106 : vector<32x16xf32>
    %108 = arith.truncf %93 : vector<32x16xf32> to vector<32x16xbf16>
    %109 = arith.truncf %100 : vector<32x16xf32> to vector<32x16xbf16>
    %cst_64 = arith.constant dense<0.000000e+00> : vector<32x32xf32>
    %110 = tpu.matmul %108, %109, %cst_64 {dimension_numbers = #tpu.dot_dimension_numbers<[1], [1], [0], [0], [0, 0, 1, 0], [], []>} : vector<32x16xbf16>, vector<32x16xbf16>, vector<32x32xf32> -> vector<32x32xf32>
    %cst_65 = arith.constant 2.500000e-01 : f32
    %111 = vector.broadcast %cst_65 : f32 to vector<32x32xf32>
    %112 = arith.mulf %110, %111 : vector<32x32xf32>
    %113 = arith.addf %112, %13 : vector<32x32xf32>
    %cst_66 = arith.constant dense<0xFF800000> : vector<32xf32>
    %114 = vector.multi_reduction <maximumf>, %113, %cst_66 [1] : vector<32x32xf32> to vector<32xf32>
    %115 = vector.shape_cast %114 : vector<32xf32> to vector<32x1xf32>
    %116 = vector.broadcast %115 : vector<32x1xf32> to vector<32x32xf32>
    %117 = arith.subf %113, %116 : vector<32x32xf32>
    %118 = math.exp %117 : vector<32x32xf32>
    %cst_67 = arith.constant dense<0.000000e+00> : vector<32xf32>
    %119 = vector.multi_reduction <add>, %118, %cst_67 [1] : vector<32x32xf32> to vector<32xf32>
    %120 = vector.shape_cast %119 : vector<32xf32> to vector<32x1xf32>
    %121 = tpu.reciprocal %120 {approx = true} : vector<32x1xf32> -> vector<32x1xf32>
    %122 = vector.broadcast %121 : vector<32x1xf32> to vector<32x32xf32>
    %123 = arith.mulf %118, %122 : vector<32x32xf32>
    %124 = arith.truncf %123 : vector<32x32xf32> to vector<32x32xbf16>
    %125 = arith.truncf %107 : vector<32x16xf32> to vector<32x16xbf16>
    %cst_68 = arith.constant dense<0.000000e+00> : vector<32x16xf32>
    %126 = tpu.matmul %124, %125, %cst_68 {dimension_numbers = #tpu.dot_dimension_numbers<[1], [0], [0], [1], [0, 0, 1, 1], [], []>} : vector<32x32xbf16>, vector<32x16xbf16>, vector<32x16xf32> -> vector<32x16xf32>
    %127 = arith.truncf %126 : vector<32x16xf32> to vector<32x16xbf16>
    %c0_69 = arith.constant 0 : index
    %c16_70 = arith.constant 16 : index
    %c0_71 = arith.constant 0 : index
    %128 = vector.load %arg7[%c0_69, %c16_70, %c0_71] : memref<3x32x32xbf16, #tpu.memory_space<vmem>>, vector<1x16x32xbf16>
    %129 = vector.shape_cast %128 : vector<1x16x32xbf16> to vector<16x32xbf16>
    %cst_72 = arith.constant dense<0.000000e+00> : vector<32x32xf32>
    %130 = tpu.matmul %127, %129, %cst_72 {dimension_numbers = #tpu.dot_dimension_numbers<[1], [0], [0], [1], [0, 0, 1, 1], [], []>} : vector<32x16xbf16>, vector<16x32xbf16>, vector<32x32xf32> -> vector<32x32xf32>
    %131 = arith.addf %86, %130 : vector<32x32xf32>
    %132 = arith.addf %11, %131 : vector<32x32xf32>
    %c0_73 = arith.constant 0 : index
    %c4 = arith.constant 4 : index
    %c0_74 = arith.constant 0 : index
    %133 = vector.load %arg11[%c0_73, %c4, %c0_74] : memref<3x8x96xf32, #tpu.memory_space<vmem>>, vector<1x1x32xf32>
    %134 = vector.shape_cast %133 : vector<1x1x32xf32> to vector<1x32xf32>
    %135 = vector.broadcast %134 : vector<1x32xf32> to vector<32x32xf32>
    %136 = arith.addf %132, %135 : vector<32x32xf32>
    %c0_75 = arith.constant 0 : index
    %c2 = arith.constant 2 : index
    %c0_76 = arith.constant 0 : index
    %137 = vector.load %arg11[%c0_75, %c2, %c0_76] : memref<3x8x96xf32, #tpu.memory_space<vmem>>, vector<1x1x32xf32>
    %138 = vector.shape_cast %137 : vector<1x1x32xf32> to vector<1x32xf32>
    %c0_77 = arith.constant 0 : index
    %c3 = arith.constant 3 : index
    %c0_78 = arith.constant 0 : index
    %139 = vector.load %arg11[%c0_77, %c3, %c0_78] : memref<3x8x96xf32, #tpu.memory_space<vmem>>, vector<1x1x32xf32>
    %140 = vector.shape_cast %139 : vector<1x1x32xf32> to vector<1x32xf32>
    %cst_79 = arith.constant dense<0.000000e+00> : vector<32xf32>
    %141 = vector.multi_reduction <add>, %136, %cst_79 [1] : vector<32x32xf32> to vector<32xf32>
    %142 = vector.shape_cast %141 : vector<32xf32> to vector<32x1xf32>
    %cst_80 = arith.constant 3.200000e+01 : f32
    %143 = vector.broadcast %cst_80 : f32 to vector<32x1xf32>
    %144 = arith.divf %142, %143 : vector<32x1xf32>
    %145 = vector.broadcast %144 : vector<32x1xf32> to vector<32x32xf32>
    %146 = arith.subf %136, %145 : vector<32x32xf32>
    %147 = arith.mulf %146, %146 : vector<32x32xf32>
    %cst_81 = arith.constant dense<0.000000e+00> : vector<32xf32>
    %148 = vector.multi_reduction <add>, %147, %cst_81 [1] : vector<32x32xf32> to vector<32xf32>
    %149 = vector.shape_cast %148 : vector<32xf32> to vector<32x1xf32>
    %cst_82 = arith.constant 3.200000e+01 : f32
    %150 = vector.broadcast %cst_82 : f32 to vector<32x1xf32>
    %151 = arith.divf %149, %150 : vector<32x1xf32>
    %152 = vector.broadcast %144 : vector<32x1xf32> to vector<32x32xf32>
    %153 = arith.subf %136, %152 : vector<32x32xf32>
    %cst_83 = arith.constant 9.99999974E-6 : f32
    %154 = vector.broadcast %cst_83 : f32 to vector<32x1xf32>
    %155 = arith.addf %151, %154 : vector<32x1xf32>
    %156 = math.rsqrt %155 : vector<32x1xf32>
    %157 = vector.broadcast %156 : vector<32x1xf32> to vector<32x32xf32>
    %158 = arith.mulf %153, %157 : vector<32x32xf32>
    %159 = vector.broadcast %138 : vector<1x32xf32> to vector<32x32xf32>
    %160 = arith.mulf %158, %159 : vector<32x32xf32>
    %161 = vector.broadcast %140 : vector<1x32xf32> to vector<32x32xf32>
    %162 = arith.addf %160, %161 : vector<32x32xf32>
    %c0_84 = arith.constant 0 : index
    %c0_85 = arith.constant 0 : index
    %c0_86 = arith.constant 0 : index
    %163 = vector.load %arg8[%c0_84, %c0_85, %c0_86] : memref<3x32x64xbf16, #tpu.memory_space<vmem>>, vector<1x32x64xbf16>
    %164 = vector.shape_cast %163 : vector<1x32x64xbf16> to vector<32x64xbf16>
    %165 = arith.truncf %162 : vector<32x32xf32> to vector<32x32xbf16>
    %cst_87 = arith.constant dense<0.000000e+00> : vector<32x64xf32>
    %166 = tpu.matmul %165, %164, %cst_87 {dimension_numbers = #tpu.dot_dimension_numbers<[1], [0], [0], [1], [0, 0, 1, 1], [], []>} : vector<32x32xbf16>, vector<32x64xbf16>, vector<32x64xf32> -> vector<32x64xf32>
    %c0_88 = arith.constant 0 : index
    %c7 = arith.constant 7 : index
    %c0_89 = arith.constant 0 : index
    %167 = vector.load %arg11[%c0_88, %c7, %c0_89] : memref<3x8x96xf32, #tpu.memory_space<vmem>>, vector<1x1x64xf32>
    %168 = vector.shape_cast %167 : vector<1x1x64xf32> to vector<1x64xf32>
    %169 = vector.broadcast %168 : vector<1x64xf32> to vector<32x64xf32>
    %170 = arith.addf %166, %169 : vector<32x64xf32>
    %171 = arith.mulf %170, %170 : vector<32x64xf32>
    %172 = arith.mulf %170, %171 : vector<32x64xf32>
    %cst_90 = arith.constant 4.471500e-02 : f32
    %173 = vector.broadcast %cst_90 : f32 to vector<32x64xf32>
    %174 = arith.mulf %173, %172 : vector<32x64xf32>
    %175 = arith.addf %170, %174 : vector<32x64xf32>
    %cst_91 = arith.constant 0.797884583 : f32
    %176 = vector.broadcast %cst_91 : f32 to vector<32x64xf32>
    %177 = arith.mulf %176, %175 : vector<32x64xf32>
    %178 = math.tanh %177 : vector<32x64xf32>
    %cst_92 = arith.constant 1.000000e+00 : f32
    %179 = vector.broadcast %cst_92 : f32 to vector<32x64xf32>
    %180 = arith.addf %179, %178 : vector<32x64xf32>
    %cst_93 = arith.constant 5.000000e-01 : f32
    %181 = vector.broadcast %cst_93 : f32 to vector<32x64xf32>
    %182 = arith.mulf %181, %180 : vector<32x64xf32>
    %183 = arith.mulf %170, %182 : vector<32x64xf32>
    %c0_94 = arith.constant 0 : index
    %c0_95 = arith.constant 0 : index
    %c0_96 = arith.constant 0 : index
    %184 = vector.load %arg9[%c0_94, %c0_95, %c0_96] : memref<3x64x32xbf16, #tpu.memory_space<vmem>>, vector<1x64x32xbf16>
    %185 = vector.shape_cast %184 : vector<1x64x32xbf16> to vector<64x32xbf16>
    %186 = arith.truncf %183 : vector<32x64xf32> to vector<32x64xbf16>
    %cst_97 = arith.constant dense<0.000000e+00> : vector<32x32xf32>
    %187 = tpu.matmul %186, %185, %cst_97 {dimension_numbers = #tpu.dot_dimension_numbers<[1], [0], [0], [1], [0, 0, 1, 1], [], []>} : vector<32x64xbf16>, vector<64x32xbf16>, vector<32x32xf32> -> vector<32x32xf32>
    %188 = arith.addf %136, %187 : vector<32x32xf32>
    %c0_98 = arith.constant 0 : index
    %c5 = arith.constant 5 : index
    %c0_99 = arith.constant 0 : index
    %189 = vector.load %arg11[%c0_98, %c5, %c0_99] : memref<3x8x96xf32, #tpu.memory_space<vmem>>, vector<1x1x32xf32>
    %190 = vector.shape_cast %189 : vector<1x1x32xf32> to vector<1x32xf32>
    %191 = vector.broadcast %190 : vector<1x32xf32> to vector<32x32xf32>
    %192 = arith.addf %188, %191 : vector<32x32xf32>
    %c0_100 = arith.constant 0 : index
    %c0_101 = arith.constant 0 : index
    %193 = vector.load %arg10[%c0_100, %c0_101] : memref<32x32xbf16, #tpu.memory_space<vmem>>, vector<32x32xbf16>
    %194 = arith.truncf %192 : vector<32x32xf32> to vector<32x32xbf16>
    %cst_102 = arith.constant dense<0.000000e+00> : vector<32x32xf32>
    %195 = tpu.matmul %194, %193, %cst_102 {dimension_numbers = #tpu.dot_dimension_numbers<[1], [0], [0], [1], [0, 0, 1, 1], [], []>} : vector<32x32xbf16>, vector<32x32xbf16>, vector<32x32xf32> -> vector<32x32xf32>
    %196 = vector.broadcast %6 : vector<32x1xf32> to vector<32x32xf32>
    %197 = arith.mulf %195, %196 : vector<32x32xf32>
    %c0_103 = arith.constant 0 : index
    %c0_104 = arith.constant 0 : index
    %198 = vector.load %arg3[%c0_103, %c0_104] : memref<32x32xf32, #tpu.memory_space<vmem>>, vector<32x32xf32>
    %199 = arith.addf %197, %198 : vector<32x32xf32>
    %c1_105 = arith.constant 1 : index
    %c0_106 = arith.constant 0 : index
    %c0_107 = arith.constant 0 : index
    %200 = vector.load %arg4[%c1_105, %c0_106, %c0_107] : memref<2x32x32xf32, #tpu.memory_space<vmem>>, vector<1x32x32xf32>
    %201 = vector.shape_cast %200 : vector<1x32x32xf32> to vector<32x32xf32>
    %c1_108 = arith.constant 1 : index
    %c0_109 = arith.constant 0 : index
    %c0_110 = arith.constant 0 : index
    %202 = vector.load %arg11[%c1_108, %c0_109, %c0_110] : memref<3x8x96xf32, #tpu.memory_space<vmem>>, vector<1x1x32xf32>
    %203 = vector.shape_cast %202 : vector<1x1x32xf32> to vector<1x32xf32>
    %c1_111 = arith.constant 1 : index
    %c1_112 = arith.constant 1 : index
    %c0_113 = arith.constant 0 : index
    %204 = vector.load %arg11[%c1_111, %c1_112, %c0_113] : memref<3x8x96xf32, #tpu.memory_space<vmem>>, vector<1x1x32xf32>
    %205 = vector.shape_cast %204 : vector<1x1x32xf32> to vector<1x32xf32>
    %cst_114 = arith.constant dense<0.000000e+00> : vector<32xf32>
    %206 = vector.multi_reduction <add>, %199, %cst_114 [1] : vector<32x32xf32> to vector<32xf32>
    %207 = vector.shape_cast %206 : vector<32xf32> to vector<32x1xf32>
    %cst_115 = arith.constant 3.200000e+01 : f32
    %208 = vector.broadcast %cst_115 : f32 to vector<32x1xf32>
    %209 = arith.divf %207, %208 : vector<32x1xf32>
    %210 = vector.broadcast %209 : vector<32x1xf32> to vector<32x32xf32>
    %211 = arith.subf %199, %210 : vector<32x32xf32>
    %212 = arith.mulf %211, %211 : vector<32x32xf32>
    %cst_116 = arith.constant dense<0.000000e+00> : vector<32xf32>
    %213 = vector.multi_reduction <add>, %212, %cst_116 [1] : vector<32x32xf32> to vector<32xf32>
    %214 = vector.shape_cast %213 : vector<32xf32> to vector<32x1xf32>
    %cst_117 = arith.constant 3.200000e+01 : f32
    %215 = vector.broadcast %cst_117 : f32 to vector<32x1xf32>
    %216 = arith.divf %214, %215 : vector<32x1xf32>
    %217 = vector.broadcast %209 : vector<32x1xf32> to vector<32x32xf32>
    %218 = arith.subf %199, %217 : vector<32x32xf32>
    %cst_118 = arith.constant 9.99999974E-6 : f32
    %219 = vector.broadcast %cst_118 : f32 to vector<32x1xf32>
    %220 = arith.addf %216, %219 : vector<32x1xf32>
    %221 = math.rsqrt %220 : vector<32x1xf32>
    %222 = vector.broadcast %221 : vector<32x1xf32> to vector<32x32xf32>
    %223 = arith.mulf %218, %222 : vector<32x32xf32>
    %224 = vector.broadcast %203 : vector<1x32xf32> to vector<32x32xf32>
    %225 = arith.mulf %223, %224 : vector<32x32xf32>
    %226 = vector.broadcast %205 : vector<1x32xf32> to vector<32x32xf32>
    %227 = arith.addf %225, %226 : vector<32x32xf32>
    %228 = arith.truncf %227 : vector<32x32xf32> to vector<32x32xbf16>
    %cst_119 = arith.constant 0.000000e+00 : f32
    %229 = vector.broadcast %cst_119 : f32 to vector<32x32xf32>
    %c1_120 = arith.constant 1 : index
    %c0_121 = arith.constant 0 : index
    %c0_122 = arith.constant 0 : index
    %230 = vector.load %arg6[%c1_120, %c0_121, %c0_122] : memref<3x32x96xbf16, #tpu.memory_space<vmem>>, vector<1x32x16xbf16>
    %231 = vector.shape_cast %230 : vector<1x32x16xbf16> to vector<32x16xbf16>
    %cst_123 = arith.constant dense<0.000000e+00> : vector<32x16xf32>
    %232 = tpu.matmul %228, %231, %cst_123 {dimension_numbers = #tpu.dot_dimension_numbers<[1], [0], [0], [1], [0, 0, 1, 1], [], []>} : vector<32x32xbf16>, vector<32x16xbf16>, vector<32x16xf32> -> vector<32x16xf32>
    %c1_124 = arith.constant 1 : index
    %c6_125 = arith.constant 6 : index
    %c0_126 = arith.constant 0 : index
    %233 = vector.load %arg11[%c1_124, %c6_125, %c0_126] : memref<3x8x96xf32, #tpu.memory_space<vmem>>, vector<1x1x16xf32>
    %234 = vector.shape_cast %233 : vector<1x1x16xf32> to vector<1x16xf32>
    %235 = vector.broadcast %234 : vector<1x16xf32> to vector<32x16xf32>
    %236 = arith.addf %232, %235 : vector<32x16xf32>
    %c1_127 = arith.constant 1 : index
    %c0_128 = arith.constant 0 : index
    %c32_129 = arith.constant 32 : index
    %237 = vector.load %arg6[%c1_127, %c0_128, %c32_129] : memref<3x32x96xbf16, #tpu.memory_space<vmem>>, vector<1x32x16xbf16>
    %238 = vector.shape_cast %237 : vector<1x32x16xbf16> to vector<32x16xbf16>
    %cst_130 = arith.constant dense<0.000000e+00> : vector<32x16xf32>
    %239 = tpu.matmul %228, %238, %cst_130 {dimension_numbers = #tpu.dot_dimension_numbers<[1], [0], [0], [1], [0, 0, 1, 1], [], []>} : vector<32x32xbf16>, vector<32x16xbf16>, vector<32x16xf32> -> vector<32x16xf32>
    %c1_131 = arith.constant 1 : index
    %c6_132 = arith.constant 6 : index
    %c32_133 = arith.constant 32 : index
    %240 = vector.load %arg11[%c1_131, %c6_132, %c32_133] : memref<3x8x96xf32, #tpu.memory_space<vmem>>, vector<1x1x16xf32>
    %241 = vector.shape_cast %240 : vector<1x1x16xf32> to vector<1x16xf32>
    %242 = vector.broadcast %241 : vector<1x16xf32> to vector<32x16xf32>
    %243 = arith.addf %239, %242 : vector<32x16xf32>
    %c1_134 = arith.constant 1 : index
    %c0_135 = arith.constant 0 : index
    %c64_136 = arith.constant 64 : index
    %244 = vector.load %arg6[%c1_134, %c0_135, %c64_136] : memref<3x32x96xbf16, #tpu.memory_space<vmem>>, vector<1x32x16xbf16>
    %245 = vector.shape_cast %244 : vector<1x32x16xbf16> to vector<32x16xbf16>
    %cst_137 = arith.constant dense<0.000000e+00> : vector<32x16xf32>
    %246 = tpu.matmul %228, %245, %cst_137 {dimension_numbers = #tpu.dot_dimension_numbers<[1], [0], [0], [1], [0, 0, 1, 1], [], []>} : vector<32x32xbf16>, vector<32x16xbf16>, vector<32x16xf32> -> vector<32x16xf32>
    %c1_138 = arith.constant 1 : index
    %c6_139 = arith.constant 6 : index
    %c64_140 = arith.constant 64 : index
    %247 = vector.load %arg11[%c1_138, %c6_139, %c64_140] : memref<3x8x96xf32, #tpu.memory_space<vmem>>, vector<1x1x16xf32>
    %248 = vector.shape_cast %247 : vector<1x1x16xf32> to vector<1x16xf32>
    %249 = vector.broadcast %248 : vector<1x16xf32> to vector<32x16xf32>
    %250 = arith.addf %246, %249 : vector<32x16xf32>
    %251 = arith.truncf %236 : vector<32x16xf32> to vector<32x16xbf16>
    %252 = arith.truncf %243 : vector<32x16xf32> to vector<32x16xbf16>
    %cst_141 = arith.constant dense<0.000000e+00> : vector<32x32xf32>
    %253 = tpu.matmul %251, %252, %cst_141 {dimension_numbers = #tpu.dot_dimension_numbers<[1], [1], [0], [0], [0, 0, 1, 0], [], []>} : vector<32x16xbf16>, vector<32x16xbf16>, vector<32x32xf32> -> vector<32x32xf32>
    %cst_142 = arith.constant 2.500000e-01 : f32
    %254 = vector.broadcast %cst_142 : f32 to vector<32x32xf32>
    %255 = arith.mulf %253, %254 : vector<32x32xf32>
    %256 = arith.addf %255, %201 : vector<32x32xf32>
    %cst_143 = arith.constant dense<0xFF800000> : vector<32xf32>
    %257 = vector.multi_reduction <maximumf>, %256, %cst_143 [1] : vector<32x32xf32> to vector<32xf32>
    %258 = vector.shape_cast %257 : vector<32xf32> to vector<32x1xf32>
    %259 = vector.broadcast %258 : vector<32x1xf32> to vector<32x32xf32>
    %260 = arith.subf %256, %259 : vector<32x32xf32>
    %261 = math.exp %260 : vector<32x32xf32>
    %cst_144 = arith.constant dense<0.000000e+00> : vector<32xf32>
    %262 = vector.multi_reduction <add>, %261, %cst_144 [1] : vector<32x32xf32> to vector<32xf32>
    %263 = vector.shape_cast %262 : vector<32xf32> to vector<32x1xf32>
    %264 = tpu.reciprocal %263 {approx = true} : vector<32x1xf32> -> vector<32x1xf32>
    %265 = vector.broadcast %264 : vector<32x1xf32> to vector<32x32xf32>
    %266 = arith.mulf %261, %265 : vector<32x32xf32>
    %267 = arith.truncf %266 : vector<32x32xf32> to vector<32x32xbf16>
    %268 = arith.truncf %250 : vector<32x16xf32> to vector<32x16xbf16>
    %cst_145 = arith.constant dense<0.000000e+00> : vector<32x16xf32>
    %269 = tpu.matmul %267, %268, %cst_145 {dimension_numbers = #tpu.dot_dimension_numbers<[1], [0], [0], [1], [0, 0, 1, 1], [], []>} : vector<32x32xbf16>, vector<32x16xbf16>, vector<32x16xf32> -> vector<32x16xf32>
    %270 = arith.truncf %269 : vector<32x16xf32> to vector<32x16xbf16>
    %c1_146 = arith.constant 1 : index
    %c0_147 = arith.constant 0 : index
    %c0_148 = arith.constant 0 : index
    %271 = vector.load %arg7[%c1_146, %c0_147, %c0_148] : memref<3x32x32xbf16, #tpu.memory_space<vmem>>, vector<1x16x32xbf16>
    %272 = vector.shape_cast %271 : vector<1x16x32xbf16> to vector<16x32xbf16>
    %cst_149 = arith.constant dense<0.000000e+00> : vector<32x32xf32>
    %273 = tpu.matmul %270, %272, %cst_149 {dimension_numbers = #tpu.dot_dimension_numbers<[1], [0], [0], [1], [0, 0, 1, 1], [], []>} : vector<32x16xbf16>, vector<16x32xbf16>, vector<32x32xf32> -> vector<32x32xf32>
    %274 = arith.addf %229, %273 : vector<32x32xf32>
    %c1_150 = arith.constant 1 : index
    %c0_151 = arith.constant 0 : index
    %c16_152 = arith.constant 16 : index
    %275 = vector.load %arg6[%c1_150, %c0_151, %c16_152] : memref<3x32x96xbf16, #tpu.memory_space<vmem>>, vector<1x32x16xbf16>
    %276 = vector.shape_cast %275 : vector<1x32x16xbf16> to vector<32x16xbf16>
    %cst_153 = arith.constant dense<0.000000e+00> : vector<32x16xf32>
    %277 = tpu.matmul %228, %276, %cst_153 {dimension_numbers = #tpu.dot_dimension_numbers<[1], [0], [0], [1], [0, 0, 1, 1], [], []>} : vector<32x32xbf16>, vector<32x16xbf16>, vector<32x16xf32> -> vector<32x16xf32>
    %c1_154 = arith.constant 1 : index
    %c6_155 = arith.constant 6 : index
    %c16_156 = arith.constant 16 : index
    %278 = vector.load %arg11[%c1_154, %c6_155, %c16_156] : memref<3x8x96xf32, #tpu.memory_space<vmem>>, vector<1x1x16xf32>
    %279 = vector.shape_cast %278 : vector<1x1x16xf32> to vector<1x16xf32>
    %280 = vector.broadcast %279 : vector<1x16xf32> to vector<32x16xf32>
    %281 = arith.addf %277, %280 : vector<32x16xf32>
    %c1_157 = arith.constant 1 : index
    %c0_158 = arith.constant 0 : index
    %c48_159 = arith.constant 48 : index
    %282 = vector.load %arg6[%c1_157, %c0_158, %c48_159] : memref<3x32x96xbf16, #tpu.memory_space<vmem>>, vector<1x32x16xbf16>
    %283 = vector.shape_cast %282 : vector<1x32x16xbf16> to vector<32x16xbf16>
    %cst_160 = arith.constant dense<0.000000e+00> : vector<32x16xf32>
    %284 = tpu.matmul %228, %283, %cst_160 {dimension_numbers = #tpu.dot_dimension_numbers<[1], [0], [0], [1], [0, 0, 1, 1], [], []>} : vector<32x32xbf16>, vector<32x16xbf16>, vector<32x16xf32> -> vector<32x16xf32>
    %c1_161 = arith.constant 1 : index
    %c6_162 = arith.constant 6 : index
    %c48_163 = arith.constant 48 : index
    %285 = vector.load %arg11[%c1_161, %c6_162, %c48_163] : memref<3x8x96xf32, #tpu.memory_space<vmem>>, vector<1x1x16xf32>
    %286 = vector.shape_cast %285 : vector<1x1x16xf32> to vector<1x16xf32>
    %287 = vector.broadcast %286 : vector<1x16xf32> to vector<32x16xf32>
    %288 = arith.addf %284, %287 : vector<32x16xf32>
    %c1_164 = arith.constant 1 : index
    %c0_165 = arith.constant 0 : index
    %c80_166 = arith.constant 80 : index
    %289 = vector.load %arg6[%c1_164, %c0_165, %c80_166] : memref<3x32x96xbf16, #tpu.memory_space<vmem>>, vector<1x32x16xbf16>
    %290 = vector.shape_cast %289 : vector<1x32x16xbf16> to vector<32x16xbf16>
    %cst_167 = arith.constant dense<0.000000e+00> : vector<32x16xf32>
    %291 = tpu.matmul %228, %290, %cst_167 {dimension_numbers = #tpu.dot_dimension_numbers<[1], [0], [0], [1], [0, 0, 1, 1], [], []>} : vector<32x32xbf16>, vector<32x16xbf16>, vector<32x16xf32> -> vector<32x16xf32>
    %c1_168 = arith.constant 1 : index
    %c6_169 = arith.constant 6 : index
    %c80_170 = arith.constant 80 : index
    %292 = vector.load %arg11[%c1_168, %c6_169, %c80_170] : memref<3x8x96xf32, #tpu.memory_space<vmem>>, vector<1x1x16xf32>
    %293 = vector.shape_cast %292 : vector<1x1x16xf32> to vector<1x16xf32>
    %294 = vector.broadcast %293 : vector<1x16xf32> to vector<32x16xf32>
    %295 = arith.addf %291, %294 : vector<32x16xf32>
    %296 = arith.truncf %281 : vector<32x16xf32> to vector<32x16xbf16>
    %297 = arith.truncf %288 : vector<32x16xf32> to vector<32x16xbf16>
    %cst_171 = arith.constant dense<0.000000e+00> : vector<32x32xf32>
    %298 = tpu.matmul %296, %297, %cst_171 {dimension_numbers = #tpu.dot_dimension_numbers<[1], [1], [0], [0], [0, 0, 1, 0], [], []>} : vector<32x16xbf16>, vector<32x16xbf16>, vector<32x32xf32> -> vector<32x32xf32>
    %cst_172 = arith.constant 2.500000e-01 : f32
    %299 = vector.broadcast %cst_172 : f32 to vector<32x32xf32>
    %300 = arith.mulf %298, %299 : vector<32x32xf32>
    %301 = arith.addf %300, %201 : vector<32x32xf32>
    %cst_173 = arith.constant dense<0xFF800000> : vector<32xf32>
    %302 = vector.multi_reduction <maximumf>, %301, %cst_173 [1] : vector<32x32xf32> to vector<32xf32>
    %303 = vector.shape_cast %302 : vector<32xf32> to vector<32x1xf32>
    %304 = vector.broadcast %303 : vector<32x1xf32> to vector<32x32xf32>
    %305 = arith.subf %301, %304 : vector<32x32xf32>
    %306 = math.exp %305 : vector<32x32xf32>
    %cst_174 = arith.constant dense<0.000000e+00> : vector<32xf32>
    %307 = vector.multi_reduction <add>, %306, %cst_174 [1] : vector<32x32xf32> to vector<32xf32>
    %308 = vector.shape_cast %307 : vector<32xf32> to vector<32x1xf32>
    %309 = tpu.reciprocal %308 {approx = true} : vector<32x1xf32> -> vector<32x1xf32>
    %310 = vector.broadcast %309 : vector<32x1xf32> to vector<32x32xf32>
    %311 = arith.mulf %306, %310 : vector<32x32xf32>
    %312 = arith.truncf %311 : vector<32x32xf32> to vector<32x32xbf16>
    %313 = arith.truncf %295 : vector<32x16xf32> to vector<32x16xbf16>
    %cst_175 = arith.constant dense<0.000000e+00> : vector<32x16xf32>
    %314 = tpu.matmul %312, %313, %cst_175 {dimension_numbers = #tpu.dot_dimension_numbers<[1], [0], [0], [1], [0, 0, 1, 1], [], []>} : vector<32x32xbf16>, vector<32x16xbf16>, vector<32x16xf32> -> vector<32x16xf32>
    %315 = arith.truncf %314 : vector<32x16xf32> to vector<32x16xbf16>
    %c1_176 = arith.constant 1 : index
    %c16_177 = arith.constant 16 : index
    %c0_178 = arith.constant 0 : index
    %316 = vector.load %arg7[%c1_176, %c16_177, %c0_178] : memref<3x32x32xbf16, #tpu.memory_space<vmem>>, vector<1x16x32xbf16>
    %317 = vector.shape_cast %316 : vector<1x16x32xbf16> to vector<16x32xbf16>
    %cst_179 = arith.constant dense<0.000000e+00> : vector<32x32xf32>
    %318 = tpu.matmul %315, %317, %cst_179 {dimension_numbers = #tpu.dot_dimension_numbers<[1], [0], [0], [1], [0, 0, 1, 1], [], []>} : vector<32x16xbf16>, vector<16x32xbf16>, vector<32x32xf32> -> vector<32x32xf32>
    %319 = arith.addf %274, %318 : vector<32x32xf32>
    %320 = arith.addf %199, %319 : vector<32x32xf32>
    %c1_180 = arith.constant 1 : index
    %c4_181 = arith.constant 4 : index
    %c0_182 = arith.constant 0 : index
    %321 = vector.load %arg11[%c1_180, %c4_181, %c0_182] : memref<3x8x96xf32, #tpu.memory_space<vmem>>, vector<1x1x32xf32>
    %322 = vector.shape_cast %321 : vector<1x1x32xf32> to vector<1x32xf32>
    %323 = vector.broadcast %322 : vector<1x32xf32> to vector<32x32xf32>
    %324 = arith.addf %320, %323 : vector<32x32xf32>
    %c1_183 = arith.constant 1 : index
    %c2_184 = arith.constant 2 : index
    %c0_185 = arith.constant 0 : index
    %325 = vector.load %arg11[%c1_183, %c2_184, %c0_185] : memref<3x8x96xf32, #tpu.memory_space<vmem>>, vector<1x1x32xf32>
    %326 = vector.shape_cast %325 : vector<1x1x32xf32> to vector<1x32xf32>
    %c1_186 = arith.constant 1 : index
    %c3_187 = arith.constant 3 : index
    %c0_188 = arith.constant 0 : index
    %327 = vector.load %arg11[%c1_186, %c3_187, %c0_188] : memref<3x8x96xf32, #tpu.memory_space<vmem>>, vector<1x1x32xf32>
    %328 = vector.shape_cast %327 : vector<1x1x32xf32> to vector<1x32xf32>
    %cst_189 = arith.constant dense<0.000000e+00> : vector<32xf32>
    %329 = vector.multi_reduction <add>, %324, %cst_189 [1] : vector<32x32xf32> to vector<32xf32>
    %330 = vector.shape_cast %329 : vector<32xf32> to vector<32x1xf32>
    %cst_190 = arith.constant 3.200000e+01 : f32
    %331 = vector.broadcast %cst_190 : f32 to vector<32x1xf32>
    %332 = arith.divf %330, %331 : vector<32x1xf32>
    %333 = vector.broadcast %332 : vector<32x1xf32> to vector<32x32xf32>
    %334 = arith.subf %324, %333 : vector<32x32xf32>
    %335 = arith.mulf %334, %334 : vector<32x32xf32>
    %cst_191 = arith.constant dense<0.000000e+00> : vector<32xf32>
    %336 = vector.multi_reduction <add>, %335, %cst_191 [1] : vector<32x32xf32> to vector<32xf32>
    %337 = vector.shape_cast %336 : vector<32xf32> to vector<32x1xf32>
    %cst_192 = arith.constant 3.200000e+01 : f32
    %338 = vector.broadcast %cst_192 : f32 to vector<32x1xf32>
    %339 = arith.divf %337, %338 : vector<32x1xf32>
    %340 = vector.broadcast %332 : vector<32x1xf32> to vector<32x32xf32>
    %341 = arith.subf %324, %340 : vector<32x32xf32>
    %cst_193 = arith.constant 9.99999974E-6 : f32
    %342 = vector.broadcast %cst_193 : f32 to vector<32x1xf32>
    %343 = arith.addf %339, %342 : vector<32x1xf32>
    %344 = math.rsqrt %343 : vector<32x1xf32>
    %345 = vector.broadcast %344 : vector<32x1xf32> to vector<32x32xf32>
    %346 = arith.mulf %341, %345 : vector<32x32xf32>
    %347 = vector.broadcast %326 : vector<1x32xf32> to vector<32x32xf32>
    %348 = arith.mulf %346, %347 : vector<32x32xf32>
    %349 = vector.broadcast %328 : vector<1x32xf32> to vector<32x32xf32>
    %350 = arith.addf %348, %349 : vector<32x32xf32>
    %c1_194 = arith.constant 1 : index
    %c0_195 = arith.constant 0 : index
    %c0_196 = arith.constant 0 : index
    %351 = vector.load %arg8[%c1_194, %c0_195, %c0_196] : memref<3x32x64xbf16, #tpu.memory_space<vmem>>, vector<1x32x64xbf16>
    %352 = vector.shape_cast %351 : vector<1x32x64xbf16> to vector<32x64xbf16>
    %353 = arith.truncf %350 : vector<32x32xf32> to vector<32x32xbf16>
    %cst_197 = arith.constant dense<0.000000e+00> : vector<32x64xf32>
    %354 = tpu.matmul %353, %352, %cst_197 {dimension_numbers = #tpu.dot_dimension_numbers<[1], [0], [0], [1], [0, 0, 1, 1], [], []>} : vector<32x32xbf16>, vector<32x64xbf16>, vector<32x64xf32> -> vector<32x64xf32>
    %c1_198 = arith.constant 1 : index
    %c7_199 = arith.constant 7 : index
    %c0_200 = arith.constant 0 : index
    %355 = vector.load %arg11[%c1_198, %c7_199, %c0_200] : memref<3x8x96xf32, #tpu.memory_space<vmem>>, vector<1x1x64xf32>
    %356 = vector.shape_cast %355 : vector<1x1x64xf32> to vector<1x64xf32>
    %357 = vector.broadcast %356 : vector<1x64xf32> to vector<32x64xf32>
    %358 = arith.addf %354, %357 : vector<32x64xf32>
    %359 = arith.mulf %358, %358 : vector<32x64xf32>
    %360 = arith.mulf %358, %359 : vector<32x64xf32>
    %cst_201 = arith.constant 4.471500e-02 : f32
    %361 = vector.broadcast %cst_201 : f32 to vector<32x64xf32>
    %362 = arith.mulf %361, %360 : vector<32x64xf32>
    %363 = arith.addf %358, %362 : vector<32x64xf32>
    %cst_202 = arith.constant 0.797884583 : f32
    %364 = vector.broadcast %cst_202 : f32 to vector<32x64xf32>
    %365 = arith.mulf %364, %363 : vector<32x64xf32>
    %366 = math.tanh %365 : vector<32x64xf32>
    %cst_203 = arith.constant 1.000000e+00 : f32
    %367 = vector.broadcast %cst_203 : f32 to vector<32x64xf32>
    %368 = arith.addf %367, %366 : vector<32x64xf32>
    %cst_204 = arith.constant 5.000000e-01 : f32
    %369 = vector.broadcast %cst_204 : f32 to vector<32x64xf32>
    %370 = arith.mulf %369, %368 : vector<32x64xf32>
    %371 = arith.mulf %358, %370 : vector<32x64xf32>
    %c1_205 = arith.constant 1 : index
    %c0_206 = arith.constant 0 : index
    %c0_207 = arith.constant 0 : index
    %372 = vector.load %arg9[%c1_205, %c0_206, %c0_207] : memref<3x64x32xbf16, #tpu.memory_space<vmem>>, vector<1x64x32xbf16>
    %373 = vector.shape_cast %372 : vector<1x64x32xbf16> to vector<64x32xbf16>
    %374 = arith.truncf %371 : vector<32x64xf32> to vector<32x64xbf16>
    %cst_208 = arith.constant dense<0.000000e+00> : vector<32x32xf32>
    %375 = tpu.matmul %374, %373, %cst_208 {dimension_numbers = #tpu.dot_dimension_numbers<[1], [0], [0], [1], [0, 0, 1, 1], [], []>} : vector<32x64xbf16>, vector<64x32xbf16>, vector<32x32xf32> -> vector<32x32xf32>
    %376 = arith.addf %324, %375 : vector<32x32xf32>
    %c1_209 = arith.constant 1 : index
    %c5_210 = arith.constant 5 : index
    %c0_211 = arith.constant 0 : index
    %377 = vector.load %arg11[%c1_209, %c5_210, %c0_211] : memref<3x8x96xf32, #tpu.memory_space<vmem>>, vector<1x1x32xf32>
    %378 = vector.shape_cast %377 : vector<1x1x32xf32> to vector<1x32xf32>
    %379 = vector.broadcast %378 : vector<1x32xf32> to vector<32x32xf32>
    %380 = arith.addf %376, %379 : vector<32x32xf32>
    %c2_212 = arith.constant 2 : index
    %c0_213 = arith.constant 0 : index
    %c0_214 = arith.constant 0 : index
    %381 = vector.load %arg11[%c2_212, %c0_213, %c0_214] : memref<3x8x96xf32, #tpu.memory_space<vmem>>, vector<1x1x32xf32>
    %382 = vector.shape_cast %381 : vector<1x1x32xf32> to vector<1x32xf32>
    %c2_215 = arith.constant 2 : index
    %c1_216 = arith.constant 1 : index
    %c0_217 = arith.constant 0 : index
    %383 = vector.load %arg11[%c2_215, %c1_216, %c0_217] : memref<3x8x96xf32, #tpu.memory_space<vmem>>, vector<1x1x32xf32>
    %384 = vector.shape_cast %383 : vector<1x1x32xf32> to vector<1x32xf32>
    %cst_218 = arith.constant dense<0.000000e+00> : vector<32xf32>
    %385 = vector.multi_reduction <add>, %380, %cst_218 [1] : vector<32x32xf32> to vector<32xf32>
    %386 = vector.shape_cast %385 : vector<32xf32> to vector<32x1xf32>
    %cst_219 = arith.constant 3.200000e+01 : f32
    %387 = vector.broadcast %cst_219 : f32 to vector<32x1xf32>
    %388 = arith.divf %386, %387 : vector<32x1xf32>
    %389 = vector.broadcast %388 : vector<32x1xf32> to vector<32x32xf32>
    %390 = arith.subf %380, %389 : vector<32x32xf32>
    %391 = arith.mulf %390, %390 : vector<32x32xf32>
    %cst_220 = arith.constant dense<0.000000e+00> : vector<32xf32>
    %392 = vector.multi_reduction <add>, %391, %cst_220 [1] : vector<32x32xf32> to vector<32xf32>
    %393 = vector.shape_cast %392 : vector<32xf32> to vector<32x1xf32>
    %cst_221 = arith.constant 3.200000e+01 : f32
    %394 = vector.broadcast %cst_221 : f32 to vector<32x1xf32>
    %395 = arith.divf %393, %394 : vector<32x1xf32>
    %396 = vector.broadcast %388 : vector<32x1xf32> to vector<32x32xf32>
    %397 = arith.subf %380, %396 : vector<32x32xf32>
    %cst_222 = arith.constant 9.99999974E-6 : f32
    %398 = vector.broadcast %cst_222 : f32 to vector<32x1xf32>
    %399 = arith.addf %395, %398 : vector<32x1xf32>
    %400 = math.rsqrt %399 : vector<32x1xf32>
    %401 = vector.broadcast %400 : vector<32x1xf32> to vector<32x32xf32>
    %402 = arith.mulf %397, %401 : vector<32x32xf32>
    %403 = vector.broadcast %382 : vector<1x32xf32> to vector<32x32xf32>
    %404 = arith.mulf %402, %403 : vector<32x32xf32>
    %405 = vector.broadcast %384 : vector<1x32xf32> to vector<32x32xf32>
    %406 = arith.addf %404, %405 : vector<32x32xf32>
    %407 = arith.truncf %406 : vector<32x32xf32> to vector<32x32xbf16>
    %cst_223 = arith.constant 0.000000e+00 : f32
    %408 = vector.broadcast %cst_223 : f32 to vector<32x32xf32>
    %c2_224 = arith.constant 2 : index
    %c0_225 = arith.constant 0 : index
    %c0_226 = arith.constant 0 : index
    %409 = vector.load %arg6[%c2_224, %c0_225, %c0_226] : memref<3x32x96xbf16, #tpu.memory_space<vmem>>, vector<1x32x16xbf16>
    %410 = vector.shape_cast %409 : vector<1x32x16xbf16> to vector<32x16xbf16>
    %cst_227 = arith.constant dense<0.000000e+00> : vector<32x16xf32>
    %411 = tpu.matmul %407, %410, %cst_227 {dimension_numbers = #tpu.dot_dimension_numbers<[1], [0], [0], [1], [0, 0, 1, 1], [], []>} : vector<32x32xbf16>, vector<32x16xbf16>, vector<32x16xf32> -> vector<32x16xf32>
    %c2_228 = arith.constant 2 : index
    %c6_229 = arith.constant 6 : index
    %c0_230 = arith.constant 0 : index
    %412 = vector.load %arg11[%c2_228, %c6_229, %c0_230] : memref<3x8x96xf32, #tpu.memory_space<vmem>>, vector<1x1x16xf32>
    %413 = vector.shape_cast %412 : vector<1x1x16xf32> to vector<1x16xf32>
    %414 = vector.broadcast %413 : vector<1x16xf32> to vector<32x16xf32>
    %415 = arith.addf %411, %414 : vector<32x16xf32>
    %c2_231 = arith.constant 2 : index
    %c0_232 = arith.constant 0 : index
    %c32_233 = arith.constant 32 : index
    %416 = vector.load %arg6[%c2_231, %c0_232, %c32_233] : memref<3x32x96xbf16, #tpu.memory_space<vmem>>, vector<1x32x16xbf16>
    %417 = vector.shape_cast %416 : vector<1x32x16xbf16> to vector<32x16xbf16>
    %cst_234 = arith.constant dense<0.000000e+00> : vector<32x16xf32>
    %418 = tpu.matmul %407, %417, %cst_234 {dimension_numbers = #tpu.dot_dimension_numbers<[1], [0], [0], [1], [0, 0, 1, 1], [], []>} : vector<32x32xbf16>, vector<32x16xbf16>, vector<32x16xf32> -> vector<32x16xf32>
    %c2_235 = arith.constant 2 : index
    %c6_236 = arith.constant 6 : index
    %c32_237 = arith.constant 32 : index
    %419 = vector.load %arg11[%c2_235, %c6_236, %c32_237] : memref<3x8x96xf32, #tpu.memory_space<vmem>>, vector<1x1x16xf32>
    %420 = vector.shape_cast %419 : vector<1x1x16xf32> to vector<1x16xf32>
    %421 = vector.broadcast %420 : vector<1x16xf32> to vector<32x16xf32>
    %422 = arith.addf %418, %421 : vector<32x16xf32>
    %c2_238 = arith.constant 2 : index
    %c0_239 = arith.constant 0 : index
    %c64_240 = arith.constant 64 : index
    %423 = vector.load %arg6[%c2_238, %c0_239, %c64_240] : memref<3x32x96xbf16, #tpu.memory_space<vmem>>, vector<1x32x16xbf16>
    %424 = vector.shape_cast %423 : vector<1x32x16xbf16> to vector<32x16xbf16>
    %cst_241 = arith.constant dense<0.000000e+00> : vector<32x16xf32>
    %425 = tpu.matmul %407, %424, %cst_241 {dimension_numbers = #tpu.dot_dimension_numbers<[1], [0], [0], [1], [0, 0, 1, 1], [], []>} : vector<32x32xbf16>, vector<32x16xbf16>, vector<32x16xf32> -> vector<32x16xf32>
    %c2_242 = arith.constant 2 : index
    %c6_243 = arith.constant 6 : index
    %c64_244 = arith.constant 64 : index
    %426 = vector.load %arg11[%c2_242, %c6_243, %c64_244] : memref<3x8x96xf32, #tpu.memory_space<vmem>>, vector<1x1x16xf32>
    %427 = vector.shape_cast %426 : vector<1x1x16xf32> to vector<1x16xf32>
    %428 = vector.broadcast %427 : vector<1x16xf32> to vector<32x16xf32>
    %429 = arith.addf %425, %428 : vector<32x16xf32>
    %430 = arith.truncf %415 : vector<32x16xf32> to vector<32x16xbf16>
    %431 = arith.truncf %422 : vector<32x16xf32> to vector<32x16xbf16>
    %cst_245 = arith.constant dense<0.000000e+00> : vector<32x32xf32>
    %432 = tpu.matmul %430, %431, %cst_245 {dimension_numbers = #tpu.dot_dimension_numbers<[1], [1], [0], [0], [0, 0, 1, 0], [], []>} : vector<32x16xbf16>, vector<32x16xbf16>, vector<32x32xf32> -> vector<32x32xf32>
    %cst_246 = arith.constant 2.500000e-01 : f32
    %433 = vector.broadcast %cst_246 : f32 to vector<32x32xf32>
    %434 = arith.mulf %432, %433 : vector<32x32xf32>
    %435 = arith.addf %434, %201 : vector<32x32xf32>
    %cst_247 = arith.constant dense<0xFF800000> : vector<32xf32>
    %436 = vector.multi_reduction <maximumf>, %435, %cst_247 [1] : vector<32x32xf32> to vector<32xf32>
    %437 = vector.shape_cast %436 : vector<32xf32> to vector<32x1xf32>
    %438 = vector.broadcast %437 : vector<32x1xf32> to vector<32x32xf32>
    %439 = arith.subf %435, %438 : vector<32x32xf32>
    %440 = math.exp %439 : vector<32x32xf32>
    %cst_248 = arith.constant dense<0.000000e+00> : vector<32xf32>
    %441 = vector.multi_reduction <add>, %440, %cst_248 [1] : vector<32x32xf32> to vector<32xf32>
    %442 = vector.shape_cast %441 : vector<32xf32> to vector<32x1xf32>
    %443 = tpu.reciprocal %442 {approx = true} : vector<32x1xf32> -> vector<32x1xf32>
    %444 = vector.broadcast %443 : vector<32x1xf32> to vector<32x32xf32>
    %445 = arith.mulf %440, %444 : vector<32x32xf32>
    %446 = arith.truncf %445 : vector<32x32xf32> to vector<32x32xbf16>
    %447 = arith.truncf %429 : vector<32x16xf32> to vector<32x16xbf16>
    %cst_249 = arith.constant dense<0.000000e+00> : vector<32x16xf32>
    %448 = tpu.matmul %446, %447, %cst_249 {dimension_numbers = #tpu.dot_dimension_numbers<[1], [0], [0], [1], [0, 0, 1, 1], [], []>} : vector<32x32xbf16>, vector<32x16xbf16>, vector<32x16xf32> -> vector<32x16xf32>
    %449 = arith.truncf %448 : vector<32x16xf32> to vector<32x16xbf16>
    %c2_250 = arith.constant 2 : index
    %c0_251 = arith.constant 0 : index
    %c0_252 = arith.constant 0 : index
    %450 = vector.load %arg7[%c2_250, %c0_251, %c0_252] : memref<3x32x32xbf16, #tpu.memory_space<vmem>>, vector<1x16x32xbf16>
    %451 = vector.shape_cast %450 : vector<1x16x32xbf16> to vector<16x32xbf16>
    %cst_253 = arith.constant dense<0.000000e+00> : vector<32x32xf32>
    %452 = tpu.matmul %449, %451, %cst_253 {dimension_numbers = #tpu.dot_dimension_numbers<[1], [0], [0], [1], [0, 0, 1, 1], [], []>} : vector<32x16xbf16>, vector<16x32xbf16>, vector<32x32xf32> -> vector<32x32xf32>
    %453 = arith.addf %408, %452 : vector<32x32xf32>
    %c2_254 = arith.constant 2 : index
    %c0_255 = arith.constant 0 : index
    %c16_256 = arith.constant 16 : index
    %454 = vector.load %arg6[%c2_254, %c0_255, %c16_256] : memref<3x32x96xbf16, #tpu.memory_space<vmem>>, vector<1x32x16xbf16>
    %455 = vector.shape_cast %454 : vector<1x32x16xbf16> to vector<32x16xbf16>
    %cst_257 = arith.constant dense<0.000000e+00> : vector<32x16xf32>
    %456 = tpu.matmul %407, %455, %cst_257 {dimension_numbers = #tpu.dot_dimension_numbers<[1], [0], [0], [1], [0, 0, 1, 1], [], []>} : vector<32x32xbf16>, vector<32x16xbf16>, vector<32x16xf32> -> vector<32x16xf32>
    %c2_258 = arith.constant 2 : index
    %c6_259 = arith.constant 6 : index
    %c16_260 = arith.constant 16 : index
    %457 = vector.load %arg11[%c2_258, %c6_259, %c16_260] : memref<3x8x96xf32, #tpu.memory_space<vmem>>, vector<1x1x16xf32>
    %458 = vector.shape_cast %457 : vector<1x1x16xf32> to vector<1x16xf32>
    %459 = vector.broadcast %458 : vector<1x16xf32> to vector<32x16xf32>
    %460 = arith.addf %456, %459 : vector<32x16xf32>
    %c2_261 = arith.constant 2 : index
    %c0_262 = arith.constant 0 : index
    %c48_263 = arith.constant 48 : index
    %461 = vector.load %arg6[%c2_261, %c0_262, %c48_263] : memref<3x32x96xbf16, #tpu.memory_space<vmem>>, vector<1x32x16xbf16>
    %462 = vector.shape_cast %461 : vector<1x32x16xbf16> to vector<32x16xbf16>
    %cst_264 = arith.constant dense<0.000000e+00> : vector<32x16xf32>
    %463 = tpu.matmul %407, %462, %cst_264 {dimension_numbers = #tpu.dot_dimension_numbers<[1], [0], [0], [1], [0, 0, 1, 1], [], []>} : vector<32x32xbf16>, vector<32x16xbf16>, vector<32x16xf32> -> vector<32x16xf32>
    %c2_265 = arith.constant 2 : index
    %c6_266 = arith.constant 6 : index
    %c48_267 = arith.constant 48 : index
    %464 = vector.load %arg11[%c2_265, %c6_266, %c48_267] : memref<3x8x96xf32, #tpu.memory_space<vmem>>, vector<1x1x16xf32>
    %465 = vector.shape_cast %464 : vector<1x1x16xf32> to vector<1x16xf32>
    %466 = vector.broadcast %465 : vector<1x16xf32> to vector<32x16xf32>
    %467 = arith.addf %463, %466 : vector<32x16xf32>
    %c2_268 = arith.constant 2 : index
    %c0_269 = arith.constant 0 : index
    %c80_270 = arith.constant 80 : index
    %468 = vector.load %arg6[%c2_268, %c0_269, %c80_270] : memref<3x32x96xbf16, #tpu.memory_space<vmem>>, vector<1x32x16xbf16>
    %469 = vector.shape_cast %468 : vector<1x32x16xbf16> to vector<32x16xbf16>
    %cst_271 = arith.constant dense<0.000000e+00> : vector<32x16xf32>
    %470 = tpu.matmul %407, %469, %cst_271 {dimension_numbers = #tpu.dot_dimension_numbers<[1], [0], [0], [1], [0, 0, 1, 1], [], []>} : vector<32x32xbf16>, vector<32x16xbf16>, vector<32x16xf32> -> vector<32x16xf32>
    %c2_272 = arith.constant 2 : index
    %c6_273 = arith.constant 6 : index
    %c80_274 = arith.constant 80 : index
    %471 = vector.load %arg11[%c2_272, %c6_273, %c80_274] : memref<3x8x96xf32, #tpu.memory_space<vmem>>, vector<1x1x16xf32>
    %472 = vector.shape_cast %471 : vector<1x1x16xf32> to vector<1x16xf32>
    %473 = vector.broadcast %472 : vector<1x16xf32> to vector<32x16xf32>
    %474 = arith.addf %470, %473 : vector<32x16xf32>
    %475 = arith.truncf %460 : vector<32x16xf32> to vector<32x16xbf16>
    %476 = arith.truncf %467 : vector<32x16xf32> to vector<32x16xbf16>
    %cst_275 = arith.constant dense<0.000000e+00> : vector<32x32xf32>
    %477 = tpu.matmul %475, %476, %cst_275 {dimension_numbers = #tpu.dot_dimension_numbers<[1], [1], [0], [0], [0, 0, 1, 0], [], []>} : vector<32x16xbf16>, vector<32x16xbf16>, vector<32x32xf32> -> vector<32x32xf32>
    %cst_276 = arith.constant 2.500000e-01 : f32
    %478 = vector.broadcast %cst_276 : f32 to vector<32x32xf32>
    %479 = arith.mulf %477, %478 : vector<32x32xf32>
    %480 = arith.addf %479, %201 : vector<32x32xf32>
    %cst_277 = arith.constant dense<0xFF800000> : vector<32xf32>
    %481 = vector.multi_reduction <maximumf>, %480, %cst_277 [1] : vector<32x32xf32> to vector<32xf32>
    %482 = vector.shape_cast %481 : vector<32xf32> to vector<32x1xf32>
    %483 = vector.broadcast %482 : vector<32x1xf32> to vector<32x32xf32>
    %484 = arith.subf %480, %483 : vector<32x32xf32>
    %485 = math.exp %484 : vector<32x32xf32>
    %cst_278 = arith.constant dense<0.000000e+00> : vector<32xf32>
    %486 = vector.multi_reduction <add>, %485, %cst_278 [1] : vector<32x32xf32> to vector<32xf32>
    %487 = vector.shape_cast %486 : vector<32xf32> to vector<32x1xf32>
    %488 = tpu.reciprocal %487 {approx = true} : vector<32x1xf32> -> vector<32x1xf32>
    %489 = vector.broadcast %488 : vector<32x1xf32> to vector<32x32xf32>
    %490 = arith.mulf %485, %489 : vector<32x32xf32>
    %491 = arith.truncf %490 : vector<32x32xf32> to vector<32x32xbf16>
    %492 = arith.truncf %474 : vector<32x16xf32> to vector<32x16xbf16>
    %cst_279 = arith.constant dense<0.000000e+00> : vector<32x16xf32>
    %493 = tpu.matmul %491, %492, %cst_279 {dimension_numbers = #tpu.dot_dimension_numbers<[1], [0], [0], [1], [0, 0, 1, 1], [], []>} : vector<32x32xbf16>, vector<32x16xbf16>, vector<32x16xf32> -> vector<32x16xf32>
    %494 = arith.truncf %493 : vector<32x16xf32> to vector<32x16xbf16>
    %c2_280 = arith.constant 2 : index
    %c16_281 = arith.constant 16 : index
    %c0_282 = arith.constant 0 : index
    %495 = vector.load %arg7[%c2_280, %c16_281, %c0_282] : memref<3x32x32xbf16, #tpu.memory_space<vmem>>, vector<1x16x32xbf16>
    %496 = vector.shape_cast %495 : vector<1x16x32xbf16> to vector<16x32xbf16>
    %cst_283 = arith.constant dense<0.000000e+00> : vector<32x32xf32>
    %497 = tpu.matmul %494, %496, %cst_283 {dimension_numbers = #tpu.dot_dimension_numbers<[1], [0], [0], [1], [0, 0, 1, 1], [], []>} : vector<32x16xbf16>, vector<16x32xbf16>, vector<32x32xf32> -> vector<32x32xf32>
    %498 = arith.addf %453, %497 : vector<32x32xf32>
    %499 = arith.addf %380, %498 : vector<32x32xf32>
    %c2_284 = arith.constant 2 : index
    %c4_285 = arith.constant 4 : index
    %c0_286 = arith.constant 0 : index
    %500 = vector.load %arg11[%c2_284, %c4_285, %c0_286] : memref<3x8x96xf32, #tpu.memory_space<vmem>>, vector<1x1x32xf32>
    %501 = vector.shape_cast %500 : vector<1x1x32xf32> to vector<1x32xf32>
    %502 = vector.broadcast %501 : vector<1x32xf32> to vector<32x32xf32>
    %503 = arith.addf %499, %502 : vector<32x32xf32>
    %c2_287 = arith.constant 2 : index
    %c2_288 = arith.constant 2 : index
    %c0_289 = arith.constant 0 : index
    %504 = vector.load %arg11[%c2_287, %c2_288, %c0_289] : memref<3x8x96xf32, #tpu.memory_space<vmem>>, vector<1x1x32xf32>
    %505 = vector.shape_cast %504 : vector<1x1x32xf32> to vector<1x32xf32>
    %c2_290 = arith.constant 2 : index
    %c3_291 = arith.constant 3 : index
    %c0_292 = arith.constant 0 : index
    %506 = vector.load %arg11[%c2_290, %c3_291, %c0_292] : memref<3x8x96xf32, #tpu.memory_space<vmem>>, vector<1x1x32xf32>
    %507 = vector.shape_cast %506 : vector<1x1x32xf32> to vector<1x32xf32>
    %cst_293 = arith.constant dense<0.000000e+00> : vector<32xf32>
    %508 = vector.multi_reduction <add>, %503, %cst_293 [1] : vector<32x32xf32> to vector<32xf32>
    %509 = vector.shape_cast %508 : vector<32xf32> to vector<32x1xf32>
    %cst_294 = arith.constant 3.200000e+01 : f32
    %510 = vector.broadcast %cst_294 : f32 to vector<32x1xf32>
    %511 = arith.divf %509, %510 : vector<32x1xf32>
    %512 = vector.broadcast %511 : vector<32x1xf32> to vector<32x32xf32>
    %513 = arith.subf %503, %512 : vector<32x32xf32>
    %514 = arith.mulf %513, %513 : vector<32x32xf32>
    %cst_295 = arith.constant dense<0.000000e+00> : vector<32xf32>
    %515 = vector.multi_reduction <add>, %514, %cst_295 [1] : vector<32x32xf32> to vector<32xf32>
    %516 = vector.shape_cast %515 : vector<32xf32> to vector<32x1xf32>
    %cst_296 = arith.constant 3.200000e+01 : f32
    %517 = vector.broadcast %cst_296 : f32 to vector<32x1xf32>
    %518 = arith.divf %516, %517 : vector<32x1xf32>
    %519 = vector.broadcast %511 : vector<32x1xf32> to vector<32x32xf32>
    %520 = arith.subf %503, %519 : vector<32x32xf32>
    %cst_297 = arith.constant 9.99999974E-6 : f32
    %521 = vector.broadcast %cst_297 : f32 to vector<32x1xf32>
    %522 = arith.addf %518, %521 : vector<32x1xf32>
    %523 = math.rsqrt %522 : vector<32x1xf32>
    %524 = vector.broadcast %523 : vector<32x1xf32> to vector<32x32xf32>
    %525 = arith.mulf %520, %524 : vector<32x32xf32>
    %526 = vector.broadcast %505 : vector<1x32xf32> to vector<32x32xf32>
    %527 = arith.mulf %525, %526 : vector<32x32xf32>
    %528 = vector.broadcast %507 : vector<1x32xf32> to vector<32x32xf32>
    %529 = arith.addf %527, %528 : vector<32x32xf32>
    %c2_298 = arith.constant 2 : index
    %c0_299 = arith.constant 0 : index
    %c0_300 = arith.constant 0 : index
    %530 = vector.load %arg8[%c2_298, %c0_299, %c0_300] : memref<3x32x64xbf16, #tpu.memory_space<vmem>>, vector<1x32x64xbf16>
    %531 = vector.shape_cast %530 : vector<1x32x64xbf16> to vector<32x64xbf16>
    %532 = arith.truncf %529 : vector<32x32xf32> to vector<32x32xbf16>
    %cst_301 = arith.constant dense<0.000000e+00> : vector<32x64xf32>
    %533 = tpu.matmul %532, %531, %cst_301 {dimension_numbers = #tpu.dot_dimension_numbers<[1], [0], [0], [1], [0, 0, 1, 1], [], []>} : vector<32x32xbf16>, vector<32x64xbf16>, vector<32x64xf32> -> vector<32x64xf32>
    %c2_302 = arith.constant 2 : index
    %c7_303 = arith.constant 7 : index
    %c0_304 = arith.constant 0 : index
    %534 = vector.load %arg11[%c2_302, %c7_303, %c0_304] : memref<3x8x96xf32, #tpu.memory_space<vmem>>, vector<1x1x64xf32>
    %535 = vector.shape_cast %534 : vector<1x1x64xf32> to vector<1x64xf32>
    %536 = vector.broadcast %535 : vector<1x64xf32> to vector<32x64xf32>
    %537 = arith.addf %533, %536 : vector<32x64xf32>
    %538 = arith.mulf %537, %537 : vector<32x64xf32>
    %539 = arith.mulf %537, %538 : vector<32x64xf32>
    %cst_305 = arith.constant 4.471500e-02 : f32
    %540 = vector.broadcast %cst_305 : f32 to vector<32x64xf32>
    %541 = arith.mulf %540, %539 : vector<32x64xf32>
    %542 = arith.addf %537, %541 : vector<32x64xf32>
    %cst_306 = arith.constant 0.797884583 : f32
    %543 = vector.broadcast %cst_306 : f32 to vector<32x64xf32>
    %544 = arith.mulf %543, %542 : vector<32x64xf32>
    %545 = math.tanh %544 : vector<32x64xf32>
    %cst_307 = arith.constant 1.000000e+00 : f32
    %546 = vector.broadcast %cst_307 : f32 to vector<32x64xf32>
    %547 = arith.addf %546, %545 : vector<32x64xf32>
    %cst_308 = arith.constant 5.000000e-01 : f32
    %548 = vector.broadcast %cst_308 : f32 to vector<32x64xf32>
    %549 = arith.mulf %548, %547 : vector<32x64xf32>
    %550 = arith.mulf %537, %549 : vector<32x64xf32>
    %c2_309 = arith.constant 2 : index
    %c0_310 = arith.constant 0 : index
    %c0_311 = arith.constant 0 : index
    %551 = vector.load %arg9[%c2_309, %c0_310, %c0_311] : memref<3x64x32xbf16, #tpu.memory_space<vmem>>, vector<1x64x32xbf16>
    %552 = vector.shape_cast %551 : vector<1x64x32xbf16> to vector<64x32xbf16>
    %553 = arith.truncf %550 : vector<32x64xf32> to vector<32x64xbf16>
    %cst_312 = arith.constant dense<0.000000e+00> : vector<32x32xf32>
    %554 = tpu.matmul %553, %552, %cst_312 {dimension_numbers = #tpu.dot_dimension_numbers<[1], [0], [0], [1], [0, 0, 1, 1], [], []>} : vector<32x64xbf16>, vector<64x32xbf16>, vector<32x32xf32> -> vector<32x32xf32>
    %555 = arith.addf %503, %554 : vector<32x32xf32>
    %c2_313 = arith.constant 2 : index
    %c5_314 = arith.constant 5 : index
    %c0_315 = arith.constant 0 : index
    %556 = vector.load %arg11[%c2_313, %c5_314, %c0_315] : memref<3x8x96xf32, #tpu.memory_space<vmem>>, vector<1x1x32xf32>
    %557 = vector.shape_cast %556 : vector<1x1x32xf32> to vector<1x32xf32>
    %558 = vector.broadcast %557 : vector<1x32xf32> to vector<32x32xf32>
    %559 = arith.addf %555, %558 : vector<32x32xf32>
    %c0_316 = arith.constant 0 : index
    %c0_317 = arith.constant 0 : index
    %560 = vector.load %arg12[%c0_316, %c0_317] : memref<8x128xf32, #tpu.memory_space<vmem>>, vector<1x32xf32>
    %c1_318 = arith.constant 1 : index
    %c0_319 = arith.constant 0 : index
    %561 = vector.load %arg12[%c1_318, %c0_319] : memref<8x128xf32, #tpu.memory_space<vmem>>, vector<1x32xf32>
    %cst_320 = arith.constant dense<0.000000e+00> : vector<32xf32>
    %562 = vector.multi_reduction <add>, %559, %cst_320 [1] : vector<32x32xf32> to vector<32xf32>
    %563 = vector.shape_cast %562 : vector<32xf32> to vector<32x1xf32>
    %cst_321 = arith.constant 3.200000e+01 : f32
    %564 = vector.broadcast %cst_321 : f32 to vector<32x1xf32>
    %565 = arith.divf %563, %564 : vector<32x1xf32>
    %566 = vector.broadcast %565 : vector<32x1xf32> to vector<32x32xf32>
    %567 = arith.subf %559, %566 : vector<32x32xf32>
    %568 = arith.mulf %567, %567 : vector<32x32xf32>
    %cst_322 = arith.constant dense<0.000000e+00> : vector<32xf32>
    %569 = vector.multi_reduction <add>, %568, %cst_322 [1] : vector<32x32xf32> to vector<32xf32>
    %570 = vector.shape_cast %569 : vector<32xf32> to vector<32x1xf32>
    %cst_323 = arith.constant 3.200000e+01 : f32
    %571 = vector.broadcast %cst_323 : f32 to vector<32x1xf32>
    %572 = arith.divf %570, %571 : vector<32x1xf32>
    %573 = vector.broadcast %565 : vector<32x1xf32> to vector<32x32xf32>
    %574 = arith.subf %559, %573 : vector<32x32xf32>
    %cst_324 = arith.constant 9.99999974E-6 : f32
    %575 = vector.broadcast %cst_324 : f32 to vector<32x1xf32>
    %576 = arith.addf %572, %575 : vector<32x1xf32>
    %577 = math.rsqrt %576 : vector<32x1xf32>
    %578 = vector.broadcast %577 : vector<32x1xf32> to vector<32x32xf32>
    %579 = arith.mulf %574, %578 : vector<32x32xf32>
    %580 = vector.broadcast %560 : vector<1x32xf32> to vector<32x32xf32>
    %581 = arith.mulf %579, %580 : vector<32x32xf32>
    %582 = vector.broadcast %561 : vector<1x32xf32> to vector<32x32xf32>
    %583 = arith.addf %581, %582 : vector<32x32xf32>
    %c0_325 = arith.constant 0 : index
    %c0_326 = arith.constant 0 : index
    %584 = vector.load %arg13[%c0_325, %c0_326] : memref<32x128xbf16, #tpu.memory_space<vmem>>, vector<32x128xbf16>
    %585 = arith.truncf %583 : vector<32x32xf32> to vector<32x32xbf16>
    %cst_327 = arith.constant dense<0.000000e+00> : vector<32x128xf32>
    %586 = tpu.matmul %585, %584, %cst_327 {dimension_numbers = #tpu.dot_dimension_numbers<[1], [0], [0], [1], [0, 0, 1, 1], [], []>} : vector<32x32xbf16>, vector<32x128xbf16>, vector<32x128xf32> -> vector<32x128xf32>
    %c2_328 = arith.constant 2 : index
    %c0_329 = arith.constant 0 : index
    %587 = vector.load %arg12[%c2_328, %c0_329] : memref<8x128xf32, #tpu.memory_space<vmem>>, vector<1x128xf32>
    %588 = vector.broadcast %587 : vector<1x128xf32> to vector<32x128xf32>
    %589 = arith.addf %586, %588 : vector<32x128xf32>
    %cst_330 = arith.constant 0.000000e+00 : f32
    %590 = vector.broadcast %cst_330 : f32 to vector<32x128xf32>
    %591 = arith.maximumf %589, %590 : vector<32x128xf32>
    %c0_331 = arith.constant 0 : index
    %c0_332 = arith.constant 0 : index
    %592 = vector.load %arg14[%c0_331, %c0_332] : memref<128x128xbf16, #tpu.memory_space<vmem>>, vector<128x128xbf16>
    %593 = arith.truncf %591 : vector<32x128xf32> to vector<32x128xbf16>
    %cst_333 = arith.constant dense<0.000000e+00> : vector<32x128xf32>
    %594 = tpu.matmul %593, %592, %cst_333 {dimension_numbers = #tpu.dot_dimension_numbers<[1], [0], [0], [1], [0, 0, 1, 1], [], []>} : vector<32x128xbf16>, vector<128x128xbf16>, vector<32x128xf32> -> vector<32x128xf32>
    %c3_334 = arith.constant 3 : index
    %c0_335 = arith.constant 0 : index
    %595 = vector.load %arg12[%c3_334, %c0_335] : memref<8x128xf32, #tpu.memory_space<vmem>>, vector<1x128xf32>
    %596 = vector.broadcast %595 : vector<1x128xf32> to vector<32x128xf32>
    %597 = arith.addf %594, %596 : vector<32x128xf32>
    %c0_336 = arith.constant 0 : index
    %c0_337 = arith.constant 0 : index
    %598 = vector.load %arg15[%c0_336, %c0_337] : memref<32x128xf32, #tpu.memory_space<vmem>>, vector<32x128xf32>
    tpu.vector_store %arg15[%c0_336, %c0_337], %597 {strides = array<i32>} : memref<32x128xf32, #tpu.memory_space<vmem>>, vector<32x128xf32>,
    return
  }
  func.func @transform_0(%arg0: i32) -> (i32, i32) {
    %c0_i32 = arith.constant 0 : i32
    %c0_i32_0 = arith.constant 0 : i32
    %c0_i32_1 = arith.constant 0 : i32
    return %c0_i32, %c0_i32_0 : i32, i32
  }
  func.func @transform_1(%arg0: i32) -> (i32, i32) {
    %c0_i32 = arith.constant 0 : i32
    %c0_i32_0 = arith.constant 0 : i32
    %c0_i32_1 = arith.constant 0 : i32
    return %c0_i32, %c0_i32_0 : i32, i32
  }
  func.func @transform_2(%arg0: i32) -> (i32, i32) {
    %c0_i32 = arith.constant 0 : i32
    %c0_i32_0 = arith.constant 0 : i32
    %c0_i32_1 = arith.constant 0 : i32
    return %c0_i32, %c0_i32_0 : i32, i32
  }
  func.func @transform_3(%arg0: i32) -> (i32, i32, i32) {
    %c0_i32 = arith.constant 0 : i32
    %c0_i32_0 = arith.constant 0 : i32
    %c0_i32_1 = arith.constant 0 : i32
    %c0_i32_2 = arith.constant 0 : i32
    return %c0_i32, %c0_i32_0, %c0_i32_1 : i32, i32, i32
  }
  func.func @transform_4(%arg0: i32) -> (i32, i32) {
    %c0_i32 = arith.constant 0 : i32
    %c0_i32_0 = arith.constant 0 : i32
    %c0_i32_1 = arith.constant 0 : i32
    return %c0_i32, %c0_i32_0 : i32, i32
  }
  func.func @transform_5(%arg0: i32) -> (i32, i32, i32) {
    %c0_i32 = arith.constant 0 : i32
    %c0_i32_0 = arith.constant 0 : i32
    %c0_i32_1 = arith.constant 0 : i32
    %c0_i32_2 = arith.constant 0 : i32
    return %c0_i32, %c0_i32_0, %c0_i32_1 : i32, i32, i32
  }
  func.func @transform_6(%arg0: i32) -> (i32, i32, i32) {
    %c0_i32 = arith.constant 0 : i32
    %c0_i32_0 = arith.constant 0 : i32
    %c0_i32_1 = arith.constant 0 : i32
    %c0_i32_2 = arith.constant 0 : i32
    return %c0_i32, %c0_i32_0, %c0_i32_1 : i32, i32, i32
  }
  func.func @transform_7(%arg0: i32) -> (i32, i32, i32) {
    %c0_i32 = arith.constant 0 : i32
    %c0_i32_0 = arith.constant 0 : i32
    %c0_i32_1 = arith.constant 0 : i32
    %c0_i32_2 = arith.constant 0 : i32
    return %c0_i32, %c0_i32_0, %c0_i32_1 : i32, i32, i32
  }
  func.func @transform_8(%arg0: i32) -> (i32, i32, i32) {
    %c0_i32 = arith.constant 0 : i32
    %c0_i32_0 = arith.constant 0 : i32
    %c0_i32_1 = arith.constant 0 : i32
    %c0_i32_2 = arith.constant 0 : i32
    return %c0_i32, %c0_i32_0, %c0_i32_1 : i32, i32, i32
  }
  func.func @transform_9(%arg0: i32) -> (i32, i32) {
    %c0_i32 = arith.constant 0 : i32
    %c0_i32_0 = arith.constant 0 : i32
    %c0_i32_1 = arith.constant 0 : i32
    return %c0_i32, %c0_i32_0 : i32, i32
  }
  func.func @transform_10(%arg0: i32) -> (i32, i32, i32) {
    %c0_i32 = arith.constant 0 : i32
    %c0_i32_0 = arith.constant 0 : i32
    %c0_i32_1 = arith.constant 0 : i32
    %c0_i32_2 = arith.constant 0 : i32
    return %c0_i32, %c0_i32_0, %c0_i32_1 : i32, i32, i32
  }
  func.func @transform_11(%arg0: i32) -> (i32, i32) {
    %c0_i32 = arith.constant 0 : i32
    %c0_i32_0 = arith.constant 0 : i32
    %c0_i32_1 = arith.constant 0 : i32
    return %c0_i32, %c0_i32_0 : i32, i32
  }
  func.func @transform_12(%arg0: i32) -> (i32, i32) {
    %c0_i32 = arith.constant 0 : i32
    %c0_i32_0 = arith.constant 0 : i32
    %c0_i32_1 = arith.constant 0 : i32
    return %c0_i32, %c0_i32_0 : i32, i32
  }
  func.func @transform_13(%arg0: i32) -> (i32, i32) {
    %c0_i32 = arith.constant 0 : i32
    %c0_i32_0 = arith.constant 0 : i32
    %c0_i32_1 = arith.constant 0 : i32
    return %c0_i32, %c0_i32_0 : i32, i32
  }
  func.func @transform_14(%arg0: i32) -> (i32, i32) {
    %c0_i32 = arith.constant 0 : i32
    %c0_i32_0 = arith.constant 0 : i32
    %c0_i32_1 = arith.constant 0 : i32
    return %c0_i32, %c0_i32_0 : i32, i32
  }
}

</mosaic_0001>

<bundles_post_ra>
// kernel: forward.1
= control target key start
LH: loop header
LB: loop body
LE: loop exit
PB: predicated region body
PF: predicated region fallthrough
CT: control target
= control target key end

     0   :  { %v5349_v0 = vmov 0   ;;  %vm191_vm0 = vcmask 523264   ;;  %vm253_vm1 = vcmask 261120   ;;  %s5350_s22 = smov 96   ;;  %s5351_s23 = smov 64   ;;  %vm522_vm2 = vcmask 130048   ;;  %s6327_s4 = inlined_call_operand.vmem [shape: bf16[192,32], index: 4, kind: input, shape index: {}]   ;;  %s6328_s0 = inlined_call_operand.vmem [shape: bf16[32,192], index: 0, kind: input, shape index: {}]   ;;  %s6329_s1 = inlined_call_operand.vmem [shape: f32[32,32], index: 1, kind: input, shape index: {}]   ;;  %s6330_s5 = inlined_call_operand.vmem [shape: bf16[3,32,96], index: 5, kind: input, shape index: {}]   ;;  %s6331_s10 = inlined_call_operand.vmem [shape: f32[3,8,96], index: 10, kind: input, shape index: {}]   ;;  %s6332_s3 = inlined_call_operand.vmem [shape: f32[2,32,32], index: 3, kind: input, shape index: {}]   ;;  %s6333_s6 = inlined_call_operand.vmem [shape: bf16[3,32,32], index: 6, kind: input, shape index: {}]   ;;  %s6334_s7 = inlined_call_operand.vmem [shape: bf16[3,32,64], index: 7, kind: input, shape index: {}]   ;;  %s6335_s8 = inlined_call_operand.vmem [shape: bf16[3,64,32], index: 8, kind: input, shape index: {}]   ;;  %s6336_s9 = inlined_call_operand.vmem [shape: bf16[32,32], index: 9, kind: input, shape index: {}]   ;;  %s6337_s2 = inlined_call_operand.vmem [shape: f32[32,32], index: 2, kind: input, shape index: {}]   ;;  %s6338_s12 = inlined_call_operand.vmem [shape: bf16[32,128], index: 12, kind: input, shape index: {}]   ;;  %s6339_s13 = inlined_call_operand.vmem [shape: bf16[128,128], index: 13, kind: input, shape index: {}]   ;;  %s6340_s11 = inlined_call_operand.vmem [shape: f32[8,128], index: 11, kind: input, shape index: {}]   ;;  %s6341_s14 = inlined_call_operand.vmem [shape: f32[32,128], index: 14, kind: output, shape index: {}]  }
   0x1   :  { %198 = vmatprep.subr.bf16.mxu0 %v5349_v0  ;;  %v5109_v1 = vld [vmem:[%s6327_s4 + $0x38] sm:$0xff]   ;;  %v5110_v2 = vld [vmem:[%s6327_s4 + $0x30] sm:$0xff]   ;;  %v5111_v3 = vld [vmem:[%s6327_s4 + $0x28] sm:$0xff]   ;;  %s5352_s20 = smov 112   ;;  %s5354_s21 = smov 48  }
   0x2   :  { %199 = vmatpush1.bf16.msra.mxu0 %v5109_v1  ;;  %v5112_v4 = vld [vmem:[%s6327_s4 + $0x20] sm:$0xff]   ;;  %v5113_v6 = vld [vmem:[%s6327_s4 + $0x18] sm:$0xff]   ;;  %v5114_v7 = vld [vmem:[%s6327_s4 + $0x10] sm:$0xff]  }
   0x3   :  { %200 = vmatprep.subr.bf16.mxu0 %v5349_v0  ;;  %v5123_v5 = vld [vmem:[%s6328_s0 + $0x4] ss:$8 sps:$4 sm:$0xff]   ;;  %v5117_v10 = vld [vmem:[%s6327_s4 + $0x58] sm:$0xff]   ;;  %v5118_v11 = vld [vmem:[%s6327_s4 + $0x50] sm:$0xff]  }
   0x4   :  { %4312 = vmatprep.mubr.msk.bf16.mxu0 %vm191_vm0, %v5123_v5  ;;  %v5115_v8 = vld [vmem:[%s6327_s4 + $0x8] sm:$0xff]   ;;  %v5116_v9 = vld [vmem:[%s6327_s4] sm:$0xff]   ;;  %v5124_v15 = vld [vmem:[%s6328_s0 + $0x14] ss:$8 sps:$4 sm:$0xff]  }
   0x5   :  { %v5119_v12 = vld [vmem:[%s6327_s4 + $0x48] sm:$0xff]   ;;  %v5120_v13 = vld [vmem:[%s6327_s4 + $0x40] sm:$0xff]   ;;  %v5126_v16 = vld [vmem:[%s6328_s0 + $0x10] ss:$8 sps:$4 sm:$0xff]  }
   0x6   :  { %201 = vmatpush1.bf16.msra.mxu0 %v5110_v2  ;;  %v5121_v14 = vld [vmem:[%s6328_s0] ss:$8 sps:$4 sm:$0xff]   ;;  %v99_v26 = vld [vmem:[%s6329_s1 + $0x10] sm:$0xff]  ;;  %v100_v31 = vld [vmem:[%s6329_s1 + $0x18] sm:$0xff] }
   0x7   :  { %202 = vmatprep.subr.bf16.mxu0 %v5349_v0  ;;  %v97_v17 = vld [vmem:[%s6329_s1] sm:$0xff]  ;;  %v98_v21 = vld [vmem:[%s6329_s1 + $0x8] sm:$0xff]  ;;  %s5353_s1 = smov 80  }
   0x8   :  { %v5512_v37 = vld [vmem:[%s6330_s5 + $0x8] sm:$0xff]   ;;  %v5519_v38 = vld [vmem:[%s6330_s5] sm:$0xff]  }
   0x9   :  { %4718 = vmatprep.subr.bf16.mxu1 %v5512_v37  ;;  %v5542_v59 = vld [vmem:[%s6331_s10 + $0x6] ss:$0 sm:$0xff] }
   0xa   :  { %203 = vmatpush1.bf16.msra.mxu0 %v5111_v3  ;;  %4719 = vmatpush3.bf16.msra.mxu1 %v5512_v37 }
   0xb   :  { %204 = vmatprep.subr.bf16.mxu0 %v5349_v0  ;;  %4720 = vmatprep.subr.bf16.mxu1 %v5519_v38 }
   0xe   :  { %205 = vmatpush1.bf16.msra.mxu0 %v5112_v4  ;;  %4721 = vmatpush3.bf16.msra.mxu1 %v5519_v38 }
   0xf   :  { %206 = vmatprep.subr.bf16.mxu0 %v5349_v0 }
  0x12   :  { %207 = vmatpush1.bf16.msra.mxu0 %v5113_v6 }
  0x13   :  { %208 = vmatprep.subr.bf16.mxu0 %v5349_v0 }
  0x16   :  { %209 = vmatpush1.bf16.msra.mxu0 %v5114_v7 }
  0x17   :  { %210 = vmatprep.subr.bf16.mxu0 %v5349_v0 }
  0x1a   :  { %211 = vmatpush1.bf16.msra.mxu0 %v5115_v8 }
  0x1b   :  { %212 = vmatprep.subr.bf16.mxu0 %v5349_v0 }
  0x1e   :  { %213 = vmatpush1.bf16.msra.mxu0 %v5116_v9 }
  0x1f   :  { %222 = vmatprep.subr.bf16.mxu0 %v5349_v0 }
  0x22   :  { %223 = vmatpush2.bf16.msra.mxu0 %v5117_v10 }
  0x23   :  { %224 = vmatprep.subr.bf16.mxu0 %v5349_v0 }
  0x26   :  { %225 = vmatpush2.bf16.msra.mxu0 %v5118_v11  ;;  %v4314_v11 = vld [vmem:[%s6331_s10] ss:$0 sm:$0xff] }
  0x27   :  { %226 = vmatprep.subr.bf16.mxu0 %v5349_v0 }
  0x2a   :  { %227 = vmatpush2.bf16.msra.mxu0 %v5119_v12 }
  0x2b   :  { %228 = vmatprep.subr.bf16.mxu0 %v5349_v0 }
  0x2e   :  { %229 = vmatpush2.bf16.msra.mxu0 %v5120_v13 }
  0x31   :  { %231 = vmatmul.mubr.bf16.vlgmr.msra.gmra.mxu0 %v5121_v14 }
  0x32   :  { %4313 = vmatprep.mubr.msk.bf16.mxu0 %vm191_vm0, %v5124_v15  ;;  %v4315_v15 = vld [vmem:[%s6331_s10 + $0x1] ss:$0 sm:$0xff] }
  0x39   :  { %239 = vmatmul.mubr.bf16.gmra.mxu0 %v5126_v16 }
  0xf1   :  { %v232_v18 = vpop.f32.mrf.mxu0 }
  0xf2   :  { %v5484_v19 = vadd.f32 %v232_v18, %v97_v17 }
  0xf3   :  { %v234_v20 = vpop.f32.mrf.mxu0 }
  0xf4   :  { %v254_v22 = vsel %vm253_vm1, %v5484_v19, 0.0 }
  0xf5   :  { %v235_v23 = vpop.f32.mrf.mxu0  ;;  %255 = vadd.xlane.f32.xlu0 %v254_v22 }
  0xf6   :  { %v5491_v24 = vadd.f32 %v235_v23, %v98_v21 }
  0xf7   :  { %v237_v25 = vpop.f32.mrf.mxu0 }
  0xf8   :  { %v257_v27 = vsel %vm253_vm1, %v5491_v24, 0.0 }
  0xf9   :  { %v240_v28 = vpop.f32.mrf.mxu0  ;;  %258 = vadd.xlane.f32.xlu0 %v257_v27 }
  0xfa   :  { %v5498_v29 = vadd.f32 %v240_v28, %v99_v26 }
  0xfb   :  { %v242_v30 = vpop.f32.mrf.mxu0 }
  0xfc   :  { %v260_v32 = vsel %vm253_vm1, %v5498_v29, 0.0 }
  0xfd   :  { %v243_v33 = vpop.f32.mrf.mxu0  ;;  %261 = vadd.xlane.f32.xlu1 %v260_v32 }
  0xfe   :  { %v5505_v34 = vadd.f32 %v243_v33, %v100_v31 }
  0xff   :  { %v245_v35 = vpop.f32.mrf.mxu0 }
 0x100   :  { %v263_v36 = vsel %vm253_vm1, %v5505_v34, 0.0 }
 0x101   :  { %264 = vadd.xlane.f32.xlu1 %v263_v36 }
 0x17e   :  { %v256_v39 = vpop.xlane.xlu0 %255 }
 0x17f   :  { %v267_v40 = vmul.f32 0.03125, %v256_v39 }
 0x181   :  { %v271_v41 = vsub.f32 %v5484_v19, %v267_v40 }
 0x182   :  { %v259_v42 = vpop.xlane.xlu0 %258 }
 0x183   :  { %v268_v43 = vmul.f32 0.03125, %v259_v42  ;;  %v275_v44 = vmul.f32 %v271_v41, %v271_v41 }
 0x185   :  { %v272_v45 = vsub.f32 %v5491_v24, %v268_v43  ;;  %v279_v46 = vsel %vm253_vm1, %v275_v44, 0.0 }
 0x186   :  { %v262_v47 = vpop.xlane.xlu1 %261  ;;  %280 = vadd.xlane.f32.xlu0 %v279_v46 }
 0x187   :  { %v269_v48 = vmul.f32 0.03125, %v262_v47  ;;  %v276_v49 = vmul.f32 %v272_v45, %v272_v45 }
 0x189   :  { %v273_v50 = vsub.f32 %v5498_v29, %v269_v48  ;;  %v282_v51 = vsel %vm253_vm1, %v276_v49, 0.0 }
 0x18a   :  { %v265_v52 = vpop.xlane.xlu1 %264  ;;  %283 = vadd.xlane.f32.xlu1 %v282_v51 }
 0x18b   :  { %v270_v53 = vmul.f32 0.03125, %v265_v52  ;;  %v277_v54 = vmul.f32 %v273_v50, %v273_v50 }
 0x18d   :  { %v274_v55 = vsub.f32 %v5505_v34, %v270_v53  ;;  %v285_v56 = vsel %vm253_vm1, %v277_v54, 0.0 }
 0x18e   :  { %286 = vadd.xlane.f32.xlu0 %v285_v56 }
 0x18f   :  { %v278_v57 = vmul.f32 %v274_v55, %v274_v55 }
 0x191   :  { %v288_v58 = vsel %vm253_vm1, %v278_v57, 0.0 }
 0x192   :  { %289 = vadd.xlane.f32.xlu1 %v288_v58 }
 0x1a3   :  { %401 = vrot.lane.b32.xlu1 %v5519_v38, %s5350_s22 }
 0x1a4   :  { %403 = vrot.lane.b32.xlu0 %v5512_v37, %s5350_s22 }
 0x1a7   :  { %462 = vrot.lane.b32.xlu1 %v5512_v37, %s5351_s23 }
 0x1a8   :  { %460 = vrot.lane.b32.xlu0 %v5519_v38, %s5351_s23 }
 0x1ab   :  { %408 = vrot.lane.b32.xlu1 %v5542_v59, %s5350_s22 }
 0x20f   :  { %v281_v60 = vpop.xlane.xlu0 %280 }
 0x210   :  { %v291_v61 = vmul.f32 0.03125, %v281_v60 }
 0x212   :  { %v295_v62 = vadd.f32 1e-05, %v291_v61 }
 0x213   :  { %v284_v63 = vpop.xlane.xlu1 %283 }
 0x214   :  { %5169 = vrsqrt.f32 %v295_v62  ;;  %v292_v0 = vmul.f32 0.03125, %v284_v63 }
 0x216   :  { %v296_v1 = vadd.f32 1e-05, %v292_v0 }
 0x217   :  { %v287_v2 = vpop.xlane.xlu0 %286 }
 0x218   :  { %5171 = vrsqrt.f32 %v296_v1  ;;  %v293_v3 = vmul.f32 0.03125, %v287_v2 }
 0x21a   :  { %v297_v4 = vadd.f32 1e-05, %v293_v3  ;;  %v5581_v3 = vld [vmem:[%s6332_s3 + $0x10] sm:$0xff] }
 0x21b   :  { %v290_v5 = vpop.xlane.xlu1 %289  ;;  %v404_v6 = vpop.permute.xlu0 %403 }
 0x21c   :  { %5173 = vrsqrt.f32 %v297_v4  ;;  %v294_v7 = vmul.f32 0.03125, %v290_v5  ;;  %4726 = vmatprep.subr.bf16.mxu1 %v404_v6 }
 0x21e   :  { %v298_v8 = vadd.f32 1e-05, %v294_v7 }
 0x21f   :  { %v402_v31 = vpop.permute.xlu1 %401  ;;  %v461_v35 = vpop.permute.xlu0 %460 }
 0x220   :  { %5175 = vrsqrt.f32 %v298_v8 }
 0x221   :  { %v5170_v9 = vpop.eup %5169 }
 0x222   :  { %v303_v10 = vmul.f32 %v5170_v9, %v271_v41 }
 0x223   :  { %v463_v33 = vpop.permute.xlu1 %462 }
 0x224   :  { %v311_v13 = vmul.f32 %v4314_v11, %v303_v10 }
 0x225   :  { %v5172_v12 = vpop.eup %5171 }
 0x226   :  { %v304_v14 = vmul.f32 %v5172_v12, %v272_v45  ;;  %v319_v20 = vadd.f32 %v4315_v15, %v311_v13  ;;  %v5594_v13 = vld [vmem:[%s6332_s3 + $0x8] sm:$0xff] }
 0x227   :  { %v409_v46 = vpop.permute.xlu1 %408 }
 0x228   :  { %v312_v16 = vmul.f32 %v4314_v11, %v304_v14 }
 0x229   :  { %v5174_v17 = vpop.eup %5173 }
 0x22a   :  { %v305_v18 = vmul.f32 %v5174_v17, %v273_v50  ;;  %v320_v21 = vadd.f32 %v4315_v15, %v312_v16  ;;  %v5600_v17 = vld [vmem:[%s6332_s3 + $0x18] sm:$0xff] }
 0x22c   :  { %v5552_v22 = vpack.c.bf16 %v320_v21, %v319_v20  ;;  %v313_v25 = vmul.f32 %v4314_v11, %v305_v18 }
 0x22d   :  { %v5176_v23 = vpop.eup %5175 }
 0x22e   :  { %v306_v26 = vmul.f32 %v5176_v23, %v274_v55  ;;  %4722 = vmatprep.mubr.msk.bf16.mxu1 %vm253_vm1, %v5552_v22  ;;  %v321_v28 = vadd.f32 %v4315_v15, %v313_v25 }
 0x230   :  { %v314_v27 = vmul.f32 %v4314_v11, %v306_v26 }
 0x232   :  { %v322_v30 = vadd.f32 %v4315_v15, %v314_v27 }
 0x234   :  { %v5556_v32 = vpack.c.bf16 %v322_v30, %v321_v28 }
 0x236   :  { %4723 = vmatmul.mubr.msk.bf16.vlgmr.msra.gmra.mxu1 %vm253_vm1, %v5556_v32 }
 0x237   :  { %4727 = vmatpush3.bf16.msra.mxu1 %v404_v6  ;;  %4730 = vmatprep.mubr.msk.bf16.mxu1 %vm253_vm1, %v5552_v22  ;;  %v5586_v6 = vld [vmem:[%s6332_s3] sm:$0xff] }
 0x238   :  { %4728 = vmatprep.subr.bf16.mxu1 %v402_v31 }
 0x23b   :  { %4729 = vmatpush3.bf16.msra.mxu1 %v402_v31 }
 0x23c   :  { %4734 = vmatprep.subr.bf16.mxu1 %v463_v33 }
 0x23e   :  { %4731 = vmatmul.mubr.msk.bf16.vlgmr.msra.gmra.mxu1 %vm253_vm1, %v5556_v32 }
 0x23f   :  { %4735 = vmatpush3.bf16.msra.mxu1 %v463_v33  ;;  %4738 = vmatprep.mubr.msk.bf16.mxu1 %vm253_vm1, %v5552_v22 }
 0x240   :  { %4736 = vmatprep.subr.bf16.mxu1 %v461_v35 }
 0x243   :  { %4737 = vmatpush3.bf16.msra.mxu1 %v461_v35 }
 0x246   :  { %4739 = vmatmul.mubr.msk.bf16.vlgmr.msra.gmra.mxu1 %vm253_vm1, %v5556_v32 }
 0x2f6   :  { %v4724_v36 = vpop.f32.mrf.mxu1 }
 0x2f7   :  { %v395_v60 = vadd.f32 %v4724_v36, %v5542_v59 }
 0x2f8   :  { %v386_v39 = vpop.f32.mrf.mxu1 }
 0x2f9   :  { %v387_v42 = vadd.f32 %v5542_v59, %v386_v39 }
 0x2fa   :  { %v4725_v40 = vpop.f32.mrf.mxu1 }
 0x2fb   :  { %v398_v58 = vadd.f32 %v4725_v40, %v5542_v59 }
 0x2fc   :  { %v389_v41 = vpop.f32.mrf.mxu1 }
 0x2fd   :  { %v390_v43 = vadd.f32 %v5542_v59, %v389_v41  ;;  %v519_v61 = vpack.c.bf16 %v398_v58, %v395_v60 }
 0x2fe   :  { %v4732_v44 = vpop.f32.mrf.mxu1 }
 0x2ff   :  { %v518_v45 = vpack.c.bf16 %v390_v43, %v387_v42  ;;  %v454_v49 = vadd.f32 %v4732_v44, %v409_v46 }
 0x300   :  { %v445_v47 = vpop.f32.mrf.mxu1 }
 0x301   :  { %4746 = vmatprep.mubr.msk.bf16.mxu1 %vm522_vm2, %v518_v45  ;;  %v446_v52 = vadd.f32 %v445_v47, %v409_v46 }
 0x302   :  { %v4733_v48 = vpop.f32.mrf.mxu1 }
 0x303   :  { %v457_v50 = vadd.f32 %v4733_v48, %v409_v46 }
 0x304   :  { %v448_v51 = vpop.f32.mrf.mxu1 }
 0x305   :  { %v521_v53 = vpack.c.bf16 %v457_v50, %v454_v49  ;;  %v449_v54 = vadd.f32 %v448_v51, %v409_v46 }
 0x306   :  { %v4740_v62 = vpop.f32.mrf.mxu1 }
 0x307   :  { %v520_v55 = vpack.c.bf16 %v449_v54, %v446_v52  ;;  %5090 = vmatprep.subr.msk.bf16.mxu1 %vm522_vm2, %v521_v53  ;;  %v533_v56 = vsel %vm522_vm2, %v521_v53, 0 }
 0x308   :  { %4743 = vmatpush3.bf16.xpose.msra.mxu1 %v533_v56  ;;  %v503_v63 = vpop.f32.mrf.mxu1 }
 0x309   :  { %5091 = vmatprep.subr.msk.bf16.mxu1 %vm522_vm2, %v520_v55  ;;  %v530_v57 = vsel %vm522_vm2, %v520_v55, 0 }
 0x30a   :  { %v4741_v0 = vpop.f32.mrf.mxu1 }
 0x30c   :  { %v506_v1 = vpop.f32.mrf.mxu1 }
 0x310   :  { %4745 = vmatpush3.bf16.xpose.msra.mxu1 %v530_v57 }
 0x317   :  { %4747 = vmatmul.mubr.msk.bf16.vlgmr.msra.gmra.mxu1 %vm522_vm2, %v519_v61 }
 0x3d7   :  { %v4748_v2 = vpop.f32.mrf.mxu1 }
 0x3d8   :  { %v586_v4 = vmul.f32 0.25, %v4748_v2 }
 0x3d9   :  { %v569_v5 = vpop.f32.mrf.mxu1 }
 0x3da   :  { %v584_v7 = vmul.f32 0.25, %v569_v5  ;;  %v590_v8 = vadd.f32 %v586_v4, %v5581_v3 }
 0x3db   :  { %v4749_v9 = vpop.f32.mrf.mxu1 }
 0x3dc   :  { %v598_v10 = vsel %vm253_vm1, %v590_v8, -inf  ;;  %v588_v11 = vadd.f32 %v584_v7, %v5586_v6  ;;  %v587_v14 = vmul.f32 0.25, %v4749_v9 }
 0x3dd   :  { %599 = vmax.xlane.f32.xlu0 %v598_v10  ;;  %v572_v12 = vpop.f32.mrf.mxu1 }
 0x3de   :  { %v585_v15 = vmul.f32 0.25, %v572_v12  ;;  %v592_v16 = vsel %vm253_vm1, %v588_v11, -inf  ;;  %v591_v21 = vadd.f32 %v587_v14, %v5600_v17 }
 0x3df   :  { %593 = vmax.xlane.f32.xlu1 %v592_v16 }
 0x3e0   :  { %v589_v18 = vadd.f32 %v585_v15, %v5594_v13  ;;  %v601_v23 = vsel %vm253_vm1, %v591_v21, -inf }
 0x3e2   :  { %v595_v20 = vsel %vm253_vm1, %v589_v18, -inf }
 0x3e3   :  { %596 = vmax.xlane.f32.xlu0 %v595_v20 }
 0x3e7   :  { %602 = vmax.xlane.f32.xlu0 %v601_v23 }
 0x3f0   :  { %466 = vrot.lane.b32.xlu1 %v5542_v59, %s5351_s23 }
 0x466   :  { %v600_v25 = vpop.xlane.xlu0 %599 }
 0x467   :  { %v606_v26 = vsub.f32 %v590_v8, %v600_v25 }
 0x468   :  { %v594_v27 = vpop.xlane.xlu1 %593 }
 0x469   :  { %v612_v28 = vmul.f32 1.442695, %v606_v26  ;;  %v604_v30 = vsub.f32 %v588_v11, %v594_v27 }
 0x46b   :  { %5177 = vpow2.f32 %v612_v28  ;;  %v608_v31 = vmul.f32 1.442695, %v604_v30 }
 0x46c   :  { %v467_v33 = vpop.permute.xlu1 %466  ;;  %v597_v35 = vpop.xlane.xlu0 %596 }
 0x46d   :  { %5179 = vpow2.f32 %v608_v31  ;;  %v512_v36 = vadd.f32 %v4740_v62, %v467_v33  ;;  %v515_v39 = vadd.f32 %v4741_v0, %v467_v33  ;;  %v504_v40 = vadd.f32 %v503_v63, %v467_v33 }
 0x46e   :  { %v507_v41 = vadd.f32 %v506_v1, %v467_v33  ;;  %v605_v42 = vsub.f32 %v589_v18, %v597_v35 }
 0x46f   :  { %v639_v43 = vpack.c.bf16 %v515_v39, %v512_v36 }
 0x470   :  { %v603_v44 = vpop.xlane.xlu0 %602  ;;  %v638_v46 = vpack.c.bf16 %v507_v41, %v504_v40  ;;  %v610_v47 = vmul.f32 1.442695, %v605_v42 }
 0x471   :  { %v607_v45 = vsub.f32 %v591_v21, %v603_v44  ;;  %4750 = vmatprep.subr.bf16.mxu1 %v639_v43 }
 0x472   :  { %4751 = vmatpush3.bf16.msra.mxu1 %v639_v43 }
 0x473   :  { %v614_v48 = vmul.f32 1.442695, %v607_v45  ;;  %4752 = vmatprep.subr.bf16.mxu1 %v638_v46 }
 0x475   :  { %5181 = vpow2.f32 %v614_v48 }
 0x476   :  { %4753 = vmatpush3.bf16.msra.mxu1 %v638_v46  ;;  %5183 = vpow2.f32 %v610_v47  ;;  %v5129_v46 = vld [vmem:[%s6333_s6] sm:$0xff]  }
 0x478   :  { %v5178_v49 = vpop.eup %5177 }
 0x479   :  { %v622_v50 = vsel %vm253_vm1, %v5178_v49, 0.0 }
 0x47a   :  { %v5180_v51 = vpop.eup %5179  ;;  %623 = vadd.xlane.f32.xlu1 %v622_v50 }
 0x47b   :  { %v616_v52 = vsel %vm253_vm1, %v5180_v51, 0.0 }
 0x47e   :  { %617 = vadd.xlane.f32.xlu1 %v616_v52 }
 0x482   :  { %v5182_v53 = vpop.eup %5181 }
 0x483   :  { %v625_v54 = vsel %vm253_vm1, %v5182_v53, 0.0  ;;  %v5184_v55 = vpop.eup %5183 }
 0x484   :  { %626 = vadd.xlane.f32.xlu0 %v625_v54  ;;  %v619_v56 = vsel %vm253_vm1, %v5184_v55, 0.0 }
 0x488   :  { %620 = vadd.xlane.f32.xlu0 %v619_v56 }
 0x48f   :  { %699 = vrot.lane.b32.xlu1 %v5519_v38, %s5352_s20 }
 0x493   :  { %759 = vrot.lane.b32.xlu1 %v5512_v37, %s5353_s1 }
 0x497   :  { %757 = vrot.lane.b32.xlu1 %v5519_v38, %s5353_s1 }
 0x49b   :  { %705 = vrot.lane.b32.xlu1 %v5542_v59, %s5352_s20 }
 0x49e   :  { %701 = vrot.lane.b32.xlu0 %v5512_v37, %s5352_s20 }
 0x49f   :  { %815 = vrot.lane.b32.xlu1 %v5519_v38, %s5354_s21 }
 0x4a2   :  { %763 = vrot.lane.b32.xlu0 %v5542_v59, %s5353_s1 }
 0x4a6   :  { %817 = vrot.lane.b32.xlu0 %v5512_v37, %s5354_s21 }
 0x503   :  { %v624_v57 = vpop.xlane.xlu1 %623 }
 0x507   :  { %v618_v58 = vpop.xlane.xlu1 %617 }
 0x50b   :  { %v700_v0 = vpop.permute.xlu1 %699 }
 0x50d   :  { %v627_v60 = vpop.xlane.xlu0 %626 }
 0x50e   :  { %5185 = vrcp.f32 %v627_v60 }
 0x50f   :  { %5187 = vrcp.f32 %v618_v58  ;;  %v760_v9 = vpop.permute.xlu1 %759 }
 0x510   :  { %5189 = vrcp.f32 %v624_v57 }
 0x511   :  { %v621_v61 = vpop.xlane.xlu0 %620 }
 0x512   :  { %5191 = vrcp.f32 %v621_v61 }
 0x513   :  { %v758_v11 = vpop.permute.xlu1 %757 }
 0x515   :  { %v702_v62 = vpop.permute.xlu0 %701 }
 0x516   :  { %4758 = vmatprep.subr.bf16.mxu1 %v702_v62 }
 0x517   :  { %v706_v14 = vpop.permute.xlu1 %705 }
 0x519   :  { %v764_v12 = vpop.permute.xlu0 %763 }
 0x51b   :  { %v5186_v63 = vpop.eup %5185  ;;  %v816_v16 = vpop.permute.xlu1 %815 }
 0x51c   :  { %v5188_v1 = vpop.eup %5187  ;;  %v635_v4 = vmul.f32 %v5186_v63, %v5182_v53 }
 0x51d   :  { %v5190_v38 = vpop.eup %5189  ;;  %v632_v5 = vmul.f32 %v5188_v1, %v5180_v51  ;;  %v818_v15 = vpop.permute.xlu0 %817 }
 0x51e   :  { %v634_v8 = vmul.f32 %v5190_v38, %v5178_v49 }
 0x51f   :  { %v5192_v2 = vpop.eup %5191 }
 0x520   :  { %v633_v7 = vmul.f32 %v5192_v2, %v5184_v55  ;;  %v637_v10 = vpack.c.bf16 %v635_v4, %v634_v8 }
 0x522   :  { %v636_v37 = vpack.c.bf16 %v633_v7, %v632_v5 }
 0x524   :  { %4754 = vmatprep.mubr.msk.bf16.mxu1 %vm253_vm1, %v636_v37 }
 0x525   :  { %4755 = vmatmul.mubr.msk.bf16.vlgmr.msra.gmra.mxu1 %vm253_vm1, %v637_v10 }
 0x526   :  { %4759 = vmatpush3.bf16.msra.mxu1 %v702_v62  ;;  %4762 = vmatprep.mubr.msk.bf16.mxu1 %vm253_vm1, %v5552_v22 }
 0x527   :  { %4760 = vmatprep.subr.bf16.mxu1 %v700_v0 }
 0x52a   :  { %4761 = vmatpush3.bf16.msra.mxu1 %v700_v0 }
 0x52b   :  { %4766 = vmatprep.subr.bf16.mxu1 %v760_v9 }
 0x52d   :  { %4763 = vmatmul.mubr.msk.bf16.vlgmr.msra.gmra.mxu1 %vm253_vm1, %v5556_v32 }
 0x52e   :  { %4767 = vmatpush3.bf16.msra.mxu1 %v760_v9  ;;  %4770 = vmatprep.mubr.msk.bf16.mxu1 %vm253_vm1, %v5552_v22 }
 0x52f   :  { %4768 = vmatprep.subr.bf16.mxu1 %v758_v11 }
 0x532   :  { %4769 = vmatpush3.bf16.msra.mxu1 %v758_v11 }
 0x533   :  { %4774 = vmatprep.subr.bf16.mxu1 %v818_v15 }
 0x535   :  { %4771 = vmatmul.mubr.msk.bf16.vlgmr.msra.gmra.mxu1 %vm253_vm1, %v5556_v32 }
 0x536   :  { %4775 = vmatpush3.bf16.msra.mxu1 %v818_v15  ;;  %4778 = vmatprep.mubr.msk.bf16.mxu1 %vm253_vm1, %v5552_v22 }
 0x537   :  { %4776 = vmatprep.subr.bf16.mxu1 %v816_v16 }
 0x53a   :  { %4777 = vmatpush3.bf16.msra.mxu1 %v816_v16 }
 0x53d   :  { %4779 = vmatmul.mubr.msk.bf16.vlgmr.msra.gmra.mxu1 %vm253_vm1, %v5556_v32 }
 0x5e5   :  { %v4756_v18 = vpop.f32.mrf.mxu1 }
 0x5e7   :  { %v680_v20 = vpop.f32.mrf.mxu1 }
 0x5e9   :  { %v4757_v21 = vpop.f32.mrf.mxu1 }
 0x5ea   :  { %v696_v52 = vpack.c.bf16 %v4757_v21, %v4756_v18 }
 0x5eb   :  { %v683_v23 = vpop.f32.mrf.mxu1 }
 0x5ec   :  { %v695_v51 = vpack.c.bf16 %v683_v23, %v680_v20 }
 0x5ed   :  { %v4764_v25 = vpop.f32.mrf.mxu1 }
 0x5ee   :  { %v751_v49 = vadd.f32 %v4764_v25, %v706_v14 }
 0x5ef   :  { %v742_v26 = vpop.f32.mrf.mxu1 }
 0x5f0   :  { %v743_v30 = vadd.f32 %v742_v26, %v706_v14 }
 0x5f1   :  { %v4765_v27 = vpop.f32.mrf.mxu1 }
 0x5f2   :  { %v754_v48 = vadd.f32 %v4765_v27, %v706_v14 }
 0x5f3   :  { %v745_v28 = vpop.f32.mrf.mxu1 }
 0x5f4   :  { %v746_v31 = vadd.f32 %v745_v28, %v706_v14  ;;  %v874_v50 = vpack.c.bf16 %v754_v48, %v751_v49 }
 0x5f5   :  { %v4772_v33 = vpop.f32.mrf.mxu1 }
 0x5f6   :  { %v873_v35 = vpack.c.bf16 %v746_v31, %v743_v30  ;;  %v809_v39 = vadd.f32 %v4772_v33, %v764_v12 }
 0x5f7   :  { %v800_v36 = vpop.f32.mrf.mxu1 }
 0x5f8   :  { %4786 = vmatprep.mubr.msk.bf16.mxu0 %vm522_vm2, %v873_v35  ;;  %v801_v32 = vadd.f32 %v800_v36, %v764_v12 }
 0x5f9   :  { %v4773_v22 = vpop.f32.mrf.mxu1 }
 0x5fa   :  { %v812_v40 = vadd.f32 %v4773_v22, %v764_v12 }
 0x5fb   :  { %v803_v41 = vpop.f32.mrf.mxu1 }
 0x5fc   :  { %v876_v42 = vpack.c.bf16 %v812_v40, %v809_v39  ;;  %v804_v43 = vadd.f32 %v803_v41, %v764_v12 }
 0x5fd   :  { %v4780_v27 = vpop.f32.mrf.mxu1 }
 0x5fe   :  { %v875_v44 = vpack.c.bf16 %v804_v43, %v801_v32  ;;  %5092 = vmatprep.subr.msk.bf16.mxu0 %vm522_vm2, %v876_v42  ;;  %v887_v45 = vsel %vm522_vm2, %v876_v42, 0 }
 0x5ff   :  { %4783 = vmatpush3.bf16.xpose.msra.mxu0 %v887_v45  ;;  %v858_v30 = vpop.f32.mrf.mxu1 }
 0x600   :  { %5093 = vmatprep.subr.msk.bf16.mxu0 %vm522_vm2, %v875_v44  ;;  %v884_v47 = vsel %vm522_vm2, %v875_v44, 0 }
 0x601   :  { %v4781_v35 = vpop.f32.mrf.mxu1 }
 0x603   :  { %v861_v22 = vpop.f32.mrf.mxu1 }
 0x607   :  { %4785 = vmatpush3.bf16.xpose.msra.mxu0 %v884_v47 }
 0x608   :  { %4804 = vmatprep.subr.bf16.mxu0 %v5129_v46 }
 0x60e   :  { %4787 = vmatmul.mubr.msk.bf16.vlgmr.msra.gmra.mxu0 %vm522_vm2, %v874_v50 }
 0x60f   :  { %4806 = vmatprep.mubr.msk.bf16.mxu0 %vm522_vm2, %v695_v51  ;;  %4805 = vmatpush3.bf16.msra.mxu0 %v5129_v46 }
 0x616   :  { %4807 = vmatmul.mubr.msk.bf16.vlgmr.msra.gmra.mxu0 %vm522_vm2, %v696_v52 }
 0x6ce   :  { %v4788_v53 = vpop.f32.mrf.mxu0 }
 0x6cf   :  { %v940_v55 = vmul.f32 0.25, %v4788_v53 }
 0x6d0   :  { %v923_v54 = vpop.f32.mrf.mxu0 }
 0x6d1   :  { %v938_v56 = vmul.f32 0.25, %v923_v54  ;;  %v944_v0 = vadd.f32 %v940_v55, %v5581_v3  ;;  %v5130_v54 = vld [vmem:[%s6333_s6 + $0x8] sm:$0xff]  }
 0x6d2   :  { %v4789_v57 = vpop.f32.mrf.mxu0 }
 0x6d3   :  { %v942_v58 = vadd.f32 %v938_v56, %v5586_v6  ;;  %v941_v61 = vmul.f32 0.25, %v4789_v57  ;;  %v952_v38 = vsel %vm253_vm1, %v944_v0, -inf }
 0x6d4   :  { %v926_v60 = vpop.f32.mrf.mxu0 }
 0x6d5   :  { %v939_v62 = vmul.f32 0.25, %v926_v60  ;;  %v946_v63 = vsel %vm253_vm1, %v942_v58, -inf  ;;  %v945_v4 = vadd.f32 %v941_v61, %v5600_v17 }
 0x6d6   :  { %947 = vmax.xlane.f32.xlu0 %v946_v63 }
 0x6d7   :  { %v943_v1 = vadd.f32 %v939_v62, %v5594_v13  ;;  %v955_v6 = vsel %vm253_vm1, %v945_v4, -inf  ;;  %v4808_v62 = vpop.f32.mrf.mxu0 }
 0x6d9   :  { %v949_v2 = vsel %vm253_vm1, %v943_v1, -inf  ;;  %v1160_v63 = vpop.f32.mrf.mxu0 }
 0x6da   :  { %953 = vmax.xlane.f32.xlu0 %v952_v38  ;;  %950 = vmax.xlane.f32.xlu1 %v949_v2  ;;  %v4345_v2 = vld [vmem:[%s6331_s10 + $0x4] ss:$0 sm:$0xff] }
 0x6db   :  { %v4809_v38 = vpop.f32.mrf.mxu0 }
 0x6de   :  { %956 = vmax.xlane.f32.xlu0 %v955_v6 }
 0x75f   :  { %v948_v5 = vpop.xlane.xlu0 %947 }
 0x760   :  { %v958_v7 = vsub.f32 %v942_v58, %v948_v5 }
 0x762   :  { %v962_v13 = vmul.f32 1.442695, %v958_v7 }
 0x763   :  { %v951_v8 = vpop.xlane.xlu1 %950  ;;  %v954_v37 = vpop.xlane.xlu0 %953 }
 0x764   :  { %v959_v9 = vsub.f32 %v943_v1, %v951_v8  ;;  %v960_v3 = vsub.f32 %v944_v0, %v954_v37 }
 0x766   :  { %v964_v10 = vmul.f32 1.442695, %v959_v9  ;;  %v966_v11 = vmul.f32 1.442695, %v960_v3  ;;  %v1163_v9 = vpop.f32.mrf.mxu0 }
 0x767   :  { %v957_v12 = vpop.xlane.xlu0 %956 }
 0x768   :  { %5193 = vpow2.f32 %v964_v10  ;;  %v961_v14 = vsub.f32 %v945_v4, %v957_v12 }
 0x769   :  { %5195 = vpow2.f32 %v966_v11 }
 0x76a   :  { %v968_v15 = vmul.f32 1.442695, %v961_v14  ;;  %5197 = vpow2.f32 %v962_v13 }
 0x76c   :  { %5199 = vpow2.f32 %v968_v15 }
 0x775   :  { %v5194_v17 = vpop.eup %5193 }
 0x776   :  { %v5196_v16 = vpop.eup %5195  ;;  %v973_v18 = vsel %vm253_vm1, %v5194_v17, 0.0 }
 0x777   :  { %974 = vadd.xlane.f32.xlu1 %v973_v18  ;;  %v976_v20 = vsel %vm253_vm1, %v5196_v16, 0.0  ;;  %v5198_v21 = vpop.eup %5197 }
 0x778   :  { %977 = vadd.xlane.f32.xlu0 %v976_v20  ;;  %v970_v26 = vsel %vm253_vm1, %v5198_v21, 0.0 }
 0x779   :  { %v5200_v23 = vpop.eup %5199 }
 0x77a   :  { %v979_v25 = vsel %vm253_vm1, %v5200_v23, 0.0 }
 0x77b   :  { %980 = vadd.xlane.f32.xlu1 %v979_v25 }
 0x77c   :  { %971 = vadd.xlane.f32.xlu0 %v970_v26 }
 0x792   :  { %821 = vrot.lane.b32.xlu0 %v5542_v59, %s5354_s21 }
 0x800   :  { %v975_v28 = vpop.xlane.xlu1 %974 }
 0x801   :  { %v978_v31 = vpop.xlane.xlu0 %977 }
 0x802   :  { %5201 = vrcp.f32 %v978_v31 }
 0x803   :  { %5203 = vrcp.f32 %v975_v28 }
 0x804   :  { %v981_v33 = vpop.xlane.xlu1 %980 }
 0x805   :  { %5205 = vrcp.f32 %v981_v33  ;;  %v972_v36 = vpop.xlane.xlu0 %971 }
 0x806   :  { %5207 = vrcp.f32 %v972_v36 }
 0x809   :  { %v822_v39 = vpop.permute.xlu0 %821 }
 0x80a   :  { %v867_v40 = vadd.f32 %v4780_v27, %v822_v39  ;;  %v870_v41 = vadd.f32 %v4781_v35, %v822_v39  ;;  %v859_v32 = vadd.f32 %v858_v30, %v822_v39  ;;  %v862_v42 = vadd.f32 %v861_v22, %v822_v39 }
 0x80c   :  { %v993_v43 = vpack.c.bf16 %v870_v41, %v867_v40  ;;  %v992_v59 = vpack.c.bf16 %v862_v42, %v859_v32 }
 0x80e   :  { %4790 = vmatprep.subr.bf16.mxu1 %v993_v43 }
 0x80f   :  { %4791 = vmatpush3.bf16.msra.mxu1 %v993_v43  ;;  %v5202_v44 = vpop.eup %5201  ;;  %v5131_v43 = vld [vmem:[%s6334_s7 + $0x8] sm:$0xff]  }
 0x810   :  { %4792 = vmatprep.subr.bf16.mxu1 %v992_v59  ;;  %v5204_v45 = vpop.eup %5203  ;;  %v988_v48 = vmul.f32 %v5202_v44, %v5196_v16 }
 0x811   :  { %v987_v51 = vmul.f32 %v5204_v45, %v5194_v17 }
 0x812   :  { %v5206_v46 = vpop.eup %5205 }
 0x813   :  { %v5208_v47 = vpop.eup %5207  ;;  %4793 = vmatpush3.bf16.msra.mxu1 %v992_v59  ;;  %v989_v49 = vmul.f32 %v5206_v46, %v5200_v23  ;;  %v5132_v59 = vld [vmem:[%s6334_s7] sm:$0xff]  }
 0x814   :  { %v986_v50 = vmul.f32 %v5208_v47, %v5198_v21  ;;  %4798 = vmatprep.subr.bf16.mxu1 %v5130_v54 }
 0x815   :  { %v991_v52 = vpack.c.bf16 %v989_v49, %v988_v48 }
 0x816   :  { %v990_v53 = vpack.c.bf16 %v987_v51, %v986_v50 }
 0x818   :  { %4794 = vmatprep.mubr.msk.bf16.mxu1 %vm253_vm1, %v990_v53 }
 0x819   :  { %4795 = vmatmul.mubr.msk.bf16.vlgmr.msra.gmra.mxu1 %vm253_vm1, %v991_v52 }
 0x81a   :  { %4799 = vmatpush3.bf16.msra.mxu1 %v5130_v54 }
 0x81b   :  { %4810 = vmatprep.subr.bf16.mxu1 %v5131_v43 }
 0x8d9   :  { %v4796_v55 = vpop.f32.mrf.mxu1 }
 0x8db   :  { %v1034_v56 = vpop.f32.mrf.mxu1 }
 0x8dd   :  { %v4797_v57 = vpop.f32.mrf.mxu1 }
 0x8de   :  { %v1050_v61 = vpack.c.bf16 %v4797_v57, %v4796_v55 }
 0x8df   :  { %v1037_v58 = vpop.f32.mrf.mxu1 }
 0x8e0   :  { %v1049_v60 = vpack.c.bf16 %v1037_v58, %v1034_v56 }
 0x8e2   :  { %4800 = vmatprep.mubr.msk.bf16.mxu1 %vm522_vm2, %v1049_v60 }
 0x8e3   :  { %4801 = vmatmul.mubr.msk.bf16.vlgmr.msra.gmra.mxu1 %vm522_vm2, %v1050_v61  ;;  %v4346_v61 = vld [vmem:[%s6331_s10 + $0x2] ss:$0 sm:$0xff] }
 0x8e4   :  { %4811 = vmatpush3.bf16.msra.mxu1 %v5131_v43 }
 0x8e5   :  { %4812 = vmatprep.subr.bf16.mxu1 %v5132_v59 }
 0x8e8   :  { %4813 = vmatpush3.bf16.msra.mxu1 %v5132_v59 }
 0x9a3   :  { %v4802_v0 = vpop.f32.mrf.mxu1 }
 0x9a4   :  { %v1169_v1 = vadd.f32 %v4808_v62, %v4802_v0 }
 0x9a5   :  { %v1099_v4 = vpop.f32.mrf.mxu1 }
 0x9a6   :  { %v1177_v6 = vadd.f32 %v1169_v1, %v5498_v29  ;;  %v1161_v5 = vadd.f32 %v1160_v63, %v1099_v4 }
 0x9a7   :  { %v4803_v7 = vpop.f32.mrf.mxu1 }
 0x9a8   :  { %v5678_v8 = vadd.f32 %v4345_v2, %v1177_v6  ;;  %v1175_v37 = vadd.f32 %v1161_v5, %v5484_v19  ;;  %v1172_v11 = vadd.f32 %v4809_v38, %v4803_v7 }
 0x9a9   :  { %v1102_v3 = vpop.f32.mrf.mxu1 }
 0x9aa   :  { %v5681_v10 = vadd.f32 %v4345_v2, %v1175_v37  ;;  %v1164_v13 = vadd.f32 %v1163_v9, %v1102_v3  ;;  %v1196_v12 = vsel %vm253_vm1, %v5678_v8, 0.0  ;;  %v1178_v29 = vadd.f32 %v1172_v11, %v5505_v34 }
 0x9ab   :  { %1197 = vadd.xlane.f32.xlu1 %v1196_v12  ;;  %v5133_v12 = vld [vmem:[%s6335_s8 + $0x18] sm:$0xff]  }
 0x9ac   :  { %v1176_v14 = vadd.f32 %v1164_v13, %v5491_v24  ;;  %v1190_v17 = vsel %vm253_vm1, %v5681_v10, 0.0  ;;  %v5691_v19 = vadd.f32 %v4345_v2, %v1178_v29  ;;  %4818 = vmatprep.subr.bf16.mxu0 %v5133_v12  ;;  %v5135_v29 = vld [vmem:[%s6335_s8 + $0x8] sm:$0xff]  }
 0x9ad   :  { %4819 = vmatpush3.bf16.msra.mxu0 %v5133_v12  ;;  %v4359_v12 = vld [vmem:[%s6331_s10 + $0x5] ss:$0 sm:$0xff] }
 0x9ae   :  { %v5687_v15 = vadd.f32 %v4345_v2, %v1176_v14  ;;  %v1199_v18 = vsel %vm253_vm1, %v5691_v19, 0.0  ;;  %v4347_v2 = vld [vmem:[%s6331_s10 + $0x3] ss:$0 sm:$0xff]  ;;  %v5134_v14 = vld [vmem:[%s6335_s8 + $0x10] sm:$0xff]  }
 0x9af   :  { %1191 = vadd.xlane.f32.xlu1 %v1190_v17  ;;  %4820 = vmatprep.subr.bf16.mxu0 %v5134_v14  ;;  %v5136_v17 = vld [vmem:[%s6335_s8] sm:$0xff]  }
 0x9b0   :  { %v1193_v16 = vsel %vm253_vm1, %v5687_v15, 0.0 }
 0x9b1   :  { %4821 = vmatpush3.bf16.msra.mxu0 %v5134_v14 }
 0x9b2   :  { %4822 = vmatprep.subr.bf16.mxu0 %v5135_v29 }
 0x9b3   :  { %1194 = vadd.xlane.f32.xlu1 %v1193_v16  ;;  %v4348_v16 = vld [vmem:[%s6331_s10 + $0x7] ss:$0 sm:$0xff] }
 0x9b5   :  { %4823 = vmatpush3.bf16.msra.mxu0 %v5135_v29 }
 0x9b6   :  { %4824 = vmatprep.subr.bf16.mxu0 %v5136_v17 }
 0x9b7   :  { %1200 = vadd.xlane.f32.xlu1 %v1199_v18 }
 0x9b9   :  { %4825 = vmatpush3.bf16.msra.mxu0 %v5136_v17 }
 0xa34   :  { %v1198_v20 = vpop.xlane.xlu1 %1197 }
 0xa35   :  { %v1204_v24 = vmul.f32 0.03125, %v1198_v20 }
 0xa37   :  { %v1208_v34 = vsub.f32 %v5678_v8, %v1204_v24 }
 0xa38   :  { %v1192_v21 = vpop.xlane.xlu1 %1191 }
 0xa39   :  { %v1202_v23 = vmul.f32 0.03125, %v1192_v21  ;;  %v1212_v25 = vmul.f32 %v1208_v34, %v1208_v34 }
 0xa3b   :  { %v1206_v26 = vsub.f32 %v5681_v10, %v1202_v23  ;;  %v1220_v27 = vsel %vm253_vm1, %v1212_v25, 0.0 }
 0xa3c   :  { %1221 = vadd.xlane.f32.xlu0 %v1220_v27  ;;  %v1195_v28 = vpop.xlane.xlu1 %1194 }
 0xa3d   :  { %v1203_v30 = vmul.f32 0.03125, %v1195_v28  ;;  %v1210_v31 = vmul.f32 %v1206_v26, %v1206_v26 }
 0xa3f   :  { %v1207_v33 = vsub.f32 %v5687_v15, %v1203_v30  ;;  %v1214_v35 = vsel %vm253_vm1, %v1210_v31, 0.0 }
 0xa40   :  { %1215 = vadd.xlane.f32.xlu1 %v1214_v35  ;;  %v1201_v36 = vpop.xlane.xlu1 %1200 }
 0xa41   :  { %v1205_v22 = vmul.f32 0.03125, %v1201_v36  ;;  %v1211_v39 = vmul.f32 %v1207_v33, %v1207_v33 }
 0xa43   :  { %v1209_v40 = vsub.f32 %v5691_v19, %v1205_v22  ;;  %v1217_v41 = vsel %vm253_vm1, %v1211_v39, 0.0 }
 0xa44   :  { %1218 = vadd.xlane.f32.xlu1 %v1217_v41 }
 0xa45   :  { %v1213_v32 = vmul.f32 %v1209_v40, %v1209_v40 }
 0xa47   :  { %v1223_v42 = vsel %vm253_vm1, %v1213_v32, 0.0 }
 0xa48   :  { %1224 = vadd.xlane.f32.xlu1 %v1223_v42 }
 0xac5   :  { %v1222_v44 = vpop.xlane.xlu0 %1221 }
 0xac6   :  { %v1228_v45 = vmul.f32 0.03125, %v1222_v44 }
 0xac8   :  { %v1232_v48 = vadd.f32 1e-05, %v1228_v45 }
 0xac9   :  { %v1216_v46 = vpop.xlane.xlu1 %1215 }
 0xaca   :  { %v1226_v47 = vmul.f32 0.03125, %v1216_v46 }
 0xacc   :  { %v1230_v49 = vadd.f32 1e-05, %v1226_v47 }
 0xacd   :  { %v1219_v50 = vpop.xlane.xlu1 %1218 }
 0xace   :  { %5209 = vrsqrt.f32 %v1230_v49  ;;  %v1227_v51 = vmul.f32 0.03125, %v1219_v50 }
 0xacf   :  { %5211 = vrsqrt.f32 %v1232_v48 }
 0xad0   :  { %v1231_v52 = vadd.f32 1e-05, %v1227_v51 }
 0xad1   :  { %v1225_v53 = vpop.xlane.xlu1 %1224 }
 0xad2   :  { %5213 = vrsqrt.f32 %v1231_v52  ;;  %v1229_v54 = vmul.f32 0.03125, %v1225_v53 }
 0xad4   :  { %v1233_v55 = vadd.f32 1e-05, %v1229_v54 }
 0xad6   :  { %5215 = vrsqrt.f32 %v1233_v55 }
 0xadb   :  { %v5210_v56 = vpop.eup %5209 }
 0xadc   :  { %v1238_v57 = vmul.f32 %v5210_v56, %v1206_v26  ;;  %v5212_v58 = vpop.eup %5211 }
 0xadd   :  { %v1240_v62 = vmul.f32 %v5212_v58, %v1208_v34 }
 0xade   :  { %v1246_v0 = vmul.f32 %v4346_v61, %v1238_v57 }
 0xadf   :  { %v5214_v60 = vpop.eup %5213  ;;  %v1248_v7 = vmul.f32 %v4346_v61, %v1240_v62 }
 0xae0   :  { %v1239_v63 = vmul.f32 %v5214_v60, %v1207_v33  ;;  %v1254_v6 = vadd.f32 %v4347_v2, %v1246_v0 }
 0xae1   :  { %v1256_v3 = vadd.f32 %v4347_v2, %v1248_v7 }
 0xae2   :  { %v1247_v1 = vmul.f32 %v4346_v61, %v1239_v63 }
 0xae3   :  { %v5216_v38 = vpop.eup %5215 }
 0xae4   :  { %v1241_v4 = vmul.f32 %v5216_v38, %v1209_v40  ;;  %v1255_v5 = vadd.f32 %v4347_v2, %v1247_v1 }
 0xae6   :  { %v1262_v37 = vpack.c.bf16 %v1255_v5, %v1254_v6  ;;  %v1249_v9 = vmul.f32 %v4346_v61, %v1241_v4  ;;  %v5137_v4 = vld [vmem:[%s6336_s9 + $0x8] sm:$0xff]   ;;  %v5138_v6 = vld [vmem:[%s6336_s9] sm:$0xff]  }
 0xae7   :  { %4830 = vmatprep.subr.bf16.mxu1 %v5137_v4 }
 0xae8   :  { %4814 = vmatprep.mubr.msk.bf16.mxu1 %vm253_vm1, %v1262_v37  ;;  %v1257_v11 = vadd.f32 %v4347_v2, %v1249_v9 }
 0xaea   :  { %v1263_v13 = vpack.c.bf16 %v1257_v11, %v1256_v3 }
 0xaec   :  { %4815 = vmatmul.mubr.msk.bf16.vlgmr.msra.gmra.mxu1 %vm253_vm1, %v1263_v13 }
 0xaed   :  { %4831 = vmatpush3.bf16.msra.mxu1 %v5137_v4 }
 0xaee   :  { %4832 = vmatprep.subr.bf16.mxu1 %v5138_v6 }
 0xaf1   :  { %4833 = vmatpush3.bf16.msra.mxu1 %v5138_v6 }
 0xbac   :  { %v4816_v18 = vpop.f32.mrf.mxu1 }
 0xbad   :  { %v1330_v20 = vadd.f32 %v4816_v18, %v4348_v16 }
 0xbae   :  { %v1321_v24 = vpop.f32.mrf.mxu1 }
 0xbaf   :  { %v1338_v34 = vmul.f32 %v1330_v20, %v1330_v20  ;;  %v1322_v21 = vadd.f32 %v4348_v16, %v1321_v24 }
 0xbb0   :  { %v4817_v23 = vpop.f32.mrf.mxu1 }
 0xbb1   :  { %v1342_v25 = vmul.f32 %v1338_v34, %v1330_v20  ;;  %v1336_v26 = vmul.f32 %v1322_v21, %v1322_v21  ;;  %v1333_v27 = vadd.f32 %v4817_v23, %v4348_v16  ;;  %v5355_v23 = vmov 0.0  }
 0xbb2   :  { %v1324_v28 = vpop.f32.mrf.mxu1 }
 0xbb3   :  { %v1346_v30 = vmul.f32 0.044715, %v1342_v25  ;;  %v1340_v31 = vmul.f32 %v1336_v26, %v1322_v21  ;;  %v1339_v33 = vmul.f32 %v1333_v27, %v1333_v27  ;;  %v1325_v35 = vadd.f32 %v4348_v16, %v1324_v28  ;;  %v1553_v26 = vld [vmem:[%s6337_s2 + $0x10] sm:$0xff] }
 0xbb5   :  { %v1350_v36 = vadd.f32 %v1346_v30, %v1330_v20  ;;  %v1344_v22 = vmul.f32 0.044715, %v1340_v31  ;;  %v1343_v39 = vmul.f32 %v1339_v33, %v1333_v27  ;;  %v1337_v40 = vmul.f32 %v1325_v35, %v1325_v35  ;;  %v1551_v31 = vld [vmem:[%s6337_s2] sm:$0xff] }
 0xbb7   :  { %v1354_v41 = vmul.f32 0.7978846, %v1350_v36  ;;  %v1348_v32 = vadd.f32 %v1344_v22, %v1322_v21  ;;  %v1347_v42 = vmul.f32 0.044715, %v1343_v39  ;;  %v1341_v43 = vmul.f32 %v1337_v40, %v1325_v35 }
 0xbb9   :  { %v1352_v59 = vmul.f32 0.7978846, %v1348_v32  ;;  %v1351_v44 = vadd.f32 %v1347_v42, %v1333_v27  ;;  %v1345_v45 = vmul.f32 0.044715, %v1341_v43  ;;  %5217 = vtanh.f32 %v1354_v41  ;;  %v1552_v41 = vld [vmem:[%s6337_s2 + $0x8] sm:$0xff] }
 0xbbb   :  { %5219 = vtanh.f32 %v1352_v59  ;;  %v1355_v46 = vmul.f32 0.7978846, %v1351_v44  ;;  %v1349_v47 = vadd.f32 %v1345_v45, %v1325_v35  ;;  %v1554_v44 = vld [vmem:[%s6337_s2 + $0x18] sm:$0xff] }
 0xbbd   :  { %5221 = vtanh.f32 %v1355_v46  ;;  %v1353_v48 = vmul.f32 0.7978846, %v1349_v47 }
 0xbbf   :  { %5223 = vtanh.f32 %v1353_v48  ;;  %v5782_v48 = vld [vmem:[%s6330_s5 + $0x18] sm:$0xff]  }
 0xbc0   :  { %4838 = vmatprep.subr.bf16.mxu1 %v5782_v48 }
 0xbc6   :  { %v5218_v49 = vpop.eup %5217 }
 0xbc7   :  { %v1362_v53 = vadd.f32 1.0, %v5218_v49  ;;  %v5789_v49 = vld [vmem:[%s6330_s5 + $0x10] sm:$0xff]  }
 0xbc8   :  { %v5220_v50 = vpop.eup %5219 }
 0xbc9   :  { %v1360_v51 = vadd.f32 1.0, %v5220_v50  ;;  %v1366_v60 = vmul.f32 0.5, %v1362_v53 }
 0xbca   :  { %v5222_v52 = vpop.eup %5221 }
 0xbcb   :  { %v1363_v54 = vadd.f32 1.0, %v5222_v52  ;;  %v1364_v56 = vmul.f32 0.5, %v1360_v51  ;;  %v1370_v1 = vmul.f32 %v1366_v60, %v1330_v20 }
 0xbcc   :  { %v5224_v55 = vpop.eup %5223 }
 0xbcd   :  { %v1367_v57 = vmul.f32 0.5, %v1363_v54  ;;  %v1361_v58 = vadd.f32 1.0, %v5224_v55  ;;  %v1368_v63 = vmul.f32 %v1364_v56, %v1322_v21 }
 0xbcf   :  { %v1365_v61 = vmul.f32 0.5, %v1361_v58  ;;  %v1371_v62 = vmul.f32 %v1367_v57, %v1333_v27 }
 0xbd1   :  { %v1369_v0 = vmul.f32 %v1365_v61, %v1325_v35  ;;  %v1381_v2 = vpack.c.bf16 %v1371_v62, %v1370_v1 }
 0xbd3   :  { %v1380_v38 = vpack.c.bf16 %v1369_v0, %v1368_v63 }
 0xbd5   :  { %4826 = vmatprep.mubr.msk.bf16.mxu0 %vm191_vm0, %v1380_v38 }
 0xbd6   :  { %4827 = vmatmul.mubr.msk.bf16.vlgmr.msra.gmra.mxu0 %vm191_vm0, %v1381_v2 }
 0xc96   :  { %v4828_v5 = vpop.f32.mrf.mxu0 }
 0xc97   :  { %v1463_v11 = vadd.f32 %v4828_v5, %v5678_v8 }
 0xc98   :  { %v1446_v7 = vpop.f32.mrf.mxu0 }
 0xc99   :  { %v1461_v9 = vadd.f32 %v1446_v7, %v5681_v10  ;;  %v1472_v18 = vadd.f32 %v4359_v12, %v1463_v11  ;;  %v48_v10 = vlaneseq  ;;  %v5806_v7 = vld [vmem:[%s6331_s10 + $0xe] ss:$0 sm:$0xff] }
 0xc9a   :  { %v4829_v37 = vpop.f32.mrf.mxu0 }
 0xc9b   :  { %v1464_v3 = vadd.f32 %v4829_v37, %v5691_v19  ;;  %v1470_v17 = vadd.f32 %v4359_v12, %v1461_v9  ;;  %v49_v19 = vshrl.u32 %v48_v10, 7 }
 0xc9c   :  { %v1449_v13 = vpop.f32.mrf.mxu0 }
 0xc9d   :  { %v1462_v14 = vadd.f32 %v1449_v13, %v5687_v15  ;;  %v1473_v29 = vadd.f32 %v4359_v12, %v1464_v3  ;;  %v51_v8 = vadd.s32 16, %v49_v19  ;;  %v53_v21 = vand.u32 15, %v49_v19 }
 0xc9f   :  { %v1471_v16 = vadd.f32 %v4359_v12, %v1462_v14  ;;  %v1479_v24 = vpack.c.bf16 %v1473_v29, %v1472_v18  ;;  %v55_v34 = vand.u32 15, %v51_v8  ;;  %vm57_vm4 = vcmp.lt.s32.totalorder %v53_v21, 5 }
 0xca0   :  { %v4294_v27 = vsel %vm57_vm4, 1.0, %v5355_v23 }
 0xca1   :  { %v1478_v20 = vpack.c.bf16 %v1471_v16, %v1470_v17  ;;  %vm59_vm3 = vcmp.lt.s32.totalorder %v55_v34, 5 }
 0xca2   :  { %v4295_v25 = vsel %vm59_vm3, 1.0, %v5355_v23 }
 0xca3   :  { %4834 = vmatprep.mubr.msk.bf16.mxu1 %vm253_vm1, %v1478_v20 }
 0xca4   :  { %4835 = vmatmul.mubr.msk.bf16.vlgmr.msra.gmra.mxu1 %vm253_vm1, %v1479_v24 }
 0xca5   :  { %4839 = vmatpush3.bf16.msra.mxu1 %v5782_v48 }
 0xca6   :  { %4840 = vmatprep.subr.bf16.mxu1 %v5789_v49 }
 0xca9   :  { %4841 = vmatpush3.bf16.msra.mxu1 %v5789_v49 }
 0xd64   :  { %v4836_v15 = vpop.f32.mrf.mxu1 }
 0xd65   :  { %v1549_v28 = vmul.f32 %v4836_v15, %v4295_v25  ;;  %v4370_v15 = vld [vmem:[%s6331_s10 + $0x8] ss:$0 sm:$0xff] }
 0xd66   :  { %v1532_v30 = vpop.f32.mrf.mxu1 }
 0xd67   :  { %v5757_v33 = vadd.f32 %v1553_v26, %v1549_v28  ;;  %v1547_v35 = vmul.f32 %v4294_v27, %v1532_v30 }
 0xd68   :  { %v4837_v36 = vpop.f32.mrf.mxu1 }
 0xd69   :  { %v5759_v22 = vadd.f32 %v1551_v31, %v1547_v35  ;;  %v1573_v39 = vsel %vm253_vm1, %v5757_v33, 0.0  ;;  %v1550_v42 = vmul.f32 0.0, %v4837_v36  ;;  %v4371_v35 = vld [vmem:[%s6331_s10 + $0x9] ss:$0 sm:$0xff] }
 0xd6a   :  { %1574 = vadd.xlane.f32.xlu1 %v1573_v39  ;;  %v1535_v40 = vpop.f32.mrf.mxu1 }
 0xd6b   :  { %v1548_v32 = vmul.f32 0.0, %v1535_v40  ;;  %v1567_v59 = vsel %vm253_vm1, %v5759_v22, 0.0  ;;  %v5773_v45 = vadd.f32 %v1554_v44, %v1550_v42 }
 0xd6d   :  { %v5766_v43 = vadd.f32 %v1552_v41, %v1548_v32  ;;  %v1576_v47 = vsel %vm253_vm1, %v5773_v45, 0.0 }
 0xd6e   :  { %1568 = vadd.xlane.f32.xlu1 %v1567_v59 }
 0xd6f   :  { %v1570_v46 = vsel %vm253_vm1, %v5766_v43, 0.0 }
 0xd72   :  { %1571 = vadd.xlane.f32.xlu1 %v1570_v46 }
 0xd76   :  { %1577 = vadd.xlane.f32.xlu1 %v1576_v47 }
 0xdf3   :  { %v1575_v50 = vpop.xlane.xlu1 %1574 }
 0xdf4   :  { %v1581_v51 = vmul.f32 0.03125, %v1575_v50 }
 0xdf6   :  { %v1585_v52 = vsub.f32 %v5757_v33, %v1581_v51 }
 0xdf7   :  { %v1569_v53 = vpop.xlane.xlu1 %1568 }
 0xdf8   :  { %v1579_v54 = vmul.f32 0.03125, %v1569_v53  ;;  %v1589_v55 = vmul.f32 %v1585_v52, %v1585_v52 }
 0xdfa   :  { %v1583_v56 = vsub.f32 %v5759_v22, %v1579_v54  ;;  %v1597_v57 = vsel %vm253_vm1, %v1589_v55, 0.0 }
 0xdfb   :  { %1598 = vadd.xlane.f32.xlu1 %v1597_v57  ;;  %v1572_v58 = vpop.xlane.xlu1 %1571 }
 0xdfc   :  { %v1580_v60 = vmul.f32 0.03125, %v1572_v58  ;;  %v1587_v61 = vmul.f32 %v1583_v56, %v1583_v56 }
 0xdfe   :  { %v1584_v62 = vsub.f32 %v5766_v43, %v1580_v60  ;;  %v1591_v63 = vsel %vm253_vm1, %v1587_v61, 0.0 }
 0xdff   :  { %1592 = vadd.xlane.f32.xlu1 %v1591_v63  ;;  %v1578_v0 = vpop.xlane.xlu1 %1577 }
 0xe00   :  { %v1582_v1 = vmul.f32 0.03125, %v1578_v0  ;;  %v1588_v38 = vmul.f32 %v1584_v62, %v1584_v62 }
 0xe02   :  { %v1586_v2 = vsub.f32 %v5773_v45, %v1582_v1  ;;  %v1594_v4 = vsel %vm253_vm1, %v1588_v38, 0.0 }
 0xe03   :  { %1595 = vadd.xlane.f32.xlu1 %v1594_v4 }
 0xe04   :  { %v1590_v6 = vmul.f32 %v1586_v2, %v1586_v2 }
 0xe06   :  { %v1600_v5 = vsel %vm253_vm1, %v1590_v6, 0.0 }
 0xe07   :  { %1601 = vadd.xlane.f32.xlu0 %v1600_v5 }
 0xe14   :  { %1716 = vrot.lane.b32.xlu1 %v5782_v48, %s5350_s22 }
 0xe18   :  { %1721 = vrot.lane.b32.xlu1 %v5806_v7, %s5350_s22 }
 0xe1c   :  { %1775 = vrot.lane.b32.xlu1 %v5782_v48, %s5351_s23 }
 0xe1d   :  { %1714 = vrot.lane.b32.xlu0 %v5789_v49, %s5350_s22 }
 0xe21   :  { %1773 = vrot.lane.b32.xlu0 %v5789_v49, %s5351_s23 }
 0xe84   :  { %v1599_v37 = vpop.xlane.xlu1 %1598 }
 0xe85   :  { %v1605_v9 = vmul.f32 0.03125, %v1599_v37 }
 0xe87   :  { %v1609_v13 = vadd.f32 1e-05, %v1605_v9 }
 0xe88   :  { %v1593_v3 = vpop.xlane.xlu1 %1592 }
 0xe89   :  { %v1603_v11 = vmul.f32 0.03125, %v1593_v3 }
 0xe8b   :  { %v1607_v12 = vadd.f32 1e-05, %v1603_v11 }
 0xe8c   :  { %v1596_v14 = vpop.xlane.xlu1 %1595 }
 0xe8d   :  { %5225 = vrsqrt.f32 %v1607_v12  ;;  %v1604_v29 = vmul.f32 0.03125, %v1596_v14 }
 0xe8e   :  { %5227 = vrsqrt.f32 %v1609_v13  ;;  %v5853_v13 = vld [vmem:[%s6332_s3 + $0x20] sm:$0xff] }
 0xe8f   :  { %v1608_v17 = vadd.f32 1e-05, %v1604_v29  ;;  %v5858_v29 = vld [vmem:[%s6332_s3 + $0x38] sm:$0xff] }
 0xe90   :  { %v1602_v16 = vpop.xlane.xlu0 %1601  ;;  %v1717_v18 = vpop.permute.xlu1 %1716 }
 0xe91   :  { %5229 = vrsqrt.f32 %v1608_v17  ;;  %v1606_v20 = vmul.f32 0.03125, %v1602_v16  ;;  %4846 = vmatprep.subr.bf16.mxu0 %v1717_v18 }
 0xe92   :  { %4847 = vmatpush3.bf16.msra.mxu0 %v1717_v18 }
 0xe93   :  { %v1610_v24 = vadd.f32 1e-05, %v1606_v20  ;;  %v5864_v20 = vld [vmem:[%s6332_s3 + $0x28] sm:$0xff] }
 0xe94   :  { %v1715_v10 = vpop.permute.xlu0 %1714  ;;  %v1722_v19 = vpop.permute.xlu1 %1721 }
 0xe95   :  { %5231 = vrsqrt.f32 %v1610_v24  ;;  %4848 = vmatprep.subr.bf16.mxu0 %v1715_v10 }
 0xe96   :  { %4849 = vmatpush3.bf16.msra.mxu0 %v1715_v10 }
 0xe98   :  { %v1776_v8 = vpop.permute.xlu1 %1775  ;;  %v1774_v47 = vpop.permute.xlu0 %1773 }
 0xe99   :  { %4854 = vmatprep.subr.bf16.mxu1 %v1776_v8 }
 0xe9a   :  { %v5226_v34 = vpop.eup %5225 }
 0xe9b   :  { %v1615_v21 = vmul.f32 %v5226_v34, %v1583_v56  ;;  %v5228_v23 = vpop.eup %5227  ;;  %v5871_v34 = vld [vmem:[%s6332_s3 + $0x30] sm:$0xff] }
 0xe9c   :  { %v1617_v26 = vmul.f32 %v5228_v23, %v1585_v52 }
 0xe9d   :  { %v1623_v27 = vmul.f32 %v4370_v15, %v1615_v21 }
 0xe9e   :  { %v5230_v25 = vpop.eup %5229  ;;  %v1625_v36 = vmul.f32 %v4370_v15, %v1617_v26 }
 0xe9f   :  { %v1616_v28 = vmul.f32 %v5230_v25, %v1584_v62  ;;  %v1631_v40 = vadd.f32 %v4371_v35, %v1623_v27 }
 0xea0   :  { %v1633_v59 = vadd.f32 %v4371_v35, %v1625_v36 }
 0xea1   :  { %v1624_v30 = vmul.f32 %v4370_v15, %v1616_v28 }
 0xea2   :  { %v5232_v31 = vpop.eup %5231 }
 0xea3   :  { %v1618_v39 = vmul.f32 %v5232_v31, %v1586_v2  ;;  %v1632_v41 = vadd.f32 %v4371_v35, %v1624_v30 }
 0xea5   :  { %v1626_v32 = vmul.f32 %v4370_v15, %v1618_v39  ;;  %v5822_v42 = vpack.c.bf16 %v1632_v41, %v1631_v40 }
 0xea7   :  { %4842 = vmatprep.mubr.msk.bf16.mxu1 %vm253_vm1, %v5822_v42  ;;  %4850 = vmatprep.mubr.msk.bf16.mxu0 %vm253_vm1, %v5822_v42  ;;  %v1634_v44 = vadd.f32 %v4371_v35, %v1626_v32 }
 0xea9   :  { %v5828_v46 = vpack.c.bf16 %v1634_v44, %v1633_v59 }
 0xeab   :  { %4843 = vmatmul.mubr.msk.bf16.vlgmr.msra.gmra.mxu1 %vm253_vm1, %v5828_v46  ;;  %4851 = vmatmul.mubr.msk.bf16.vlgmr.msra.gmra.mxu0 %vm253_vm1, %v5828_v46 }
 0xeac   :  { %4855 = vmatpush3.bf16.msra.mxu1 %v1776_v8  ;;  %4858 = vmatprep.mubr.msk.bf16.mxu1 %vm253_vm1, %v5822_v42 }
 0xead   :  { %4856 = vmatprep.subr.bf16.mxu1 %v1774_v47 }
 0xeb0   :  { %4857 = vmatpush3.bf16.msra.mxu1 %v1774_v47 }
 0xeb3   :  { %4859 = vmatmul.mubr.msk.bf16.vlgmr.msra.gmra.mxu1 %vm253_vm1, %v5828_v46 }
 0xf6b   :  { %v4844_v50 = vpop.f32.mrf.mxu1  ;;  %v4852_v51 = vpop.f32.mrf.mxu0 }
 0xf6c   :  { %v1767_v56 = vadd.f32 %v4852_v51, %v1722_v19  ;;  %v1708_v37 = vadd.f32 %v4844_v50, %v5806_v7 }
 0xf6d   :  { %v1699_v52 = vpop.f32.mrf.mxu1  ;;  %v1758_v53 = vpop.f32.mrf.mxu0 }
 0xf6e   :  { %v1700_v58 = vadd.f32 %v5806_v7, %v1699_v52  ;;  %v1759_v62 = vadd.f32 %v1758_v53, %v1722_v19 }
 0xf6f   :  { %v4845_v54 = vpop.f32.mrf.mxu1  ;;  %v4853_v55 = vpop.f32.mrf.mxu0 }
 0xf70   :  { %v1770_v57 = vadd.f32 %v4853_v55, %v1722_v19  ;;  %v1711_v5 = vadd.f32 %v4845_v54, %v5806_v7 }
 0xf71   :  { %v1702_v60 = vpop.f32.mrf.mxu1  ;;  %v1761_v61 = vpop.f32.mrf.mxu0 }
 0xf72   :  { %v1834_v63 = vpack.c.bf16 %v1770_v57, %v1767_v56  ;;  %v1703_v0 = vadd.f32 %v5806_v7, %v1702_v60  ;;  %v1762_v1 = vadd.f32 %v1761_v61, %v1722_v19  ;;  %v1832_v9 = vpack.c.bf16 %v1711_v5, %v1708_v37 }
 0xf73   :  { %v4860_v27 = vpop.f32.mrf.mxu1 }
 0xf74   :  { %v1831_v38 = vpack.c.bf16 %v1703_v0, %v1700_v58  ;;  %v1833_v2 = vpack.c.bf16 %v1762_v1, %v1759_v62  ;;  %5094 = vmatprep.subr.msk.bf16.mxu0 %vm522_vm2, %v1834_v63  ;;  %v1845_v4 = vsel %vm522_vm2, %v1834_v63, 0 }
 0xf75   :  { %4863 = vmatpush3.bf16.xpose.msra.mxu0 %v1845_v4  ;;  %v1816_v30 = vpop.f32.mrf.mxu1 }
 0xf76   :  { %5095 = vmatprep.subr.msk.bf16.mxu0 %vm522_vm2, %v1833_v2  ;;  %4866 = vmatprep.mubr.msk.bf16.mxu0 %vm522_vm2, %v1831_v38  ;;  %v1842_v6 = vsel %vm522_vm2, %v1833_v2, 0 }
 0xf77   :  { %v4861_v36 = vpop.f32.mrf.mxu1 }
 0xf79   :  { %v1819_v50 = vpop.f32.mrf.mxu1 }
 0xf7d   :  { %4865 = vmatpush3.bf16.xpose.msra.mxu0 %v1842_v6 }
 0xf84   :  { %4867 = vmatmul.mubr.msk.bf16.vlgmr.msra.gmra.mxu0 %vm522_vm2, %v1832_v9 }
 0xf85   :  { %4890 = vmatprep.mubr.msk.bf16.mxu0 %vm253_vm1, %v5822_v42 }
0x1044   :  { %v4868_v3 = vpop.f32.mrf.mxu0 }
0x1045   :  { %v1898_v24 = vmul.f32 0.25, %v4868_v3 }
0x1046   :  { %v1881_v11 = vpop.f32.mrf.mxu0 }
0x1047   :  { %v1896_v12 = vmul.f32 0.25, %v1881_v11  ;;  %v1902_v15 = vadd.f32 %v5871_v34, %v1898_v24 }
0x1048   :  { %v4869_v14 = vpop.f32.mrf.mxu0 }
0x1049   :  { %v1899_v17 = vmul.f32 0.25, %v4869_v14  ;;  %v1900_v16 = vadd.f32 %v5853_v13, %v1896_v12  ;;  %v1910_v26 = vsel %vm253_vm1, %v1902_v15, -inf }
0x104a   :  { %v1884_v18 = vpop.f32.mrf.mxu0 }
0x104b   :  { %v1897_v10 = vmul.f32 0.25, %v1884_v18  ;;  %v1904_v19 = vsel %vm253_vm1, %v1900_v16, -inf  ;;  %v1903_v8 = vadd.f32 %v5858_v29, %v1899_v17 }
0x104c   :  { %1905 = vmax.xlane.f32.xlu1 %v1904_v19 }
0x104d   :  { %v1901_v21 = vadd.f32 %v5864_v20, %v1897_v10  ;;  %v1913_v23 = vsel %vm253_vm1, %v1903_v8, -inf }
0x104f   :  { %v1907_v25 = vsel %vm253_vm1, %v1901_v21, -inf }
0x1050   :  { %1914 = vmax.xlane.f32.xlu1 %v1913_v23  ;;  %1908 = vmax.xlane.f32.xlu0 %v1907_v25 }
0x1054   :  { %1911 = vmax.xlane.f32.xlu0 %v1910_v26 }
0x1061   :  { %1779 = vrot.lane.b32.xlu1 %v5806_v7, %s5351_s23 }
0x1065   :  { %2070 = vrot.lane.b32.xlu1 %v5789_v49, %s5353_s1 }
0x106a   :  { %2072 = vrot.lane.b32.xlu0 %v5782_v48, %s5353_s1 }
0x10d5   :  { %v1906_v28 = vpop.xlane.xlu1 %1905 }
0x10d6   :  { %v1916_v41 = vsub.f32 %v1900_v16, %v1906_v28 }
0x10d8   :  { %v1920_v56 = vmul.f32 1.442695, %v1916_v41 }
0x10d9   :  { %v1909_v31 = vpop.xlane.xlu0 %1908  ;;  %v1915_v35 = vpop.xlane.xlu1 %1914 }
0x10da   :  { %v1917_v39 = vsub.f32 %v1901_v21, %v1909_v31  ;;  %v1919_v40 = vsub.f32 %v1903_v8, %v1915_v35 }
0x10dc   :  { %v1926_v32 = vmul.f32 1.442695, %v1919_v40  ;;  %v1922_v59 = vmul.f32 1.442695, %v1917_v39 }
0x10dd   :  { %v1912_v44 = vpop.xlane.xlu0 %1911  ;;  %v1780_v47 = vpop.permute.xlu1 %1779 }
0x10de   :  { %v1918_v51 = vsub.f32 %v1902_v15, %v1912_v44  ;;  %v1825_v52 = vadd.f32 %v4860_v27, %v1780_v47  ;;  %5233 = vpow2.f32 %v1926_v32  ;;  %v1817_v53 = vadd.f32 %v1816_v30, %v1780_v47 }
0x10df   :  { %v1820_v54 = vadd.f32 %v1819_v50, %v1780_v47  ;;  %v1828_v55 = vadd.f32 %v4861_v36, %v1780_v47  ;;  %5235 = vpow2.f32 %v1922_v59 }
0x10e0   :  { %v1924_v57 = vmul.f32 1.442695, %v1918_v51 }
0x10e1   :  { %v2073_v58 = vpop.permute.xlu0 %2072  ;;  %v1951_v60 = vpack.c.bf16 %v1828_v55, %v1825_v52  ;;  %v2071_v61 = vpop.permute.xlu1 %2070  ;;  %v1950_v62 = vpack.c.bf16 %v1820_v54, %v1817_v53 }
0x10e2   :  { %5237 = vpow2.f32 %v1924_v57  ;;  %4886 = vmatprep.subr.bf16.mxu0 %v2073_v58 }
0x10e3   :  { %4870 = vmatprep.subr.bf16.mxu1 %v1951_v60  ;;  %4887 = vmatpush3.bf16.msra.mxu0 %v2073_v58  ;;  %5239 = vpow2.f32 %v1920_v56 }
0x10e4   :  { %4871 = vmatpush3.bf16.msra.mxu1 %v1951_v60  ;;  %4888 = vmatprep.subr.bf16.mxu0 %v2071_v61 }
0x10e5   :  { %4872 = vmatprep.subr.bf16.mxu1 %v1950_v62 }
0x10e7   :  { %4889 = vmatpush3.bf16.msra.mxu0 %v2071_v61 }
0x10e8   :  { %4873 = vmatpush3.bf16.msra.mxu1 %v1950_v62 }
0x10ea   :  { %4891 = vmatmul.mubr.msk.bf16.vlgmr.msra.gmra.mxu0 %vm253_vm1, %v5828_v46 }
0x10eb   :  { %v5234_v63 = vpop.eup %5233 }
0x10ec   :  { %v1937_v0 = vsel %vm253_vm1, %v5234_v63, 0.0  ;;  %v5236_v1 = vpop.eup %5235 }
0x10ed   :  { %1938 = vadd.xlane.f32.xlu1 %v1937_v0  ;;  %v1931_v6 = vsel %vm253_vm1, %v5236_v1, 0.0 }
0x10ef   :  { %v5238_v38 = vpop.eup %5237 }
0x10f0   :  { %v1934_v2 = vsel %vm253_vm1, %v5238_v38, 0.0  ;;  %v5240_v4 = vpop.eup %5239 }
0x10f1   :  { %1935 = vadd.xlane.f32.xlu0 %v1934_v2  ;;  %1932 = vadd.xlane.f32.xlu1 %v1931_v6  ;;  %v1928_v5 = vsel %vm253_vm1, %v5240_v4, 0.0 }
0x10f5   :  { %1929 = vadd.xlane.f32.xlu0 %v1928_v5 }
0x1102   :  { %2012 = vrot.lane.b32.xlu1 %v5789_v49, %s5352_s20 }
0x1106   :  { %2018 = vrot.lane.b32.xlu1 %v5806_v7, %s5352_s20 }
0x110a   :  { %2128 = vrot.lane.b32.xlu1 %v5789_v49, %s5354_s21 }
0x110b   :  { %2014 = vrot.lane.b32.xlu0 %v5782_v48, %s5352_s20 }
0x110f   :  { %2076 = vrot.lane.b32.xlu0 %v5806_v7, %s5353_s1 }
0x1113   :  { %2130 = vrot.lane.b32.xlu0 %v5782_v48, %s5354_s21 }
0x1176   :  { %v1939_v37 = vpop.xlane.xlu1 %1938 }
0x117a   :  { %v1936_v9 = vpop.xlane.xlu0 %1935  ;;  %v1933_v3 = vpop.xlane.xlu1 %1932 }
0x117b   :  { %5241 = vrcp.f32 %v1936_v9 }
0x117c   :  { %5243 = vrcp.f32 %v1933_v3 }
0x117d   :  { %5245 = vrcp.f32 %v1939_v37 }
0x117e   :  { %v1930_v11 = vpop.xlane.xlu0 %1929  ;;  %v2013_v19 = vpop.permute.xlu1 %2012 }
0x117f   :  { %5247 = vrcp.f32 %v1930_v11 }
0x1182   :  { %v2015_v12 = vpop.permute.xlu0 %2014  ;;  %v2019_v25 = vpop.permute.xlu1 %2018 }
0x1183   :  { %4878 = vmatprep.subr.bf16.mxu1 %v2015_v12 }
0x1186   :  { %v2077_v21 = vpop.permute.xlu0 %2076  ;;  %v2129_v26 = vpop.permute.xlu1 %2128 }
0x1188   :  { %v5242_v14 = vpop.eup %5241 }
0x1189   :  { %v5244_v17 = vpop.eup %5243  ;;  %v1946_v18 = vmul.f32 %v5242_v14, %v5238_v38 }
0x118a   :  { %v5246_v16 = vpop.eup %5245  ;;  %v1945_v10 = vmul.f32 %v5244_v17, %v5236_v1  ;;  %v2131_v15 = vpop.permute.xlu0 %2130 }
0x118b   :  { %v1947_v8 = vmul.f32 %v5246_v16, %v5234_v63 }
0x118c   :  { %v5248_v49 = vpop.eup %5247 }
0x118d   :  { %v1944_v24 = vmul.f32 %v5248_v49, %v5240_v4  ;;  %v1949_v23 = vpack.c.bf16 %v1947_v8, %v1946_v18 }
0x118f   :  { %v1948_v48 = vpack.c.bf16 %v1945_v10, %v1944_v24 }
0x1191   :  { %4874 = vmatprep.mubr.msk.bf16.mxu1 %vm253_vm1, %v1948_v48 }
0x1192   :  { %4875 = vmatmul.mubr.msk.bf16.vlgmr.msra.gmra.mxu1 %vm253_vm1, %v1949_v23 }
0x1193   :  { %4879 = vmatpush3.bf16.msra.mxu1 %v2015_v12  ;;  %4882 = vmatprep.mubr.msk.bf16.mxu1 %vm253_vm1, %v5822_v42 }
0x1194   :  { %4880 = vmatprep.subr.bf16.mxu1 %v2013_v19 }
0x1197   :  { %4881 = vmatpush3.bf16.msra.mxu1 %v2013_v19 }
0x1198   :  { %4894 = vmatprep.subr.bf16.mxu1 %v2131_v15 }
0x119a   :  { %4883 = vmatmul.mubr.msk.bf16.vlgmr.msra.gmra.mxu1 %vm253_vm1, %v5828_v46 }
0x119b   :  { %4895 = vmatpush3.bf16.msra.mxu1 %v2131_v15  ;;  %4898 = vmatprep.mubr.msk.bf16.mxu1 %vm253_vm1, %v5822_v42 }
0x119c   :  { %4896 = vmatprep.subr.bf16.mxu1 %v2129_v26 }
0x119f   :  { %4897 = vmatpush3.bf16.msra.mxu1 %v2129_v26 }
0x11a2   :  { %4899 = vmatmul.mubr.msk.bf16.vlgmr.msra.gmra.mxu1 %vm253_vm1, %v5828_v46  ;;  %v5141_v46 = vld [vmem:[%s6333_s6 + $0x10] sm:$0xff]  }
0x11aa   :  { %v4892_v27 = vpop.f32.mrf.mxu0 }
0x11ab   :  { %v2122_v31 = vadd.f32 %v4892_v27, %v2077_v21 }
0x11ac   :  { %v2113_v28 = vpop.f32.mrf.mxu0 }
0x11ad   :  { %v2114_v39 = vadd.f32 %v2113_v28, %v2077_v21 }
0x11ae   :  { %v4893_v30 = vpop.f32.mrf.mxu0 }
0x11af   :  { %v2125_v35 = vadd.f32 %v4893_v30, %v2077_v21 }
0x11b0   :  { %v2116_v36 = vpop.f32.mrf.mxu0 }
0x11b1   :  { %v2189_v40 = vpack.c.bf16 %v2125_v35, %v2122_v31  ;;  %v2117_v41 = vadd.f32 %v2116_v36, %v2077_v21 }
0x11b3   :  { %v2188_v32 = vpack.c.bf16 %v2117_v41, %v2114_v39  ;;  %5096 = vmatprep.subr.msk.bf16.mxu0 %vm522_vm2, %v2189_v40  ;;  %v2200_v59 = vsel %vm522_vm2, %v2189_v40, 0 }
0x11b4   :  { %4903 = vmatpush3.bf16.xpose.msra.mxu0 %v2200_v59 }
0x11b5   :  { %5097 = vmatprep.subr.msk.bf16.mxu0 %vm522_vm2, %v2188_v32  ;;  %v2197_v42 = vsel %vm522_vm2, %v2188_v32, 0 }
0x11bc   :  { %4905 = vmatpush3.bf16.xpose.msra.mxu0 %v2197_v42 }
0x11bd   :  { %4924 = vmatprep.subr.bf16.mxu0 %v5141_v46 }
0x1252   :  { %v4876_v44 = vpop.f32.mrf.mxu1 }
0x1254   :  { %v1992_v47 = vpop.f32.mrf.mxu1 }
0x1256   :  { %v4877_v50 = vpop.f32.mrf.mxu1 }
0x1257   :  { %v2008_v0 = vpack.c.bf16 %v4877_v50, %v4876_v44 }
0x1258   :  { %v1995_v51 = vpop.f32.mrf.mxu1 }
0x1259   :  { %v2007_v63 = vpack.c.bf16 %v1995_v51, %v1992_v47 }
0x125a   :  { %v4884_v52 = vpop.f32.mrf.mxu1 }
0x125b   :  { %v2064_v60 = vadd.f32 %v4884_v52, %v2019_v25 }
0x125c   :  { %v2055_v53 = vpop.f32.mrf.mxu1 }
0x125d   :  { %v2056_v57 = vadd.f32 %v2055_v53, %v2019_v25 }
0x125e   :  { %v4885_v54 = vpop.f32.mrf.mxu1 }
0x125f   :  { %v2067_v55 = vadd.f32 %v4885_v54, %v2019_v25 }
0x1260   :  { %v2058_v56 = vpop.f32.mrf.mxu1 }
0x1261   :  { %v2059_v58 = vadd.f32 %v2058_v56, %v2019_v25  ;;  %v2187_v62 = vpack.c.bf16 %v2067_v55, %v2064_v60 }
0x1262   :  { %v4900_v39 = vpop.f32.mrf.mxu1 }
0x1263   :  { %v2186_v61 = vpack.c.bf16 %v2059_v58, %v2056_v57 }
0x1264   :  { %v2171_v40 = vpop.f32.mrf.mxu1 }
0x1265   :  { %4906 = vmatprep.mubr.msk.bf16.mxu0 %vm522_vm2, %v2186_v61 }
0x1266   :  { %4907 = vmatmul.mubr.msk.bf16.vlgmr.msra.gmra.mxu0 %vm522_vm2, %v2187_v62  ;;  %v4901_v59 = vpop.f32.mrf.mxu1 }
0x1267   :  { %4926 = vmatprep.mubr.msk.bf16.mxu0 %vm522_vm2, %v2007_v63  ;;  %4925 = vmatpush3.bf16.msra.mxu0 %v5141_v46 }
0x1268   :  { %v2174_v44 = vpop.f32.mrf.mxu1 }
0x126e   :  { %4927 = vmatmul.mubr.msk.bf16.vlgmr.msra.gmra.mxu0 %vm522_vm2, %v2008_v0 }
0x1326   :  { %v4908_v1 = vpop.f32.mrf.mxu0 }
0x1327   :  { %v2253_v2 = vmul.f32 0.25, %v4908_v1 }
0x1328   :  { %v2236_v38 = vpop.f32.mrf.mxu0 }
0x1329   :  { %v2251_v4 = vmul.f32 0.25, %v2236_v38  ;;  %v2257_v12 = vadd.f32 %v5871_v34, %v2253_v2  ;;  %v5142_v38 = vld [vmem:[%s6333_s6 + $0x18] sm:$0xff]  }
0x132a   :  { %v4909_v6 = vpop.f32.mrf.mxu0 }
0x132b   :  { %v2255_v5 = vadd.f32 %v5853_v13, %v2251_v4  ;;  %v2254_v9 = vmul.f32 0.25, %v4909_v6  ;;  %v2265_v17 = vsel %vm253_vm1, %v2257_v12, -inf }
0x132c   :  { %v2239_v37 = vpop.f32.mrf.mxu0 }
0x132d   :  { %v2252_v3 = vmul.f32 0.25, %v2239_v37  ;;  %v2259_v11 = vsel %vm253_vm1, %v2255_v5, -inf  ;;  %v2258_v49 = vadd.f32 %v5858_v29, %v2254_v9 }
0x132e   :  { %2260 = vmax.xlane.f32.xlu0 %v2259_v11 }
0x132f   :  { %v2256_v14 = vadd.f32 %v5864_v20, %v2252_v3  ;;  %v2268_v13 = vsel %vm253_vm1, %v2258_v49, -inf  ;;  %v4928_v3 = vpop.f32.mrf.mxu0 }
0x1331   :  { %v2262_v16 = vsel %vm253_vm1, %v2256_v14, -inf  ;;  %v2473_v11 = vpop.f32.mrf.mxu0 }
0x1332   :  { %2266 = vmax.xlane.f32.xlu0 %v2265_v17  ;;  %2263 = vmax.xlane.f32.xlu1 %v2262_v16  ;;  %v4411_v16 = vld [vmem:[%s6331_s10 + $0xc] ss:$0 sm:$0xff] }
0x1333   :  { %v4929_v17 = vpop.f32.mrf.mxu0 }
0x1336   :  { %2269 = vmax.xlane.f32.xlu0 %v2268_v13 }
0x13b7   :  { %v2261_v18 = vpop.xlane.xlu0 %2260 }
0x13b8   :  { %v2271_v24 = vsub.f32 %v2255_v5, %v2261_v18 }
0x13ba   :  { %v2275_v48 = vmul.f32 1.442695, %v2271_v24 }
0x13bb   :  { %v2267_v10 = vpop.xlane.xlu0 %2266  ;;  %v2264_v19 = vpop.xlane.xlu1 %2263 }
0x13bc   :  { %v2273_v8 = vsub.f32 %v2257_v12, %v2267_v10  ;;  %v2272_v34 = vsub.f32 %v2256_v14, %v2264_v19 }
0x13be   :  { %v2279_v21 = vmul.f32 1.442695, %v2273_v8  ;;  %v2277_v20 = vmul.f32 1.442695, %v2272_v34  ;;  %v2476_v8 = vpop.f32.mrf.mxu0 }
0x13bf   :  { %v2270_v23 = vpop.xlane.xlu0 %2269 }
0x13c0   :  { %5249 = vpow2.f32 %v2279_v21  ;;  %v2274_v25 = vsub.f32 %v2258_v49, %v2270_v23 }
0x13c1   :  { %5251 = vpow2.f32 %v2277_v20 }
0x13c2   :  { %5253 = vpow2.f32 %v2275_v48  ;;  %v2281_v29 = vmul.f32 1.442695, %v2274_v25 }
0x13c4   :  { %5255 = vpow2.f32 %v2281_v29 }
0x13cd   :  { %v5250_v15 = vpop.eup %5249 }
0x13ce   :  { %v5252_v26 = vpop.eup %5251  ;;  %v2289_v27 = vsel %vm253_vm1, %v5250_v15, 0.0 }
0x13cf   :  { %v5254_v28 = vpop.eup %5253  ;;  %2290 = vadd.xlane.f32.xlu1 %v2289_v27  ;;  %v2286_v30 = vsel %vm253_vm1, %v5252_v26, 0.0 }
0x13d0   :  { %2287 = vadd.xlane.f32.xlu0 %v2286_v30  ;;  %v2283_v35 = vsel %vm253_vm1, %v5254_v28, 0.0 }
0x13d1   :  { %v5256_v31 = vpop.eup %5255 }
0x13d2   :  { %v2292_v36 = vsel %vm253_vm1, %v5256_v31, 0.0 }
0x13d3   :  { %2284 = vadd.xlane.f32.xlu1 %v2283_v35 }
0x13d4   :  { %2293 = vadd.xlane.f32.xlu0 %v2292_v36 }
0x13e4   :  { %2134 = vrot.lane.b32.xlu1 %v5806_v7, %s5354_s21 }
0x1458   :  { %v2291_v41 = vpop.xlane.xlu1 %2290 }
0x1459   :  { %v2288_v32 = vpop.xlane.xlu0 %2287 }
0x145a   :  { %5257 = vrcp.f32 %v2288_v32 }
0x145b   :  { %5259 = vrcp.f32 %v2291_v41 }
0x145c   :  { %v2285_v42 = vpop.xlane.xlu1 %2284 }
0x145d   :  { %v2294_v46 = vpop.xlane.xlu0 %2293  ;;  %5261 = vrcp.f32 %v2285_v42 }
0x145e   :  { %5263 = vrcp.f32 %v2294_v46 }
0x1460   :  { %v2135_v47 = vpop.permute.xlu1 %2134 }
0x1461   :  { %v2172_v50 = vadd.f32 %v2171_v40, %v2135_v47  ;;  %v2180_v51 = vadd.f32 %v4900_v39, %v2135_v47  ;;  %v2175_v52 = vadd.f32 %v2174_v44, %v2135_v47  ;;  %v2183_v53 = vadd.f32 %v4901_v59, %v2135_v47 }
0x1463   :  { %v2306_v54 = vpack.c.bf16 %v2183_v53, %v2180_v51  ;;  %v2305_v7 = vpack.c.bf16 %v2175_v52, %v2172_v50 }
0x1465   :  { %4910 = vmatprep.subr.bf16.mxu1 %v2306_v54 }
0x1466   :  { %4911 = vmatpush3.bf16.msra.mxu1 %v2306_v54  ;;  %v5143_v54 = vld [vmem:[%s6334_s7 + $0x18] sm:$0xff]  }
0x1467   :  { %4912 = vmatprep.subr.bf16.mxu1 %v2305_v7  ;;  %v5258_v55 = vpop.eup %5257 }
0x1468   :  { %v5260_v56 = vpop.eup %5259  ;;  %v2300_v61 = vmul.f32 %v5258_v55, %v5252_v26 }
0x1469   :  { %v2301_v62 = vmul.f32 %v5260_v56, %v5250_v15 }
0x146a   :  { %v5262_v57 = vpop.eup %5261  ;;  %4913 = vmatpush3.bf16.msra.mxu1 %v2305_v7  ;;  %v5144_v7 = vld [vmem:[%s6334_s7 + $0x10] sm:$0xff]  }
0x146b   :  { %v5264_v58 = vpop.eup %5263  ;;  %v2299_v60 = vmul.f32 %v5262_v57, %v5254_v28  ;;  %4918 = vmatprep.subr.bf16.mxu1 %v5142_v38 }
0x146c   :  { %v2302_v63 = vmul.f32 %v5264_v58, %v5256_v31 }
0x146d   :  { %v2303_v0 = vpack.c.bf16 %v2300_v61, %v2299_v60 }
0x146e   :  { %v2304_v1 = vpack.c.bf16 %v2302_v63, %v2301_v62 }
0x146f   :  { %4914 = vmatprep.mubr.msk.bf16.mxu1 %vm253_vm1, %v2303_v0 }
0x1470   :  { %4915 = vmatmul.mubr.msk.bf16.vlgmr.msra.gmra.mxu1 %vm253_vm1, %v2304_v1 }
0x1471   :  { %4919 = vmatpush3.bf16.msra.mxu1 %v5142_v38 }
0x1472   :  { %4930 = vmatprep.subr.bf16.mxu1 %v5143_v54 }
0x1530   :  { %v4916_v2 = vpop.f32.mrf.mxu1 }
0x1532   :  { %v2347_v4 = vpop.f32.mrf.mxu1 }
0x1534   :  { %v4917_v6 = vpop.f32.mrf.mxu1 }
0x1535   :  { %v2363_v9 = vpack.c.bf16 %v4917_v6, %v4916_v2 }
0x1536   :  { %v2350_v5 = vpop.f32.mrf.mxu1 }
0x1537   :  { %v2362_v37 = vpack.c.bf16 %v2350_v5, %v2347_v4  ;;  %v4414_v5 = vld [vmem:[%s6331_s10 + $0xa] ss:$0 sm:$0xff] }
0x1539   :  { %4920 = vmatprep.mubr.msk.bf16.mxu1 %vm522_vm2, %v2362_v37 }
0x153a   :  { %4921 = vmatmul.mubr.msk.bf16.vlgmr.msra.gmra.mxu1 %vm522_vm2, %v2363_v9 }
0x153b   :  { %4931 = vmatpush3.bf16.msra.mxu1 %v5143_v54 }
0x153c   :  { %4932 = vmatprep.subr.bf16.mxu1 %v5144_v7 }
0x153f   :  { %4933 = vmatpush3.bf16.msra.mxu1 %v5144_v7 }
0x15fa   :  { %v4922_v12 = vpop.f32.mrf.mxu1 }
0x15fb   :  { %v2482_v14 = vadd.f32 %v4928_v3, %v4922_v12 }
0x15fc   :  { %v2412_v49 = vpop.f32.mrf.mxu1 }
0x15fd   :  { %v2490_v13 = vadd.f32 %v2482_v14, %v5757_v33  ;;  %v2474_v18 = vadd.f32 %v2473_v11, %v2412_v49  ;;  %v4415_v14 = vld [vmem:[%s6331_s10 + $0xb] ss:$0 sm:$0xff] }
0x15fe   :  { %v4923_v24 = vpop.f32.mrf.mxu1 }
0x15ff   :  { %v5948_v10 = vadd.f32 %v4411_v16, %v2490_v13  ;;  %v2488_v19 = vadd.f32 %v2474_v18, %v5759_v22  ;;  %v2485_v21 = vadd.f32 %v4929_v17, %v4923_v24 }
0x1600   :  { %v2415_v34 = vpop.f32.mrf.mxu1 }
0x1601   :  { %v5951_v48 = vadd.f32 %v4411_v16, %v2488_v19  ;;  %v2477_v20 = vadd.f32 %v2476_v8, %v2415_v34  ;;  %v2509_v23 = vsel %vm253_vm1, %v5948_v10, 0.0  ;;  %v2491_v33 = vadd.f32 %v2485_v21, %v5773_v45 }
0x1602   :  { %2510 = vadd.xlane.f32.xlu0 %v2509_v23  ;;  %v5145_v23 = vld [vmem:[%s6335_s8 + $0x38] sm:$0xff]  }
0x1603   :  { %v2489_v25 = vadd.f32 %v2477_v20, %v5766_v43  ;;  %v2503_v15 = vsel %vm253_vm1, %v5951_v48, 0.0  ;;  %v5961_v22 = vadd.f32 %v4411_v16, %v2491_v33  ;;  %4938 = vmatprep.subr.bf16.mxu0 %v5145_v23  ;;  %v5147_v33 = vld [vmem:[%s6335_s8 + $0x28] sm:$0xff]  }
0x1604   :  { %4939 = vmatpush3.bf16.msra.mxu0 %v5145_v23 }
0x1605   :  { %v5957_v29 = vadd.f32 %v4411_v16, %v2489_v25  ;;  %v2512_v27 = vsel %vm253_vm1, %v5961_v22, 0.0  ;;  %v5146_v25 = vld [vmem:[%s6335_s8 + $0x30] sm:$0xff]  }
0x1606   :  { %2504 = vadd.xlane.f32.xlu0 %v2503_v15  ;;  %4940 = vmatprep.subr.bf16.mxu0 %v5146_v25  ;;  %v5148_v15 = vld [vmem:[%s6335_s8 + $0x20] sm:$0xff]  }
0x1607   :  { %v2506_v26 = vsel %vm253_vm1, %v5957_v29, 0.0 }
0x1608   :  { %4941 = vmatpush3.bf16.msra.mxu0 %v5146_v25 }
0x1609   :  { %4942 = vmatprep.subr.bf16.mxu0 %v5147_v33 }
0x160a   :  { %2507 = vadd.xlane.f32.xlu0 %v2506_v26  ;;  %v4421_v26 = vld [vmem:[%s6331_s10 + $0xf] ss:$0 sm:$0xff] }
0x160c   :  { %4943 = vmatpush3.bf16.msra.mxu0 %v5147_v33 }
0x160d   :  { %4944 = vmatprep.subr.bf16.mxu0 %v5148_v15 }
0x160e   :  { %2513 = vadd.xlane.f32.xlu0 %v2512_v27 }
0x1610   :  { %4945 = vmatpush3.bf16.msra.mxu0 %v5148_v15 }
0x168b   :  { %v2511_v28 = vpop.xlane.xlu0 %2510 }
0x168c   :  { %v2517_v43 = vmul.f32 0.03125, %v2511_v28 }
0x168e   :  { %v2521_v31 = vsub.f32 %v5948_v10, %v2517_v43 }
0x168f   :  { %v2505_v30 = vpop.xlane.xlu0 %2504 }
0x1690   :  { %v2515_v45 = vmul.f32 0.03125, %v2505_v30  ;;  %v2525_v59 = vmul.f32 %v2521_v31, %v2521_v31 }
0x1692   :  { %v2519_v35 = vsub.f32 %v5951_v48, %v2515_v45  ;;  %v2533_v50 = vsel %vm253_vm1, %v2525_v59, 0.0 }
0x1693   :  { %v2508_v36 = vpop.xlane.xlu0 %2507 }
0x1694   :  { %v2516_v39 = vmul.f32 0.03125, %v2508_v36  ;;  %v2523_v40 = vmul.f32 %v2519_v35, %v2519_v35 }
0x1696   :  { %v2520_v41 = vsub.f32 %v5957_v29, %v2516_v39  ;;  %v2527_v32 = vsel %vm253_vm1, %v2523_v40, 0.0 }
0x1697   :  { %2528 = vadd.xlane.f32.xlu0 %v2527_v32  ;;  %v2514_v42 = vpop.xlane.xlu0 %2513 }
0x1698   :  { %v2518_v46 = vmul.f32 0.03125, %v2514_v42  ;;  %v2524_v44 = vmul.f32 %v2520_v41, %v2520_v41 }
0x169a   :  { %v2522_v47 = vsub.f32 %v5961_v22, %v2518_v46  ;;  %v2530_v51 = vsel %vm253_vm1, %v2524_v44, 0.0 }
0x169b   :  { %2534 = vadd.xlane.f32.xlu0 %v2533_v50  ;;  %2531 = vadd.xlane.f32.xlu1 %v2530_v51 }
0x169c   :  { %v2526_v52 = vmul.f32 %v2522_v47, %v2522_v47 }
0x169e   :  { %v2536_v53 = vsel %vm253_vm1, %v2526_v52, 0.0 }
0x169f   :  { %2537 = vadd.xlane.f32.xlu0 %v2536_v53 }
0x1720   :  { %v2529_v55 = vpop.xlane.xlu0 %2528 }
0x1721   :  { %v2539_v56 = vmul.f32 0.03125, %v2529_v55 }
0x1723   :  { %v2543_v57 = vadd.f32 1e-05, %v2539_v56 }
0x1724   :  { %v2532_v58 = vpop.xlane.xlu1 %2531  ;;  %v2535_v60 = vpop.xlane.xlu0 %2534 }
0x1725   :  { %5265 = vrsqrt.f32 %v2543_v57  ;;  %v2540_v61 = vmul.f32 0.03125, %v2532_v58  ;;  %v2541_v62 = vmul.f32 0.03125, %v2535_v60 }
0x1727   :  { %v2544_v63 = vadd.f32 1e-05, %v2540_v61  ;;  %v2545_v0 = vadd.f32 1e-05, %v2541_v62 }
0x1728   :  { %v2538_v1 = vpop.xlane.xlu0 %2537 }
0x1729   :  { %5267 = vrsqrt.f32 %v2544_v63  ;;  %v2542_v38 = vmul.f32 0.03125, %v2538_v1 }
0x172a   :  { %5269 = vrsqrt.f32 %v2545_v0 }
0x172b   :  { %v2546_v2 = vadd.f32 1e-05, %v2542_v38 }
0x172d   :  { %5271 = vrsqrt.f32 %v2546_v2 }
0x1732   :  { %v5266_v4 = vpop.eup %5265 }
0x1733   :  { %v2551_v6 = vmul.f32 %v5266_v4, %v2519_v35 }
0x1735   :  { %v2559_v11 = vmul.f32 %v4414_v5, %v2551_v6 }
0x1736   :  { %v5268_v37 = vpop.eup %5267 }
0x1737   :  { %v5270_v9 = vpop.eup %5269  ;;  %v2552_v3 = vmul.f32 %v5268_v37, %v2520_v41  ;;  %v2567_v13 = vadd.f32 %v4415_v14, %v2559_v11 }
0x1738   :  { %v2553_v12 = vmul.f32 %v5270_v9, %v2521_v31 }
0x1739   :  { %v2560_v17 = vmul.f32 %v4414_v5, %v2552_v3 }
0x173a   :  { %v5272_v16 = vpop.eup %5271  ;;  %v2561_v24 = vmul.f32 %v4414_v5, %v2553_v12 }
0x173b   :  { %v2554_v49 = vmul.f32 %v5272_v16, %v2522_v47  ;;  %v2568_v18 = vadd.f32 %v4415_v14, %v2560_v17 }
0x173c   :  { %v2569_v34 = vadd.f32 %v4415_v14, %v2561_v24 }
0x173d   :  { %v2576_v19 = vpack.c.bf16 %v2568_v18, %v2567_v13  ;;  %v2562_v8 = vmul.f32 %v4414_v5, %v2554_v49  ;;  %v4441_v13 = vld [vmem:[%s6331_s10 + $0xd] ss:$0 sm:$0xff] }
0x173f   :  { %4934 = vmatprep.mubr.msk.bf16.mxu1 %vm253_vm1, %v2576_v19  ;;  %v2570_v21 = vadd.f32 %v4415_v14, %v2562_v8 }
0x1741   :  { %v2577_v20 = vpack.c.bf16 %v2570_v21, %v2569_v34 }
0x1743   :  { %4935 = vmatmul.mubr.msk.bf16.vlgmr.msra.gmra.mxu1 %vm253_vm1, %v2577_v20 }
0x1803   :  { %v4936_v27 = vpop.f32.mrf.mxu1 }
0x1804   :  { %v2644_v28 = vadd.f32 %v4936_v27, %v4421_v26 }
0x1805   :  { %v2635_v43 = vpop.f32.mrf.mxu1 }
0x1806   :  { %v2652_v30 = vmul.f32 %v2644_v28, %v2644_v28  ;;  %v2636_v45 = vadd.f32 %v4421_v26, %v2635_v43 }
0x1807   :  { %v4937_v31 = vpop.f32.mrf.mxu1 }
0x1808   :  { %v2656_v35 = vmul.f32 %v2652_v30, %v2644_v28  ;;  %v2650_v36 = vmul.f32 %v2636_v45, %v2636_v45  ;;  %v2647_v39 = vadd.f32 %v4937_v31, %v4421_v26 }
0x1809   :  { %v2638_v40 = vpop.f32.mrf.mxu1 }
0x180a   :  { %v2660_v41 = vmul.f32 0.044715, %v2656_v35  ;;  %v2654_v32 = vmul.f32 %v2650_v36, %v2636_v45  ;;  %v2653_v59 = vmul.f32 %v2647_v39, %v2647_v39  ;;  %v2639_v42 = vadd.f32 %v4421_v26, %v2638_v40 }
0x180c   :  { %v2664_v46 = vadd.f32 %v2660_v41, %v2644_v28  ;;  %v2658_v44 = vmul.f32 0.044715, %v2654_v32  ;;  %v2657_v47 = vmul.f32 %v2653_v59, %v2647_v39  ;;  %v2651_v50 = vmul.f32 %v2639_v42, %v2639_v42 }
0x180e   :  { %v2668_v51 = vmul.f32 0.7978846, %v2664_v46  ;;  %v2662_v52 = vadd.f32 %v2658_v44, %v2636_v45  ;;  %v2661_v53 = vmul.f32 0.044715, %v2657_v47  ;;  %v2655_v54 = vmul.f32 %v2651_v50, %v2639_v42 }
0x1810   :  { %v2666_v7 = vmul.f32 0.7978846, %v2662_v52  ;;  %v2665_v55 = vadd.f32 %v2661_v53, %v2647_v39  ;;  %v2659_v56 = vmul.f32 0.044715, %v2655_v54  ;;  %5273 = vtanh.f32 %v2668_v51  ;;  %v6056_v54 = vld [vmem:[%s6331_s10 + $0x16] ss:$0 sm:$0xff] }
0x1812   :  { %5275 = vtanh.f32 %v2666_v7  ;;  %v2669_v57 = vmul.f32 0.7978846, %v2665_v55  ;;  %v2663_v58 = vadd.f32 %v2659_v56, %v2639_v42 }
0x1814   :  { %5277 = vtanh.f32 %v2669_v57  ;;  %v2667_v60 = vmul.f32 0.7978846, %v2663_v58 }
0x1816   :  { %5279 = vtanh.f32 %v2667_v60 }
0x181d   :  { %v5274_v61 = vpop.eup %5273 }
0x181e   :  { %v2676_v1 = vadd.f32 1.0, %v5274_v61 }
0x181f   :  { %v5276_v62 = vpop.eup %5275 }
0x1820   :  { %v2674_v63 = vadd.f32 1.0, %v5276_v62  ;;  %v2680_v37 = vmul.f32 0.5, %v2676_v1 }
0x1821   :  { %v5278_v0 = vpop.eup %5277 }
0x1822   :  { %v2677_v38 = vadd.f32 1.0, %v5278_v0  ;;  %v2678_v4 = vmul.f32 0.5, %v2674_v63  ;;  %v2684_v14 = vmul.f32 %v2680_v37, %v2644_v28 }
0x1823   :  { %v5280_v2 = vpop.eup %5279 }
0x1824   :  { %v2681_v6 = vmul.f32 0.5, %v2677_v38  ;;  %v2675_v5 = vadd.f32 1.0, %v5280_v2  ;;  %v2682_v11 = vmul.f32 %v2678_v4, %v2636_v45 }
0x1826   :  { %v2679_v9 = vmul.f32 0.5, %v2675_v5  ;;  %v2685_v3 = vmul.f32 %v2681_v6, %v2647_v39 }
0x1828   :  { %v2683_v12 = vmul.f32 %v2679_v9, %v2639_v42  ;;  %v2696_v16 = vpack.c.bf16 %v2685_v3, %v2684_v14  ;;  %v4444_v9 = vld [vmem:[%s6331_s10 + $0x10] ss:$0 sm:$0xff] }
0x182a   :  { %v2695_v17 = vpack.c.bf16 %v2683_v12, %v2682_v11 }
0x182c   :  { %4946 = vmatprep.mubr.msk.bf16.mxu0 %vm191_vm0, %v2695_v17 }
0x182d   :  { %4947 = vmatmul.mubr.msk.bf16.vlgmr.msra.gmra.mxu0 %vm191_vm0, %v2696_v16  ;;  %v4445_v16 = vld [vmem:[%s6331_s10 + $0x11] ss:$0 sm:$0xff] }
0x18ed   :  { %v4948_v49 = vpop.f32.mrf.mxu0 }
0x18ee   :  { %v2778_v18 = vadd.f32 %v4948_v49, %v5948_v10 }
0x18ef   :  { %v2761_v24 = vpop.f32.mrf.mxu0 }
0x18f0   :  { %v6010_v19 = vadd.f32 %v4441_v13, %v2778_v18  ;;  %v2776_v8 = vadd.f32 %v2761_v24, %v5951_v48 }
0x18f1   :  { %v4949_v34 = vpop.f32.mrf.mxu0 }
0x18f2   :  { %v6013_v21 = vadd.f32 %v4441_v13, %v2776_v8  ;;  %v2798_v20 = vsel %vm253_vm1, %v6010_v19, 0.0  ;;  %v2779_v33 = vadd.f32 %v4949_v34, %v5961_v22  ;;  %v6037_v22 = vld [vmem:[%s6330_s5 + $0x20] sm:$0xff]  }
0x18f3   :  { %2799 = vadd.xlane.f32.xlu0 %v2798_v20  ;;  %v2764_v23 = vpop.f32.mrf.mxu0 }
0x18f4   :  { %v2777_v25 = vadd.f32 %v2764_v23, %v5957_v29  ;;  %v2792_v10 = vsel %vm253_vm1, %v6013_v21, 0.0  ;;  %v6023_v26 = vadd.f32 %v4441_v13, %v2779_v33  ;;  %v6032_v29 = vld [vmem:[%s6330_s5 + $0x28] sm:$0xff]  }
0x18f5   :  { %4950 = vmatprep.subr.bf16.mxu1 %v6032_v29 }
0x18f6   :  { %v6019_v15 = vadd.f32 %v4441_v13, %v2777_v25  ;;  %v2801_v27 = vsel %vm253_vm1, %v6023_v26, 0.0  ;;  %4951 = vmatpush3.bf16.msra.mxu1 %v6032_v29 }
0x18f7   :  { %2793 = vadd.xlane.f32.xlu0 %v2792_v10  ;;  %4952 = vmatprep.subr.bf16.mxu1 %v6037_v22 }
0x18f8   :  { %v2795_v48 = vsel %vm253_vm1, %v6019_v15, 0.0 }
0x18fa   :  { %4953 = vmatpush3.bf16.msra.mxu1 %v6037_v22 }
0x18fb   :  { %2796 = vadd.xlane.f32.xlu0 %v2795_v48 }
0x18ff   :  { %2802 = vadd.xlane.f32.xlu0 %v2801_v27 }
0x197c   :  { %v2800_v28 = vpop.xlane.xlu0 %2799 }
0x197d   :  { %v2806_v45 = vmul.f32 0.03125, %v2800_v28 }
0x197f   :  { %v2810_v40 = vsub.f32 %v6010_v19, %v2806_v45 }
0x1980   :  { %v2794_v43 = vpop.xlane.xlu0 %2793 }
0x1981   :  { %v2804_v30 = vmul.f32 0.03125, %v2794_v43  ;;  %v2814_v50 = vmul.f32 %v2810_v40, %v2810_v40 }
0x1983   :  { %v2808_v31 = vsub.f32 %v6013_v21, %v2804_v30  ;;  %v2822_v52 = vsel %vm253_vm1, %v2814_v50, 0.0 }
0x1984   :  { %v2797_v35 = vpop.xlane.xlu0 %2796 }
0x1985   :  { %v2805_v36 = vmul.f32 0.03125, %v2797_v35  ;;  %v2812_v39 = vmul.f32 %v2808_v31, %v2808_v31 }
0x1987   :  { %v2809_v41 = vsub.f32 %v6019_v15, %v2805_v36  ;;  %v2816_v32 = vsel %vm253_vm1, %v2812_v39, 0.0 }
0x1988   :  { %2817 = vadd.xlane.f32.xlu0 %v2816_v32  ;;  %v2803_v59 = vpop.xlane.xlu0 %2802 }
0x1989   :  { %v2807_v42 = vmul.f32 0.03125, %v2803_v59  ;;  %v2813_v46 = vmul.f32 %v2809_v41, %v2809_v41 }
0x198b   :  { %v2811_v44 = vsub.f32 %v6023_v26, %v2807_v42  ;;  %v2819_v47 = vsel %vm253_vm1, %v2813_v46, 0.0 }
0x198c   :  { %2820 = vadd.xlane.f32.xlu0 %v2819_v47 }
0x198d   :  { %v2815_v51 = vmul.f32 %v2811_v44, %v2811_v44 }
0x198f   :  { %v2825_v53 = vsel %vm253_vm1, %v2815_v51, 0.0 }
0x1990   :  { %2823 = vadd.xlane.f32.xlu0 %v2822_v52  ;;  %2826 = vadd.xlane.f32.xlu1 %v2825_v53 }
0x19a1   :  { %2939 = vrot.lane.b32.xlu1 %v6037_v22, %s5350_s22 }
0x19a5   :  { %2946 = vrot.lane.b32.xlu1 %v6056_v54, %s5350_s22 }
0x19a6   :  { %2941 = vrot.lane.b32.xlu0 %v6032_v29, %s5350_s22 }
0x19a9   :  { %3000 = vrot.lane.b32.xlu1 %v6032_v29, %s5351_s23 }
0x19aa   :  { %2998 = vrot.lane.b32.xlu0 %v6037_v22, %s5351_s23 }
0x1a11   :  { %v2818_v7 = vpop.xlane.xlu0 %2817 }
0x1a12   :  { %v2828_v55 = vmul.f32 0.03125, %v2818_v7 }
0x1a14   :  { %v2832_v56 = vadd.f32 1e-05, %v2828_v55 }
0x1a15   :  { %v2821_v57 = vpop.xlane.xlu0 %2820 }
0x1a16   :  { %5281 = vrsqrt.f32 %v2832_v56  ;;  %v2829_v58 = vmul.f32 0.03125, %v2821_v57 }
0x1a18   :  { %v2833_v60 = vadd.f32 1e-05, %v2829_v58 }
0x1a19   :  { %v2827_v61 = vpop.xlane.xlu1 %2826  ;;  %v2824_v62 = vpop.xlane.xlu0 %2823 }
0x1a1a   :  { %5283 = vrsqrt.f32 %v2833_v60  ;;  %v2831_v63 = vmul.f32 0.03125, %v2827_v61  ;;  %v2830_v0 = vmul.f32 0.03125, %v2824_v62  ;;  %v6103_v60 = vld [vmem:[%s6332_s3 + $0x30] sm:$0xff] }
0x1a1c   :  { %v2835_v1 = vadd.f32 1e-05, %v2831_v63  ;;  %v2834_v38 = vadd.f32 1e-05, %v2830_v0  ;;  %v6109_v0 = vld [vmem:[%s6332_s3 + $0x20] sm:$0xff] }
0x1a1d   :  { %v2940_v2 = vpop.permute.xlu1 %2939  ;;  %v2942_v4 = vpop.permute.xlu0 %2941 }
0x1a1e   :  { %5285 = vrsqrt.f32 %v2835_v1  ;;  %4958 = vmatprep.subr.bf16.mxu1 %v2942_v4 }
0x1a1f   :  { %5287 = vrsqrt.f32 %v2834_v38 }
0x1a21   :  { %v2947_v6 = vpop.permute.xlu1 %2946  ;;  %v2999_v11 = vpop.permute.xlu0 %2998 }
0x1a23   :  { %v5282_v5 = vpop.eup %5281 }
0x1a24   :  { %v2840_v37 = vmul.f32 %v5282_v5, %v2808_v31 }
0x1a25   :  { %v3001_v3 = vpop.permute.xlu1 %3000 }
0x1a26   :  { %4966 = vmatprep.subr.bf16.mxu0 %v3001_v3  ;;  %v2848_v14 = vmul.f32 %v4444_v9, %v2840_v37  ;;  %v6117_v37 = vld [vmem:[%s6332_s3 + $0x28] sm:$0xff] }
0x1a27   :  { %v5284_v12 = vpop.eup %5283  ;;  %4967 = vmatpush3.bf16.msra.mxu0 %v3001_v3  ;;  %v6123_v3 = vld [vmem:[%s6332_s3 + $0x38] sm:$0xff] }
0x1a28   :  { %v2841_v17 = vmul.f32 %v5284_v12, %v2809_v41  ;;  %4968 = vmatprep.subr.bf16.mxu0 %v2999_v11  ;;  %v2856_v8 = vadd.f32 %v4445_v16, %v2848_v14 }
0x1a2a   :  { %v2849_v49 = vmul.f32 %v4444_v9, %v2841_v17 }
0x1a2b   :  { %v5286_v13 = vpop.eup %5285  ;;  %4969 = vmatpush3.bf16.msra.mxu0 %v2999_v11 }
0x1a2c   :  { %v5288_v18 = vpop.eup %5287  ;;  %v2843_v24 = vmul.f32 %v5286_v13, %v2811_v44  ;;  %v2857_v34 = vadd.f32 %v4445_v16, %v2849_v49 }
0x1a2d   :  { %v2842_v20 = vmul.f32 %v5288_v18, %v2810_v40 }
0x1a2e   :  { %v2851_v23 = vmul.f32 %v4444_v9, %v2843_v24  ;;  %v6072_v25 = vpack.c.bf16 %v2857_v34, %v2856_v8 }
0x1a2f   :  { %v2850_v33 = vmul.f32 %v4444_v9, %v2842_v20 }
0x1a30   :  { %4954 = vmatprep.mubr.msk.bf16.mxu1 %vm253_vm1, %v6072_v25  ;;  %4970 = vmatprep.mubr.msk.bf16.mxu0 %vm253_vm1, %v6072_v25  ;;  %v2859_v10 = vadd.f32 %v4445_v16, %v2851_v23 }
0x1a31   :  { %v2858_v48 = vadd.f32 %v4445_v16, %v2850_v33 }
0x1a33   :  { %v6078_v27 = vpack.c.bf16 %v2859_v10, %v2858_v48 }
0x1a35   :  { %4955 = vmatmul.mubr.msk.bf16.vlgmr.msra.gmra.mxu1 %vm253_vm1, %v6078_v27  ;;  %4971 = vmatmul.mubr.msk.bf16.vlgmr.msra.gmra.mxu0 %vm253_vm1, %v6078_v27 }
0x1a36   :  { %4959 = vmatpush3.bf16.msra.mxu1 %v2942_v4  ;;  %4962 = vmatprep.mubr.msk.bf16.mxu1 %vm253_vm1, %v6072_v25 }
0x1a37   :  { %4960 = vmatprep.subr.bf16.mxu1 %v2940_v2 }
0x1a3a   :  { %4961 = vmatpush3.bf16.msra.mxu1 %v2940_v2 }
0x1a3d   :  { %4963 = vmatmul.mubr.msk.bf16.vlgmr.msra.gmra.mxu1 %vm253_vm1, %v6078_v27 }
0x1af5   :  { %v4956_v28 = vpop.f32.mrf.mxu1 }
0x1af6   :  { %v2933_v7 = vadd.f32 %v4956_v28, %v6056_v54 }
0x1af7   :  { %v2924_v43 = vpop.f32.mrf.mxu1 }
0x1af8   :  { %v2925_v31 = vadd.f32 %v6056_v54, %v2924_v43 }
0x1af9   :  { %v4957_v30 = vpop.f32.mrf.mxu1 }
0x1afa   :  { %v2936_v53 = vadd.f32 %v4957_v30, %v6056_v54 }
0x1afb   :  { %v2927_v45 = vpop.f32.mrf.mxu1 }
0x1afc   :  { %v2928_v35 = vadd.f32 %v6056_v54, %v2927_v45  ;;  %v3057_v55 = vpack.c.bf16 %v2936_v53, %v2933_v7 }
0x1afd   :  { %v4964_v36 = vpop.f32.mrf.mxu1 }
0x1afe   :  { %v3056_v39 = vpack.c.bf16 %v2928_v35, %v2925_v31  ;;  %v2992_v32 = vadd.f32 %v4964_v36, %v2947_v6 }
0x1aff   :  { %v2983_v40 = vpop.f32.mrf.mxu1 }
0x1b00   :  { %4978 = vmatprep.mubr.msk.bf16.mxu1 %vm522_vm2, %v3056_v39  ;;  %v2984_v46 = vadd.f32 %v2983_v40, %v2947_v6 }
0x1b01   :  { %v4965_v41 = vpop.f32.mrf.mxu1 }
0x1b02   :  { %v2995_v59 = vadd.f32 %v4965_v41, %v2947_v6 }
0x1b03   :  { %v2986_v42 = vpop.f32.mrf.mxu1 }
0x1b04   :  { %v3059_v44 = vpack.c.bf16 %v2995_v59, %v2992_v32  ;;  %v2987_v47 = vadd.f32 %v2986_v42, %v2947_v6  ;;  %v4972_v32 = vpop.f32.mrf.mxu0 }
0x1b06   :  { %v3058_v50 = vpack.c.bf16 %v2987_v47, %v2984_v46  ;;  %5098 = vmatprep.subr.msk.bf16.mxu1 %vm522_vm2, %v3059_v44  ;;  %v3070_v51 = vsel %vm522_vm2, %v3059_v44, 0  ;;  %v3041_v42 = vpop.f32.mrf.mxu0 }
0x1b07   :  { %4975 = vmatpush3.bf16.xpose.msra.mxu1 %v3070_v51 }
0x1b08   :  { %5099 = vmatprep.subr.msk.bf16.mxu1 %vm522_vm2, %v3058_v50  ;;  %v3067_v52 = vsel %vm522_vm2, %v3058_v50, 0 }
0x1b0f   :  { %4977 = vmatpush3.bf16.xpose.msra.mxu1 %v3067_v52 }
0x1b16   :  { %4979 = vmatmul.mubr.msk.bf16.vlgmr.msra.gmra.mxu1 %vm522_vm2, %v3057_v55 }
0x1b17   :  { %5002 = vmatprep.mubr.msk.bf16.mxu1 %vm253_vm1, %v6072_v25 }
0x1bd6   :  { %v4980_v56 = vpop.f32.mrf.mxu1 }
0x1bd7   :  { %v3123_v57 = vmul.f32 0.25, %v4980_v56 }
0x1bd8   :  { %v3106_v58 = vpop.f32.mrf.mxu1 }
0x1bd9   :  { %v3127_v61 = vadd.f32 %v6103_v60, %v3123_v57  ;;  %v3121_v62 = vmul.f32 0.25, %v3106_v58 }
0x1bda   :  { %v4981_v63 = vpop.f32.mrf.mxu1 }
0x1bdb   :  { %v3125_v1 = vadd.f32 %v6109_v0, %v3121_v62  ;;  %v3135_v38 = vsel %vm253_vm1, %v3127_v61, -inf  ;;  %v3124_v4 = vmul.f32 0.25, %v4981_v63 }
0x1bdc   :  { %3136 = vmax.xlane.f32.xlu0 %v3135_v38  ;;  %v3109_v2 = vpop.f32.mrf.mxu1 }
0x1bdd   :  { %v3122_v6 = vmul.f32 0.25, %v3109_v2  ;;  %v3129_v5 = vsel %vm253_vm1, %v3125_v1, -inf  ;;  %v3128_v11 = vadd.f32 %v6123_v3, %v3124_v4 }
0x1bde   :  { %3130 = vmax.xlane.f32.xlu1 %v3129_v5 }
0x1bdf   :  { %v3126_v9 = vadd.f32 %v6117_v37, %v3122_v6  ;;  %v3138_v14 = vsel %vm253_vm1, %v3128_v11, -inf }
0x1be1   :  { %v3132_v12 = vsel %vm253_vm1, %v3126_v9, -inf }
0x1be2   :  { %3133 = vmax.xlane.f32.xlu0 %v3132_v12 }
0x1be6   :  { %3139 = vmax.xlane.f32.xlu0 %v3138_v14 }
0x1bef   :  { %3297 = vrot.lane.b32.xlu1 %v6032_v29, %s5353_s1 }
0x1c65   :  { %v3137_v17 = vpop.xlane.xlu0 %3136 }
0x1c66   :  { %v3143_v16 = vsub.f32 %v3127_v61, %v3137_v17 }
0x1c67   :  { %v3131_v49 = vpop.xlane.xlu1 %3130 }
0x1c68   :  { %v3149_v13 = vmul.f32 1.442695, %v3143_v16  ;;  %v3141_v18 = vsub.f32 %v3125_v1, %v3131_v49 }
0x1c6a   :  { %5289 = vpow2.f32 %v3149_v13  ;;  %v3145_v24 = vmul.f32 1.442695, %v3141_v18 }
0x1c6b   :  { %v3134_v8 = vpop.xlane.xlu0 %3133  ;;  %v3298_v34 = vpop.permute.xlu1 %3297 }
0x1c6c   :  { %5291 = vpow2.f32 %v3145_v24  ;;  %4998 = vmatprep.subr.bf16.mxu1 %v3298_v34  ;;  %v3142_v20 = vsub.f32 %v3126_v9, %v3134_v8 }
0x1c6d   :  { %4999 = vmatpush3.bf16.msra.mxu1 %v3298_v34 }
0x1c6e   :  { %v3147_v10 = vmul.f32 1.442695, %v3142_v20 }
0x1c6f   :  { %v3140_v23 = vpop.xlane.xlu0 %3139 }
0x1c70   :  { %v3144_v33 = vsub.f32 %v3128_v11, %v3140_v23 }
0x1c72   :  { %v3151_v48 = vmul.f32 1.442695, %v3144_v33 }
0x1c74   :  { %5293 = vpow2.f32 %v3151_v48 }
0x1c75   :  { %5295 = vpow2.f32 %v3147_v10 }
0x1c77   :  { %v5290_v28 = vpop.eup %5289 }
0x1c78   :  { %v3159_v43 = vsel %vm253_vm1, %v5290_v28, 0.0 }
0x1c79   :  { %v5292_v30 = vpop.eup %5291  ;;  %3160 = vadd.xlane.f32.xlu1 %v3159_v43 }
0x1c7a   :  { %v3153_v45 = vsel %vm253_vm1, %v5292_v30, 0.0 }
0x1c7d   :  { %3154 = vadd.xlane.f32.xlu1 %v3153_v45 }
0x1c81   :  { %v5294_v31 = vpop.eup %5293 }
0x1c82   :  { %v3162_v35 = vsel %vm253_vm1, %v5294_v31, 0.0  ;;  %v5296_v36 = vpop.eup %5295 }
0x1c83   :  { %3163 = vadd.xlane.f32.xlu0 %v3162_v35  ;;  %v3156_v39 = vsel %vm253_vm1, %v5296_v36, 0.0 }
0x1c87   :  { %3157 = vadd.xlane.f32.xlu0 %v3156_v39 }
0x1c8e   :  { %3295 = vrot.lane.b32.xlu1 %v6037_v22, %s5353_s1 }
0x1c92   :  { %3239 = vrot.lane.b32.xlu1 %v6032_v29, %s5352_s20 }
0x1c96   :  { %3237 = vrot.lane.b32.xlu1 %v6037_v22, %s5352_s20 }
0x1c9a   :  { %3243 = vrot.lane.b32.xlu1 %v6056_v54, %s5352_s20 }
0x1c9d   :  { %3004 = vrot.lane.b32.xlu0 %v6056_v54, %s5351_s23 }
0x1c9e   :  { %3353 = vrot.lane.b32.xlu1 %v6037_v22, %s5354_s21  ;;  %v4973_v22 = vpop.f32.mrf.mxu0 }
0x1ca0   :  { %v3044_v47 = vpop.f32.mrf.mxu0 }
0x1ca1   :  { %3301 = vrot.lane.b32.xlu0 %v6056_v54, %s5353_s1 }
0x1ca5   :  { %3355 = vrot.lane.b32.xlu0 %v6032_v29, %s5354_s21 }
0x1d02   :  { %v3161_v40 = vpop.xlane.xlu1 %3160 }
0x1d06   :  { %v3155_v41 = vpop.xlane.xlu1 %3154 }
0x1d0a   :  { %v3296_v59 = vpop.permute.xlu1 %3295 }
0x1d0b   :  { %5000 = vmatprep.subr.bf16.mxu1 %v3296_v59 }
0x1d0c   :  { %5001 = vmatpush3.bf16.msra.mxu1 %v3296_v59  ;;  %v3164_v46 = vpop.xlane.xlu0 %3163 }
0x1d0d   :  { %5297 = vrcp.f32 %v3164_v46 }
0x1d0e   :  { %5299 = vrcp.f32 %v3155_v41  ;;  %v3240_v56 = vpop.permute.xlu1 %3239 }
0x1d0f   :  { %5003 = vmatmul.mubr.msk.bf16.vlgmr.msra.gmra.mxu1 %vm253_vm1, %v6078_v27  ;;  %5301 = vrcp.f32 %v3161_v40 }
0x1d10   :  { %v3158_v44 = vpop.xlane.xlu0 %3157 }
0x1d11   :  { %5303 = vrcp.f32 %v3158_v44 }
0x1d12   :  { %v3238_v2 = vpop.permute.xlu1 %3237 }
0x1d14   :  { %v3005_v50 = vpop.permute.xlu0 %3004 }
0x1d15   :  { %v3042_v29 = vadd.f32 %v3041_v42, %v3005_v50  ;;  %v3050_v51 = vadd.f32 %v4972_v32, %v3005_v50  ;;  %v3045_v52 = vadd.f32 %v3044_v47, %v3005_v50  ;;  %v3053_v53 = vadd.f32 %v4973_v22, %v3005_v50 }
0x1d16   :  { %v3244_v11 = vpop.permute.xlu1 %3243 }
0x1d17   :  { %v3176_v7 = vpack.c.bf16 %v3053_v53, %v3050_v51  ;;  %v3175_v55 = vpack.c.bf16 %v3045_v52, %v3042_v29 }
0x1d18   :  { %v3302_v5 = vpop.permute.xlu0 %3301 }
0x1d19   :  { %4982 = vmatprep.subr.bf16.mxu0 %v3176_v7 }
0x1d1a   :  { %4983 = vmatpush3.bf16.msra.mxu0 %v3176_v7  ;;  %v5298_v57 = vpop.eup %5297  ;;  %v3354_v14 = vpop.permute.xlu1 %3353 }
0x1d1b   :  { %4984 = vmatprep.subr.bf16.mxu0 %v3175_v55  ;;  %v5300_v58 = vpop.eup %5299  ;;  %v3172_v63 = vmul.f32 %v5298_v57, %v5294_v31 }
0x1d1c   :  { %v5302_v61 = vpop.eup %5301  ;;  %v3169_v1 = vmul.f32 %v5300_v58, %v5292_v30  ;;  %v3356_v12 = vpop.permute.xlu0 %3355 }
0x1d1d   :  { %v3171_v4 = vmul.f32 %v5302_v61, %v5290_v28 }
0x1d1e   :  { %v5304_v62 = vpop.eup %5303  ;;  %4985 = vmatpush3.bf16.msra.mxu0 %v3175_v55 }
0x1d1f   :  { %v3170_v38 = vmul.f32 %v5304_v62, %v5296_v36  ;;  %4990 = vmatprep.subr.bf16.mxu0 %v3240_v56  ;;  %v3174_v9 = vpack.c.bf16 %v3172_v63, %v3171_v4 }
0x1d21   :  { %v3173_v6 = vpack.c.bf16 %v3170_v38, %v3169_v1 }
0x1d23   :  { %4986 = vmatprep.mubr.msk.bf16.mxu0 %vm253_vm1, %v3173_v6 }
0x1d24   :  { %4987 = vmatmul.mubr.msk.bf16.vlgmr.msra.gmra.mxu0 %vm253_vm1, %v3174_v9 }
0x1d25   :  { %4991 = vmatpush3.bf16.msra.mxu0 %v3240_v56  ;;  %4994 = vmatprep.mubr.msk.bf16.mxu0 %vm253_vm1, %v6072_v25 }
0x1d26   :  { %4992 = vmatprep.subr.bf16.mxu0 %v3238_v2 }
0x1d29   :  { %4993 = vmatpush3.bf16.msra.mxu0 %v3238_v2 }
0x1d2a   :  { %5006 = vmatprep.subr.bf16.mxu0 %v3356_v12 }
0x1d2c   :  { %4995 = vmatmul.mubr.msk.bf16.vlgmr.msra.gmra.mxu0 %vm253_vm1, %v6078_v27 }
0x1d2d   :  { %5007 = vmatpush3.bf16.msra.mxu0 %v3356_v12  ;;  %5010 = vmatprep.mubr.msk.bf16.mxu0 %vm253_vm1, %v6072_v25  ;;  %v5151_v25 = vld [vmem:[%s6333_s6 + $0x20] sm:$0xff]  }
0x1d2e   :  { %5008 = vmatprep.subr.bf16.mxu0 %v3354_v14 }
0x1d31   :  { %5009 = vmatpush3.bf16.msra.mxu0 %v3354_v14 }
0x1d34   :  { %5011 = vmatmul.mubr.msk.bf16.vlgmr.msra.gmra.mxu0 %vm253_vm1, %v6078_v27 }
0x1dcf   :  { %v5004_v17 = vpop.f32.mrf.mxu1 }
0x1dd0   :  { %v3347_v13 = vadd.f32 %v5004_v17, %v3302_v5 }
0x1dd1   :  { %v3338_v16 = vpop.f32.mrf.mxu1 }
0x1dd2   :  { %v3339_v8 = vadd.f32 %v3338_v16, %v3302_v5 }
0x1dd3   :  { %v5005_v49 = vpop.f32.mrf.mxu1 }
0x1dd4   :  { %v3350_v18 = vadd.f32 %v5005_v49, %v3302_v5 }
0x1dd5   :  { %v3341_v24 = vpop.f32.mrf.mxu1 }
0x1dd6   :  { %v3414_v34 = vpack.c.bf16 %v3350_v18, %v3347_v13  ;;  %v3342_v20 = vadd.f32 %v3341_v24, %v3302_v5 }
0x1dd8   :  { %v3413_v23 = vpack.c.bf16 %v3342_v20, %v3339_v8  ;;  %5100 = vmatprep.subr.msk.bf16.mxu1 %vm522_vm2, %v3414_v34  ;;  %v3425_v33 = vsel %vm522_vm2, %v3414_v34, 0 }
0x1dd9   :  { %5015 = vmatpush3.bf16.xpose.msra.mxu1 %v3425_v33 }
0x1dda   :  { %5101 = vmatprep.subr.msk.bf16.mxu1 %vm522_vm2, %v3413_v23  ;;  %v3422_v27 = vsel %vm522_vm2, %v3413_v23, 0 }
0x1de1   :  { %5017 = vmatpush3.bf16.xpose.msra.mxu1 %v3422_v27 }
0x1de2   :  { %5036 = vmatprep.subr.bf16.mxu1 %v5151_v25 }
0x1de4   :  { %v4988_v10 = vpop.f32.mrf.mxu0 }
0x1de6   :  { %v3217_v48 = vpop.f32.mrf.mxu0 }
0x1de8   :  { %v4989_v28 = vpop.f32.mrf.mxu0 }
0x1de9   :  { %v3233_v46 = vpack.c.bf16 %v4989_v28, %v4988_v10 }
0x1dea   :  { %v3220_v43 = vpop.f32.mrf.mxu0 }
0x1deb   :  { %v3232_v42 = vpack.c.bf16 %v3220_v43, %v3217_v48 }
0x1dec   :  { %v4996_v30 = vpop.f32.mrf.mxu0 }
0x1ded   :  { %v3289_v41 = vadd.f32 %v4996_v30, %v3244_v11 }
0x1dee   :  { %v3280_v45 = vpop.f32.mrf.mxu0 }
0x1def   :  { %v3281_v39 = vadd.f32 %v3280_v45, %v3244_v11 }
0x1df0   :  { %v4997_v31 = vpop.f32.mrf.mxu0 }
0x1df1   :  { %v3292_v35 = vadd.f32 %v4997_v31, %v3244_v11 }
0x1df2   :  { %v3283_v36 = vpop.f32.mrf.mxu0 }
0x1df3   :  { %v3284_v40 = vadd.f32 %v3283_v36, %v3244_v11  ;;  %v3412_v59 = vpack.c.bf16 %v3292_v35, %v3289_v41 }
0x1df4   :  { %v5012_v8 = vpop.f32.mrf.mxu0 }
0x1df5   :  { %v3411_v32 = vpack.c.bf16 %v3284_v40, %v3281_v39 }
0x1df6   :  { %v3396_v20 = vpop.f32.mrf.mxu0 }
0x1df7   :  { %5018 = vmatprep.mubr.msk.bf16.mxu1 %vm522_vm2, %v3411_v32 }
0x1df8   :  { %5019 = vmatmul.mubr.msk.bf16.vlgmr.msra.gmra.mxu1 %vm522_vm2, %v3412_v59 }
0x1df9   :  { %5038 = vmatprep.mubr.msk.bf16.mxu1 %vm522_vm2, %v3232_v42  ;;  %5037 = vmatpush3.bf16.msra.mxu1 %v5151_v25  ;;  %v5013_v25 = vpop.f32.mrf.mxu0 }
0x1dfb   :  { %v3399_v10 = vpop.f32.mrf.mxu0 }
0x1e00   :  { %5039 = vmatmul.mubr.msk.bf16.vlgmr.msra.gmra.mxu1 %vm522_vm2, %v3233_v46 }
0x1eb8   :  { %v5020_v22 = vpop.f32.mrf.mxu1 }
0x1eb9   :  { %v3478_v47 = vmul.f32 0.25, %v5020_v22 }
0x1eba   :  { %v3461_v44 = vpop.f32.mrf.mxu1 }
0x1ebb   :  { %v3476_v50 = vmul.f32 0.25, %v3461_v44  ;;  %v3482_v53 = vadd.f32 %v6103_v60, %v3478_v47  ;;  %v5152_v44 = vld [vmem:[%s6333_s6 + $0x28] sm:$0xff]  }
0x1ebc   :  { %v5021_v29 = vpop.f32.mrf.mxu1 }
0x1ebd   :  { %v3480_v51 = vadd.f32 %v6109_v0, %v3476_v50  ;;  %v3479_v7 = vmul.f32 0.25, %v5021_v29  ;;  %v3490_v61 = vsel %vm253_vm1, %v3482_v53, -inf }
0x1ebe   :  { %v3464_v52 = vpop.f32.mrf.mxu1 }
0x1ebf   :  { %v3477_v55 = vmul.f32 0.25, %v3464_v52  ;;  %v3484_v56 = vsel %vm253_vm1, %v3480_v51, -inf  ;;  %v3483_v58 = vadd.f32 %v6123_v3, %v3479_v7 }
0x1ec0   :  { %3485 = vmax.xlane.f32.xlu0 %v3484_v56  ;;  %v5040_v7 = vpop.f32.mrf.mxu1 }
0x1ec1   :  { %v3481_v57 = vadd.f32 %v6117_v37, %v3477_v55  ;;  %v3493_v0 = vsel %vm253_vm1, %v3483_v58, -inf }
0x1ec2   :  { %v3698_v55 = vpop.f32.mrf.mxu1 }
0x1ec3   :  { %v3487_v62 = vsel %vm253_vm1, %v3481_v57, -inf }
0x1ec4   :  { %3491 = vmax.xlane.f32.xlu0 %v3490_v61  ;;  %3488 = vmax.xlane.f32.xlu1 %v3487_v62  ;;  %v4485_v61 = vld [vmem:[%s6331_s10 + $0x14] ss:$0 sm:$0xff] }
0x1ec8   :  { %3494 = vmax.xlane.f32.xlu0 %v3493_v0 }
0x1f49   :  { %v3486_v63 = vpop.xlane.xlu0 %3485 }
0x1f4a   :  { %v3496_v60 = vsub.f32 %v3480_v51, %v3486_v63 }
0x1f4c   :  { %v3500_v37 = vmul.f32 1.442695, %v3496_v60 }
0x1f4d   :  { %v3489_v1 = vpop.xlane.xlu1 %3488  ;;  %v3492_v38 = vpop.xlane.xlu0 %3491 }
0x1f4e   :  { %v3497_v2 = vsub.f32 %v3481_v57, %v3489_v1  ;;  %v3498_v4 = vsub.f32 %v3482_v53, %v3492_v38 }
0x1f50   :  { %v3502_v6 = vmul.f32 1.442695, %v3497_v2  ;;  %v3504_v5 = vmul.f32 1.442695, %v3498_v4 }
0x1f51   :  { %v3495_v9 = vpop.xlane.xlu0 %3494 }
0x1f52   :  { %5305 = vpow2.f32 %v3502_v6  ;;  %v3499_v3 = vsub.f32 %v3483_v58, %v3495_v9  ;;  %v5041_v58 = vpop.f32.mrf.mxu1 }
0x1f53   :  { %5307 = vpow2.f32 %v3504_v5 }
0x1f54   :  { %v3506_v11 = vmul.f32 1.442695, %v3499_v3  ;;  %5309 = vpow2.f32 %v3500_v37  ;;  %v3701_v2 = vpop.f32.mrf.mxu1 }
0x1f56   :  { %5311 = vpow2.f32 %v3506_v11 }
0x1f5f   :  { %v5306_v12 = vpop.eup %5305 }
0x1f60   :  { %v5308_v14 = vpop.eup %5307  ;;  %v3511_v17 = vsel %vm253_vm1, %v5306_v12, 0.0 }
0x1f61   :  { %3512 = vadd.xlane.f32.xlu1 %v3511_v17  ;;  %v3514_v16 = vsel %vm253_vm1, %v5308_v14, 0.0  ;;  %v5310_v49 = vpop.eup %5309 }
0x1f62   :  { %3515 = vadd.xlane.f32.xlu0 %v3514_v16  ;;  %v3508_v24 = vsel %vm253_vm1, %v5310_v49, 0.0 }
0x1f63   :  { %v5312_v13 = vpop.eup %5311 }
0x1f64   :  { %v3517_v18 = vsel %vm253_vm1, %v5312_v13, 0.0 }
0x1f65   :  { %3518 = vadd.xlane.f32.xlu1 %v3517_v18 }
0x1f66   :  { %3509 = vadd.xlane.f32.xlu0 %v3508_v24 }
0x1f7c   :  { %3359 = vrot.lane.b32.xlu0 %v6056_v54, %s5354_s21 }
0x1fea   :  { %v3513_v34 = vpop.xlane.xlu1 %3512 }
0x1feb   :  { %v3516_v23 = vpop.xlane.xlu0 %3515 }
0x1fec   :  { %5313 = vrcp.f32 %v3516_v23 }
0x1fed   :  { %5315 = vrcp.f32 %v3513_v34 }
0x1fee   :  { %v3519_v33 = vpop.xlane.xlu1 %3518 }
0x1fef   :  { %5317 = vrcp.f32 %v3519_v33  ;;  %v3510_v27 = vpop.xlane.xlu0 %3509 }
0x1ff0   :  { %5319 = vrcp.f32 %v3510_v27 }
0x1ff3   :  { %v3360_v48 = vpop.permute.xlu0 %3359 }
0x1ff4   :  { %v3397_v28 = vadd.f32 %v3396_v20, %v3360_v48  ;;  %v3405_v43 = vadd.f32 %v5012_v8, %v3360_v48  ;;  %v3400_v30 = vadd.f32 %v3399_v10, %v3360_v48  ;;  %v3408_v45 = vadd.f32 %v5013_v25, %v3360_v48 }
0x1ff6   :  { %v3531_v31 = vpack.c.bf16 %v3408_v45, %v3405_v43  ;;  %v3530_v54 = vpack.c.bf16 %v3400_v30, %v3397_v28 }
0x1ff8   :  { %5022 = vmatprep.subr.bf16.mxu0 %v3531_v31 }
0x1ff9   :  { %5023 = vmatpush3.bf16.msra.mxu0 %v3531_v31  ;;  %v5314_v35 = vpop.eup %5313  ;;  %v5153_v31 = vld [vmem:[%s6334_s7 + $0x28] sm:$0xff]  }
0x1ffa   :  { %5024 = vmatprep.subr.bf16.mxu0 %v3530_v54  ;;  %v5316_v36 = vpop.eup %5315  ;;  %v3526_v41 = vmul.f32 %v5314_v35, %v5308_v14 }
0x1ffb   :  { %v3525_v42 = vmul.f32 %v5316_v36, %v5306_v12 }
0x1ffc   :  { %v5318_v39 = vpop.eup %5317 }
0x1ffd   :  { %v5320_v40 = vpop.eup %5319  ;;  %5025 = vmatpush3.bf16.msra.mxu0 %v3530_v54  ;;  %v3527_v32 = vmul.f32 %v5318_v39, %v5312_v13  ;;  %v5154_v54 = vld [vmem:[%s6334_s7 + $0x20] sm:$0xff]  }
0x1ffe   :  { %v3524_v59 = vmul.f32 %v5320_v40, %v5310_v49  ;;  %5030 = vmatprep.subr.bf16.mxu0 %v5152_v44 }
0x1fff   :  { %v3529_v46 = vpack.c.bf16 %v3527_v32, %v3526_v41 }
0x2000   :  { %v3528_v22 = vpack.c.bf16 %v3525_v42, %v3524_v59 }
0x2002   :  { %5026 = vmatprep.mubr.msk.bf16.mxu0 %vm253_vm1, %v3528_v22 }
0x2003   :  { %5027 = vmatmul.mubr.msk.bf16.vlgmr.msra.gmra.mxu0 %vm253_vm1, %v3529_v46 }
0x2004   :  { %5031 = vmatpush3.bf16.msra.mxu0 %v5152_v44 }
0x2005   :  { %5042 = vmatprep.subr.bf16.mxu0 %v5153_v31 }
0x20c3   :  { %v5028_v47 = vpop.f32.mrf.mxu0 }
0x20c5   :  { %v3572_v50 = vpop.f32.mrf.mxu0 }
0x20c7   :  { %v5029_v29 = vpop.f32.mrf.mxu0 }
0x20c8   :  { %v3588_v53 = vpack.c.bf16 %v5029_v29, %v5028_v47 }
0x20c9   :  { %v3575_v51 = vpop.f32.mrf.mxu0 }
0x20ca   :  { %v3587_v52 = vpack.c.bf16 %v3575_v51, %v3572_v50 }
0x20cc   :  { %5032 = vmatprep.mubr.msk.bf16.mxu0 %vm522_vm2, %v3587_v52 }
0x20cd   :  { %5033 = vmatmul.mubr.msk.bf16.vlgmr.msra.gmra.mxu0 %vm522_vm2, %v3588_v53  ;;  %v4488_v53 = vld [vmem:[%s6331_s10 + $0x12] ss:$0 sm:$0xff] }
0x20ce   :  { %5043 = vmatpush3.bf16.msra.mxu0 %v5153_v31 }
0x20cf   :  { %5044 = vmatprep.subr.bf16.mxu0 %v5154_v54 }
0x20d2   :  { %5045 = vmatpush3.bf16.msra.mxu0 %v5154_v54 }
0x218d   :  { %v5034_v56 = vpop.f32.mrf.mxu0 }
0x218e   :  { %v3707_v57 = vadd.f32 %v5040_v7, %v5034_v56 }
0x218f   :  { %v3637_v62 = vpop.f32.mrf.mxu0 }
0x2190   :  { %v3715_v0 = vadd.f32 %v3707_v57, %v6010_v19  ;;  %v3699_v63 = vadd.f32 %v3698_v55, %v3637_v62 }
0x2191   :  { %v5035_v60 = vpop.f32.mrf.mxu0 }
0x2192   :  { %v6198_v1 = vadd.f32 %v4485_v61, %v3715_v0  ;;  %v3713_v38 = vadd.f32 %v3699_v63, %v6013_v21  ;;  %v3710_v5 = vadd.f32 %v5041_v58, %v5035_v60 }
0x2193   :  { %v3640_v4 = vpop.f32.mrf.mxu0 }
0x2194   :  { %v6201_v6 = vadd.f32 %v4485_v61, %v3713_v38  ;;  %v3702_v37 = vadd.f32 %v3701_v2, %v3640_v4  ;;  %v3734_v9 = vsel %vm253_vm1, %v6198_v1, 0.0  ;;  %v3716_v19 = vadd.f32 %v3710_v5, %v6023_v26 }
0x2195   :  { %3735 = vadd.xlane.f32.xlu1 %v3734_v9  ;;  %v5155_v9 = vld [vmem:[%s6335_s8 + $0x58] sm:$0xff]  }
0x2196   :  { %v3714_v3 = vadd.f32 %v3702_v37, %v6019_v15  ;;  %v3728_v12 = vsel %vm253_vm1, %v6201_v6, 0.0  ;;  %v6211_v21 = vadd.f32 %v4485_v61, %v3716_v19  ;;  %5050 = vmatprep.subr.bf16.mxu1 %v5155_v9  ;;  %v5157_v19 = vld [vmem:[%s6335_s8 + $0x48] sm:$0xff]  }
0x2197   :  { %5051 = vmatpush3.bf16.msra.mxu1 %v5155_v9 }
0x2198   :  { %v6207_v11 = vadd.f32 %v4485_v61, %v3714_v3  ;;  %v3737_v17 = vsel %vm253_vm1, %v6211_v21, 0.0  ;;  %v4489_v61 = vld [vmem:[%s6331_s10 + $0x13] ss:$0 sm:$0xff] }
0x2199   :  { %3729 = vadd.xlane.f32.xlu1 %v3728_v12  ;;  %v5156_v3 = vld [vmem:[%s6335_s8 + $0x50] sm:$0xff]   ;;  %v5158_v12 = vld [vmem:[%s6335_s8 + $0x40] sm:$0xff]  }
0x219a   :  { %v3731_v14 = vsel %vm253_vm1, %v6207_v11, 0.0  ;;  %5052 = vmatprep.subr.bf16.mxu1 %v5156_v3 }
0x219b   :  { %5053 = vmatpush3.bf16.msra.mxu1 %v5156_v3 }
0x219c   :  { %5054 = vmatprep.subr.bf16.mxu1 %v5157_v19 }
0x219d   :  { %3732 = vadd.xlane.f32.xlu1 %v3731_v14  ;;  %v4495_v14 = vld [vmem:[%s6331_s10 + $0x17] ss:$0 sm:$0xff] }
0x219f   :  { %5055 = vmatpush3.bf16.msra.mxu1 %v5157_v19 }
0x21a0   :  { %5056 = vmatprep.subr.bf16.mxu1 %v5158_v12 }
0x21a1   :  { %3738 = vadd.xlane.f32.xlu1 %v3737_v17 }
0x21a3   :  { %5057 = vmatpush3.bf16.msra.mxu1 %v5158_v12 }
0x221e   :  { %v3736_v16 = vpop.xlane.xlu1 %3735 }
0x221f   :  { %v3742_v15 = vmul.f32 0.03125, %v3736_v16 }
0x2221   :  { %v3746_v26 = vsub.f32 %v6198_v1, %v3742_v15 }
0x2222   :  { %v3730_v49 = vpop.xlane.xlu1 %3729 }
0x2223   :  { %v3740_v13 = vmul.f32 0.03125, %v3730_v49  ;;  %v3750_v18 = vmul.f32 %v3746_v26, %v3746_v26 }
0x2225   :  { %v3744_v24 = vsub.f32 %v6201_v6, %v3740_v13  ;;  %v3758_v8 = vsel %vm253_vm1, %v3750_v18, 0.0 }
0x2226   :  { %3759 = vadd.xlane.f32.xlu0 %v3758_v8  ;;  %v3733_v34 = vpop.xlane.xlu1 %3732 }
0x2227   :  { %v3741_v20 = vmul.f32 0.03125, %v3733_v34  ;;  %v3748_v23 = vmul.f32 %v3744_v24, %v3744_v24 }
0x2229   :  { %v3745_v33 = vsub.f32 %v6207_v11, %v3741_v20  ;;  %v3752_v25 = vsel %vm253_vm1, %v3748_v23, 0.0 }
0x222a   :  { %3753 = vadd.xlane.f32.xlu1 %v3752_v25  ;;  %v3739_v27 = vpop.xlane.xlu1 %3738 }
0x222b   :  { %v3743_v10 = vmul.f32 0.03125, %v3739_v27  ;;  %v3749_v48 = vmul.f32 %v3745_v33, %v3745_v33 }
0x222d   :  { %v3747_v28 = vsub.f32 %v6211_v21, %v3743_v10  ;;  %v3755_v43 = vsel %vm253_vm1, %v3749_v48, 0.0 }
0x222e   :  { %3756 = vadd.xlane.f32.xlu1 %v3755_v43 }
0x222f   :  { %v3751_v30 = vmul.f32 %v3747_v28, %v3747_v28 }
0x2231   :  { %v3761_v45 = vsel %vm253_vm1, %v3751_v30, 0.0 }
0x2232   :  { %3762 = vadd.xlane.f32.xlu1 %v3761_v45 }
0x22af   :  { %v3760_v35 = vpop.xlane.xlu0 %3759 }
0x22b0   :  { %v3766_v36 = vmul.f32 0.03125, %v3760_v35 }
0x22b2   :  { %v3770_v41 = vadd.f32 1e-05, %v3766_v36 }
0x22b3   :  { %v3754_v39 = vpop.xlane.xlu1 %3753 }
0x22b4   :  { %v3764_v40 = vmul.f32 0.03125, %v3754_v39 }
0x22b6   :  { %v3768_v32 = vadd.f32 1e-05, %v3764_v40 }
0x22b7   :  { %v3757_v59 = vpop.xlane.xlu1 %3756 }
0x22b8   :  { %5321 = vrsqrt.f32 %v3768_v32  ;;  %v3765_v42 = vmul.f32 0.03125, %v3757_v59 }
0x22b9   :  { %5323 = vrsqrt.f32 %v3770_v41 }
0x22ba   :  { %v3769_v46 = vadd.f32 1e-05, %v3765_v42 }
0x22bb   :  { %v3763_v22 = vpop.xlane.xlu1 %3762 }
0x22bc   :  { %5325 = vrsqrt.f32 %v3769_v46  ;;  %v3767_v44 = vmul.f32 0.03125, %v3763_v22 }
0x22be   :  { %v3771_v47 = vadd.f32 1e-05, %v3767_v44 }
0x22c0   :  { %5327 = vrsqrt.f32 %v3771_v47 }
0x22c5   :  { %v5322_v50 = vpop.eup %5321 }
0x22c6   :  { %v3776_v29 = vmul.f32 %v5322_v50, %v3744_v24  ;;  %v5324_v51 = vpop.eup %5323 }
0x22c7   :  { %v3778_v7 = vmul.f32 %v5324_v51, %v3746_v26 }
0x22c8   :  { %v3784_v56 = vmul.f32 %v4488_v53, %v3776_v29 }
0x22c9   :  { %v5326_v52 = vpop.eup %5325  ;;  %v3786_v60 = vmul.f32 %v4488_v53, %v3778_v7 }
0x22ca   :  { %v3777_v55 = vmul.f32 %v5326_v52, %v3745_v33  ;;  %v3792_v0 = vadd.f32 %v4489_v61, %v3784_v56 }
0x22cb   :  { %v3794_v4 = vadd.f32 %v4489_v61, %v3786_v60 }
0x22cc   :  { %v3785_v57 = vmul.f32 %v4488_v53, %v3777_v55 }
0x22cd   :  { %v5328_v58 = vpop.eup %5327 }
0x22ce   :  { %v3779_v62 = vmul.f32 %v5328_v58, %v3747_v28  ;;  %v3793_v63 = vadd.f32 %v4489_v61, %v3785_v57 }
0x22d0   :  { %v3801_v38 = vpack.c.bf16 %v3793_v63, %v3792_v0  ;;  %v3787_v2 = vmul.f32 %v4488_v53, %v3779_v62  ;;  %v4515_v0 = vld [vmem:[%s6331_s10 + $0x15] ss:$0 sm:$0xff] }
0x22d2   :  { %5046 = vmatprep.mubr.msk.bf16.mxu0 %vm253_vm1, %v3801_v38  ;;  %v3795_v5 = vadd.f32 %v4489_v61, %v3787_v2 }
0x22d4   :  { %v3802_v37 = vpack.c.bf16 %v3795_v5, %v3794_v4 }
0x22d6   :  { %5047 = vmatmul.mubr.msk.bf16.vlgmr.msra.gmra.mxu0 %vm253_vm1, %v3802_v37 }
0x2396   :  { %v5048_v17 = vpop.f32.mrf.mxu0 }
0x2397   :  { %v3869_v16 = vadd.f32 %v5048_v17, %v4495_v14 }
0x2398   :  { %v3860_v15 = vpop.f32.mrf.mxu0 }
0x2399   :  { %v3877_v26 = vmul.f32 %v3869_v16, %v3869_v16  ;;  %v3861_v49 = vadd.f32 %v4495_v14, %v3860_v15 }
0x239a   :  { %v5049_v13 = vpop.f32.mrf.mxu0 }
0x239b   :  { %v3881_v18 = vmul.f32 %v3877_v26, %v3869_v16  ;;  %v3875_v24 = vmul.f32 %v3861_v49, %v3861_v49  ;;  %v3872_v8 = vadd.f32 %v5049_v13, %v4495_v14 }
0x239c   :  { %v3863_v34 = vpop.f32.mrf.mxu0 }
0x239d   :  { %v3885_v20 = vmul.f32 0.044715, %v3881_v18  ;;  %v3879_v23 = vmul.f32 %v3875_v24, %v3861_v49  ;;  %v3878_v33 = vmul.f32 %v3872_v8, %v3872_v8  ;;  %v3864_v25 = vadd.f32 %v4495_v14, %v3863_v34 }
0x239f   :  { %v3889_v27 = vadd.f32 %v3885_v20, %v3869_v16  ;;  %v3883_v10 = vmul.f32 0.044715, %v3879_v23  ;;  %v3882_v48 = vmul.f32 %v3878_v33, %v3872_v8  ;;  %v3876_v28 = vmul.f32 %v3864_v25, %v3864_v25 }
0x23a1   :  { %v3893_v43 = vmul.f32 0.7978846, %v3889_v27  ;;  %v3887_v30 = vadd.f32 %v3883_v10, %v3861_v49  ;;  %v3886_v45 = vmul.f32 0.044715, %v3882_v48  ;;  %v3880_v31 = vmul.f32 %v3876_v28, %v3864_v25 }
0x23a3   :  { %v3891_v54 = vmul.f32 0.7978846, %v3887_v30  ;;  %v3890_v35 = vadd.f32 %v3886_v45, %v3872_v8  ;;  %v3884_v36 = vmul.f32 0.044715, %v3880_v31  ;;  %5329 = vtanh.f32 %v3893_v43  ;;  %v5159_v30 = vld [vmem:[%s6338_s12 + $0x8] sm:$0xff]   ;;  %v5160_v45 = vld [vmem:[%s6338_s12] sm:$0xff]  }
0x23a4   :  { %5062 = vmatprep.subr.bf16.mxu0 %v5159_v30  ;;  %v5161_v31 = vld [vmem:[%s6339_s13 + $0x38] sm:$0xff]  }
0x23a5   :  { %5331 = vtanh.f32 %v3891_v54  ;;  %v3894_v39 = vmul.f32 0.7978846, %v3890_v35  ;;  %v3888_v40 = vadd.f32 %v3884_v36, %v3864_v25  ;;  %5063 = vmatpush3.bf16.msra.mxu0 %v5159_v30 }
0x23a6   :  { %5064 = vmatprep.subr.bf16.mxu0 %v5160_v45 }
0x23a7   :  { %5333 = vtanh.f32 %v3894_v39  ;;  %v3892_v41 = vmul.f32 0.7978846, %v3888_v40 }
0x23a9   :  { %5335 = vtanh.f32 %v3892_v41  ;;  %5065 = vmatpush3.bf16.msra.mxu0 %v5160_v45 }
0x23aa   :  { %5070 = vmatprep.subr.bf16.mxu0 %v5161_v31 }
0x23b0   :  { %v5330_v32 = vpop.eup %5329 }
0x23b1   :  { %v3901_v22 = vadd.f32 1.0, %v5330_v32 }
0x23b2   :  { %v5332_v59 = vpop.eup %5331 }
0x23b3   :  { %v3899_v42 = vadd.f32 1.0, %v5332_v59  ;;  %v3905_v52 = vmul.f32 0.5, %v3901_v22 }
0x23b4   :  { %v5334_v46 = vpop.eup %5333 }
0x23b5   :  { %v3902_v44 = vadd.f32 1.0, %v5334_v46  ;;  %v3903_v50 = vmul.f32 0.5, %v3899_v42  ;;  %v3909_v57 = vmul.f32 %v3905_v52, %v3869_v16 }
0x23b6   :  { %v5336_v47 = vpop.eup %5335 }
0x23b7   :  { %v3906_v29 = vmul.f32 0.5, %v3902_v44  ;;  %v3900_v51 = vadd.f32 1.0, %v5336_v47  ;;  %v3907_v55 = vmul.f32 %v3903_v50, %v3861_v49 }
0x23b9   :  { %v3904_v53 = vmul.f32 0.5, %v3900_v51  ;;  %v3910_v7 = vmul.f32 %v3906_v29, %v3872_v8  ;;  %v4516_v29 = vld [vmem:[%s6340_s11] ss:$0 sm:$0xff] }
0x23bb   :  { %v3908_v56 = vmul.f32 %v3904_v53, %v3864_v25  ;;  %v3921_v61 = vpack.c.bf16 %v3910_v7, %v3909_v57  ;;  %v4517_v7 = vld [vmem:[%s6340_s11 + $0x1] ss:$0 sm:$0xff] }
0x23bd   :  { %v3920_v58 = vpack.c.bf16 %v3908_v56, %v3907_v55 }
0x23bf   :  { %5058 = vmatprep.mubr.msk.bf16.mxu1 %vm191_vm0, %v3920_v58 }
0x23c0   :  { %5059 = vmatmul.mubr.msk.bf16.vlgmr.msra.gmra.mxu1 %vm191_vm0, %v3921_v61 }
0x2480   :  { %v5060_v62 = vpop.f32.mrf.mxu1 }
0x2481   :  { %v4003_v63 = vadd.f32 %v5060_v62, %v6198_v1 }
0x2482   :  { %v3986_v60 = vpop.f32.mrf.mxu1 }
0x2483   :  { %v4012_v38 = vadd.f32 %v4515_v0, %v4003_v63  ;;  %v4001_v2 = vadd.f32 %v3986_v60, %v6201_v6 }
0x2484   :  { %v5061_v4 = vpop.f32.mrf.mxu1 }
0x2485   :  { %v4010_v5 = vadd.f32 %v4515_v0, %v4001_v2  ;;  %v4022_v37 = vsel %vm253_vm1, %v4012_v38, 0.0  ;;  %v4004_v19 = vadd.f32 %v5061_v4, %v6211_v21 }
0x2486   :  { %4023 = vadd.xlane.f32.xlu1 %v4022_v37  ;;  %v3989_v9 = vpop.f32.mrf.mxu1  ;;  %v5162_v37 = vld [vmem:[%s6339_s13 + $0x30] sm:$0xff]  }
0x2487   :  { %v4002_v3 = vadd.f32 %v3989_v9, %v6207_v11  ;;  %v4016_v14 = vsel %vm253_vm1, %v4010_v5, 0.0  ;;  %v4013_v17 = vadd.f32 %v4515_v0, %v4004_v19  ;;  %v5163_v9 = vld [vmem:[%s6339_s13 + $0x28] sm:$0xff]   ;;  %v5165_v19 = vld [vmem:[%s6339_s13 + $0x18] sm:$0xff]  }
0x2489   :  { %v4011_v12 = vadd.f32 %v4515_v0, %v4002_v3  ;;  %v4025_v6 = vsel %vm253_vm1, %v4013_v17, 0.0  ;;  %v5164_v3 = vld [vmem:[%s6339_s13 + $0x20] sm:$0xff]  }
0x248a   :  { %4017 = vadd.xlane.f32.xlu1 %v4016_v14  ;;  %v5167_v14 = vld [vmem:[%s6339_s13 + $0x8] sm:$0xff]  }
0x248b   :  { %v4019_v1 = vsel %vm253_vm1, %v4011_v12, 0.0 }
0x248e   :  { %4020 = vadd.xlane.f32.xlu1 %v4019_v1 }
0x2492   :  { %4026 = vadd.xlane.f32.xlu1 %v4025_v6 }
0x250f   :  { %v4024_v16 = vpop.xlane.xlu1 %4023 }
0x2510   :  { %v4030_v49 = vmul.f32 0.03125, %v4024_v16  ;;  %v4518_v16 = vld [vmem:[%s6340_s11 + $0x2] ss:$0 sm:$0xff] }
0x2512   :  { %v4034_v21 = vsub.f32 %v4012_v38, %v4030_v49 }
0x2513   :  { %v4018_v15 = vpop.xlane.xlu1 %4017 }
0x2514   :  { %v4028_v26 = vmul.f32 0.03125, %v4018_v15  ;;  %v4038_v10 = vmul.f32 %v4034_v21, %v4034_v21 }
0x2516   :  { %v4032_v13 = vsub.f32 %v4010_v5, %v4028_v26  ;;  %v4046_v28 = vsel %vm253_vm1, %v4038_v10, 0.0 }
0x2517   :  { %v4021_v18 = vpop.xlane.xlu1 %4020 }
0x2518   :  { %v4029_v11 = vmul.f32 0.03125, %v4021_v18  ;;  %v4036_v24 = vmul.f32 %v4032_v13, %v4032_v13 }
0x251a   :  { %v4033_v8 = vsub.f32 %v4011_v12, %v4029_v11  ;;  %v4040_v34 = vsel %vm253_vm1, %v4036_v24, 0.0  ;;  %v5166_v12 = vld [vmem:[%s6339_s13 + $0x10] sm:$0xff]  }
0x251b   :  { %4041 = vadd.xlane.f32.xlu1 %v4040_v34  ;;  %v4027_v20 = vpop.xlane.xlu1 %4026 }
0x251c   :  { %v4031_v23 = vmul.f32 0.03125, %v4027_v20  ;;  %v4037_v33 = vmul.f32 %v4033_v8, %v4033_v8 }
0x251e   :  { %v4035_v25 = vsub.f32 %v4013_v17, %v4031_v23  ;;  %v4043_v27 = vsel %vm253_vm1, %v4037_v33, 0.0  ;;  %v5168_v17 = vld [vmem:[%s6339_s13] sm:$0xff]  }
0x251f   :  { %4044 = vadd.xlane.f32.xlu1 %v4043_v27  ;;  %v4523_v33 = vld [vmem:[%s6340_s11 + $0x3] ss:$0 sm:$0xff] }
0x2520   :  { %v4039_v48 = vmul.f32 %v4035_v25, %v4035_v25 }
0x2522   :  { %v4049_v43 = vsel %vm253_vm1, %v4039_v48, 0.0 }
0x2523   :  { %4047 = vadd.xlane.f32.xlu1 %v4046_v28  ;;  %4050 = vadd.xlane.f32.xlu0 %v4049_v43 }
0x25a4   :  { %v4042_v54 = vpop.xlane.xlu1 %4041 }
0x25a5   :  { %v4052_v35 = vmul.f32 0.03125, %v4042_v54 }
0x25a7   :  { %v4056_v36 = vadd.f32 1e-05, %v4052_v35 }
0x25a8   :  { %v4045_v39 = vpop.xlane.xlu1 %4044 }
0x25a9   :  { %5337 = vrsqrt.f32 %v4056_v36  ;;  %v4053_v40 = vmul.f32 0.03125, %v4045_v39 }
0x25ab   :  { %v4057_v41 = vadd.f32 1e-05, %v4053_v40 }
0x25ac   :  { %v4051_v32 = vpop.xlane.xlu0 %4050  ;;  %v4048_v59 = vpop.xlane.xlu1 %4047 }
0x25ad   :  { %5339 = vrsqrt.f32 %v4057_v41  ;;  %v4055_v42 = vmul.f32 0.03125, %v4051_v32  ;;  %v4054_v46 = vmul.f32 0.03125, %v4048_v59 }
0x25af   :  { %v4059_v22 = vadd.f32 1e-05, %v4055_v42  ;;  %v4058_v44 = vadd.f32 1e-05, %v4054_v46 }
0x25b1   :  { %5341 = vrsqrt.f32 %v4059_v22 }
0x25b2   :  { %5343 = vrsqrt.f32 %v4058_v44 }
0x25b6   :  { %v5338_v47 = vpop.eup %5337 }
0x25b7   :  { %v4064_v50 = vmul.f32 %v5338_v47, %v4032_v13 }
0x25b9   :  { %v4072_v53 = vmul.f32 %v4516_v29, %v4064_v50 }
0x25ba   :  { %v5340_v51 = vpop.eup %5339 }
0x25bb   :  { %v4065_v52 = vmul.f32 %v5340_v51, %v4033_v8  ;;  %v4080_v61 = vadd.f32 %v4517_v7, %v4072_v53 }
0x25bd   :  { %v4073_v55 = vmul.f32 %v4516_v29, %v4065_v52 }
0x25be   :  { %v5342_v56 = vpop.eup %5341 }
0x25bf   :  { %v5344_v57 = vpop.eup %5343  ;;  %v4067_v58 = vmul.f32 %v5342_v56, %v4035_v25  ;;  %v4081_v62 = vadd.f32 %v4517_v7, %v4073_v55 }
0x25c0   :  { %v4066_v0 = vmul.f32 %v5344_v57, %v4034_v21 }
0x25c1   :  { %v4088_v63 = vpack.c.bf16 %v4081_v62, %v4080_v61  ;;  %v4075_v60 = vmul.f32 %v4516_v29, %v4067_v58 }
0x25c2   :  { %v4074_v38 = vmul.f32 %v4516_v29, %v4066_v0 }
0x25c3   :  { %5066 = vmatprep.mubr.msk.bf16.mxu0 %vm253_vm1, %v4088_v63  ;;  %v4083_v2 = vadd.f32 %v4517_v7, %v4075_v60 }
0x25c4   :  { %v4082_v4 = vadd.f32 %v4517_v7, %v4074_v38 }
0x25c6   :  { %v4089_v5 = vpack.c.bf16 %v4083_v2, %v4082_v4 }
0x25c8   :  { %5067 = vmatmul.mubr.msk.bf16.vlgmr.msra.gmra.mxu0 %vm253_vm1, %v4089_v5 }
0x25c9   :  { %5071 = vmatpush3.bf16.msra.mxu0 %v5161_v31 }
0x25ca   :  { %5072 = vmatprep.subr.bf16.mxu0 %v5162_v37 }
0x25cd   :  { %5073 = vmatpush3.bf16.msra.mxu0 %v5162_v37 }
0x25ce   :  { %5074 = vmatprep.subr.bf16.mxu0 %v5163_v9 }
0x25d1   :  { %5075 = vmatpush3.bf16.msra.mxu0 %v5163_v9 }
0x25d2   :  { %5076 = vmatprep.subr.bf16.mxu0 %v5164_v3 }
0x25d5   :  { %5077 = vmatpush3.bf16.msra.mxu0 %v5164_v3 }
0x25d6   :  { %5078 = vmatprep.subr.bf16.mxu0 %v5165_v19 }
0x25d9   :  { %5079 = vmatpush3.bf16.msra.mxu0 %v5165_v19 }
0x25da   :  { %5080 = vmatprep.subr.bf16.mxu0 %v5166_v12 }
0x25dd   :  { %5081 = vmatpush3.bf16.msra.mxu0 %v5166_v12 }
0x25de   :  { %5082 = vmatprep.subr.bf16.mxu0 %v5167_v14 }
0x25e1   :  { %5083 = vmatpush3.bf16.msra.mxu0 %v5167_v14 }
0x25e2   :  { %5084 = vmatprep.subr.bf16.mxu0 %v5168_v17 }
0x25e5   :  { %5085 = vmatpush3.bf16.msra.mxu0 %v5168_v17 }
0x2688   :  { %v5068_v1 = vpop.f32.mrf.mxu0 }
0x2689   :  { %v4156_v13 = vadd.f32 %v5068_v1, %v4518_v16 }
0x268a   :  { %v4147_v6 = vpop.f32.mrf.mxu0 }
0x268b   :  { %v4148_v26 = vadd.f32 %v4518_v16, %v4147_v6  ;;  %v4164_v34 = vmax.f32 %v4156_v13, 0.0 }
0x268c   :  { %v5069_v15 = vpop.f32.mrf.mxu0 }
0x268d   :  { %v4159_v49 = vadd.f32 %v5069_v15, %v4518_v16  ;;  %v4162_v21 = vmax.f32 %v4148_v26, 0.0 }
0x268e   :  { %v4150_v18 = vpop.f32.mrf.mxu0 }
0x268f   :  { %v4151_v11 = vadd.f32 %v4518_v16, %v4150_v18  ;;  %v4165_v24 = vmax.f32 %v4159_v49, 0.0 }
0x2691   :  { %v4163_v8 = vmax.f32 %v4151_v11, 0.0  ;;  %v4183_v23 = vpack.c.bf16 %v4165_v24, %v4164_v34 }
0x2693   :  { %v4182_v20 = vpack.c.bf16 %v4163_v8, %v4162_v21 }
0x2695   :  { %5086 = vmatprep.mubr.bf16.mxu0 %v4182_v20 }
0x2696   :  { %5087 = vmatmul.mubr.bf16.vlgmr.msra.gmra.mxu0 %v4183_v23 }
0x2756   :  { %v5088_v25 = vpop.f32.mrf.mxu0 }
0x2757   :  { %v4280_v27 = vadd.f32 %v5088_v25, %v4523_v33 }
0x2758   :  { %v4271_v10 = vpop.f32.mrf.mxu0 }
0x2759   :  { %4288 = vst [vmem:[%s6341_s14 + $0x10] sm:$0xff] %v4280_v27  ;;  %v4272_v48 = vadd.f32 %v4523_v33, %v4271_v10 }
0x275a   :  { %v5089_v28 = vpop.f32.mrf.mxu0 }
0x275b   :  { %4286 = vst [vmem:[%s6341_s14] sm:$0xff] %v4272_v48  ;;  %v4283_v43 = vadd.f32 %v5089_v28, %v4523_v33 }
0x275c   :  { %v4274_v30 = vpop.f32.mrf.mxu0 }
0x275d   :  { %4289 = vst [vmem:[%s6341_s14 + $0x18] sm:$0xff] %v4283_v43  ;;  %v4275_v45 = vadd.f32 %v4523_v33, %v4274_v30 }
0x275f   :  { %4287 = vst [vmem:[%s6341_s14 + $0x8] sm:$0xff] %v4275_v45 }

</bundles_post_ra>
